<compile_context>
chip_gen: v7x
topology: tpu7x:2x2x1
jax: 0.10.0
libtpu: 0.0.40
codegen_flags: <defaults>
</compile_context>

<pallas_src>
import math

import jax
import jax.numpy as jnp
from jax.experimental import pallas as pl
from jax.experimental.pallas import tpu as pltpu


def _round_up(v, m):
    return ((v + m - 1) // m) * m


def _chip_has_two_tensorcores():
    """True for chips whose TensorCores are fed by one 'parallel' grid axis."""
    try:
        kind = jax.devices()[0].device_kind.lower()
    except Exception:  # no devices / unknown backend
        return False
    return any(tag in kind for tag in ("7", "v4", "v5p"))


def peephole_lstm_forward(x, params, *, batch_block=None, time_chunk=None,
                          compute_dtype=jnp.float32, xg_dtype=jnp.float32):
    """x: (batch, seq_len, input_size) -> (batch, categories)."""
    B, T, I = x.shape
    H = params["W_hi"].shape[0]
    C = params["out_w"].shape[1]
    out_dtype = x.dtype

    Hp = _round_up(H, 128)          # lane-aligned gate / hidden width
    Cp = _round_up(C, 128)          # lane-dense classifier output

    # ---- batch blocking: split across TensorCores where the chip has 2 ------
    if batch_block is None:
        if _chip_has_two_tensorcores() and B >= 16:
            bb = _round_up(pl.cdiv(B, 2), 8)     # nb == 2 -> both TCs busy
        else:
            bb = _round_up(B, 8)                 # nb == 1 on single-TC chips
    else:
        bb = _round_up(batch_block, 8)
    nb = pl.cdiv(B, bb)
    Bp = nb * bb

    # ---- time chunking of the input-projection scratch (VMEM ceiling) -------
    xg_bytes = jnp.dtype(xg_dtype).itemsize
    if time_chunk is None:
        budget = 8 << 20                          # ~8 MiB xg scratch budget
        Tc = max(1, min(T, budget // max(1, bb * 4 * Hp * xg_bytes)))
    else:
        Tc = max(1, min(T, int(time_chunk)))

    # ---- wrapper-side layout plumbing ---------------------------------------
    # Cast BEFORE the reorder copy so the extra HBM pass moves compute_dtype
    # bytes (half the traffic in bf16).
    x = x.astype(compute_dtype)
    if Bp != B:
        x = jnp.concatenate([x, jnp.zeros((Bp - B, T, I), x.dtype)], axis=0)
    # Rows ordered (block, t, b-within-block): each timestep of a batch block
    # is a contiguous (bb, I) slice.
    x_r = (x.reshape(nb, bb, T, I)
             .transpose(0, 2, 1, 3)
             .reshape(nb * T * bb, I))

    # Packed / padded weights. Gate order: [i, f, g, o]; each gate occupies a
    # 128-lane-aligned block of width Hp (zero padded beyond H).
    Wx_p = jnp.zeros((I, 4 * Hp), jnp.float32)
    for k, name in enumerate(["W_ii", "W_if", "W_ig", "W_io"]):
        Wx_p = Wx_p.at[:, k * Hp:k * Hp + H].set(params[name])

    Wh_p = jnp.zeros((Hp, 4 * Hp), jnp.float32)
    for k, name in enumerate(["W_hi", "W_hf", "W_hg", "W_ho"]):
        Wh_p = Wh_p.at[:H, k * Hp:k * Hp + H].set(params[name])

    # Peephole weights for the i/f gates only (g has none, o uses c_new).
    Wc_p = jnp.zeros((Hp, 2 * Hp), jnp.float32)
    Wc_p = Wc_p.at[:H, 0:H].set(params["W_ci"])
    Wc_p = Wc_p.at[:H, Hp:Hp + H].set(params["W_cf"])

    b_p = jnp.zeros((1, 4 * Hp), jnp.float32)
    for k, name in enumerate(["b_ii", "b_if", "b_ig", "b_io"]):
        b_p = b_p.at[0, k * Hp:k * Hp + H].set(params[name])

    Wco_p = jnp.zeros((Hp, Hp), jnp.float32).at[:H, :H].set(params["W_co"])
    Wout_p = jnp.zeros((Hp, Cp), jnp.float32).at[:H, :C].set(params["out_w"])
    bout_p = jnp.zeros((1, Cp), jnp.float32).at[0, :C].set(params["out_b"])

    # MXU operands optionally bf16 (v6e/v7x); biases / carries / accum stay f32.
    Wx_p = Wx_p.astype(compute_dtype)
    Wh_p = Wh_p.astype(compute_dtype)
    Wc_p = Wc_p.astype(compute_dtype)
    Wco_p = Wco_p.astype(compute_dtype)
    Wout_p = Wout_p.astype(compute_dtype)

    # ---- explicit VMEM limit sized from actual usage (worst case 2 buffers) -
    cbytes = jnp.dtype(compute_dtype).itemsize
    obytes = jnp.dtype(out_dtype).itemsize
    weight_elems = (I * 4 * Hp + Hp * 4 * Hp + Hp * 2 * Hp + Hp * Hp + Hp * Cp)
    vmem_needed = (2 * T * bb * I * cbytes            # x slab (double buffered)
                   + 2 * weight_elems * cbytes        # weights
                   + 2 * (4 * Hp + Cp) * 4            # biases
                   + Tc * bb * 4 * Hp * xg_bytes      # xg scratch
                   + 2 * bb * Cp * obytes             # output
                   + 4 * bb * Hp * 4)                 # h/c carries + temps
    vmem_limit = int(min(max(2 * vmem_needed, 32 * 1024 * 1024),
                         128 * 1024 * 1024))

    # ------------------------------- kernel ----------------------------------
    def kernel(x_ref, wx_ref, wh_ref, wc_ref, wco_ref, b_ref, wout_ref,
               bout_ref, out_ref, xg_sc):
        def sigm(z):
            # sigmoid(z) == 0.5*tanh(z/2) + 0.5: one EUP op (no exp + recip).
            return 0.5 * jnp.tanh(0.5 * z) + 0.5

        wdt = wh_ref.dtype
        bias = b_ref[...]                                   # (1, 4Hp) f32

        h = jnp.zeros((bb, Hp), jnp.float32)
        c = jnp.zeros((bb, Hp), jnp.float32)

        # Static chunk loop: bounds scratch at (Tc*bb, 4Hp) instead of T*bb.
        for c0 in range(0, T, Tc):
            clen = min(Tc, T - c0)
            rows = clen * bb
            # Input contribution (+bias) for this chunk in one MXU pass.
            xg_sc[pl.ds(0, rows), :] = (
                jnp.dot(x_ref[pl.ds(c0 * bb, rows), :], wx_ref[...],
                        preferred_element_type=jnp.float32) + bias
            ).astype(xg_sc.dtype)

            def step(t, carry):
                h, c = carry
                row0 = pl.multiple_of(t * bb, bb)
                xg_t = xg_sc[pl.ds(row0, bb), :].astype(jnp.float32)
                # Split recurrent dots: no h/c concat, no zero g/o peephole cols.
                gh = jnp.dot(h.astype(wdt), wh_ref[...],
                             preferred_element_type=jnp.float32)   # (bb, 4Hp)
                gc = jnp.dot(c.astype(wdt), wc_ref[...],
                             preferred_element_type=jnp.float32)   # (bb, 2Hp)
                pre = xg_t + gh
                i_t = sigm(pre[:, 0 * Hp:1 * Hp] + gc[:, 0 * Hp:1 * Hp])
                f_t = sigm(pre[:, 1 * Hp:2 * Hp] + gc[:, 1 * Hp:2 * Hp])
                g_t = jnp.tanh(pre[:, 2 * Hp:3 * Hp])
                c_new = f_t * c + i_t * g_t
                # o-gate peephole uses the *updated* cell state (matches torch).
                o_t = sigm(pre[:, 3 * Hp:4 * Hp]
                           + jnp.dot(c_new.astype(wco_ref.dtype), wco_ref[...],
                                     preferred_element_type=jnp.float32))
                h_new = o_t * jnp.tanh(c_new)
                return h_new, c_new

            h, c = jax.lax.fori_loop(0, clen, step, (h, c),
                                     unroll=min(clen, 8))

        # Final Linear on the last hidden state; lane-dense (bb, Cp) store.
        out_ref[...] = (jnp.dot(h.astype(wout_ref.dtype), wout_ref[...],
                                preferred_element_type=jnp.float32)
                        + bout_ref[...]).astype(out_ref.dtype)

    def _weight_spec(shape, single_buffer):
        if single_buffer:
            return pl.BlockSpec(shape, lambda n: (0,) * len(shape),
                                pipeline_mode=pl.Buffered(1))
        return pl.BlockSpec(shape, lambda n: (0,) * len(shape))

    def _call(single_buffer_weights):
        ws = lambda shp: _weight_spec(shp, single_buffer_weights)
        return pl.pallas_call(
            kernel,
            out_shape=jax.ShapeDtypeStruct((Bp, Cp), out_dtype),
            grid=(nb,),
            in_specs=[
                pl.BlockSpec((T * bb, I), lambda n: (n, 0)),   # x slab / block
                ws((I, 4 * Hp)),                               # Wx packed
                ws((Hp, 4 * Hp)),                              # Wh packed
                ws((Hp, 2 * Hp)),                              # Wc (i,f peep)
                ws((Hp, Hp)),                                  # W_co
                ws((1, 4 * Hp)),                               # gate biases
                ws((Hp, Cp)),                                  # out weight
                ws((1, Cp)),                                   # out bias
            ],
            out_specs=pl.BlockSpec((bb, Cp), lambda n: (n, 0)),
            scratch_shapes=[pltpu.VMEM((Tc * bb, 4 * Hp), xg_dtype)],
            compiler_params=pltpu.CompilerParams(
                dimension_semantics=("parallel",),
                vmem_limit_bytes=vmem_limit),
        )(x_r, Wx_p, Wh_p, Wc_p, Wco_p, b_p, Wout_p, bout_p)

    try:
        # Constant-index weights: request single buffering (halves their VMEM).
        out_padded = _call(True)
    except Exception:
        # Installed Pallas rejected pipeline_mode / Buffered(1): default bufs.
        out_padded = _call(False)

    return out_padded[:B, :C]


# -----------------------------------------------------------------------------
# Deterministic parameter init mirroring the module's init_weights():
# uniform(-1/sqrt(H), 1/sqrt(H)) for everything, then b_if := 1.
# -----------------------------------------------------------------------------
def init_params(key, input_size, hidden_size, categories):
    stdv = 1.0 / math.sqrt(hidden_size)
    names_shapes = [
        ("W_ii", (input_size, hidden_size)),
        ("W_hi", (hidden_size, hidden_size)),
        ("b_ii", (hidden_size,)),
        ("W_ci", (hidden_size, hidden_size)),
        ("W_if", (input_size, hidden_size)),
        ("W_hf", (hidden_size, hidden_size)),
        ("b_if", (hidden_size,)),
        ("W_cf", (hidden_size, hidden_size)),
        ("W_ig", (input_size, hidden_size)),
        ("W_hg", (hidden_size, hidden_size)),
        ("b_ig", (hidden_size,)),
        ("W_io", (input_size, hidden_size)),
        ("W_ho", (hidden_size, hidden_size)),
        ("b_io", (hidden_size,)),
        ("W_co", (hidden_size, hidden_size)),
        ("out_w", (hidden_size, categories)),
        ("out_b", (categories,)),
    ]
    keys = jax.random.split(key, len(names_shapes))
    params = {
        name: jax.random.uniform(k, shape, jnp.float32, -stdv, stdv)
        for k, (name, shape) in zip(keys, names_shapes)
    }
    params["b_if"] = jnp.ones((hidden_size,), jnp.float32)  # constant_(b_if, 1)
    return params


# Pure-JAX reference (mirrors the PyTorch loop) for correctness checking.
def reference_forward(x, p):
    B, T, _ = x.shape
    H = p["W_hi"].shape[0]
    h = jnp.zeros((B, H), jnp.float32)
    c = jnp.zeros((B, H), jnp.float32)
    for t in range(T):
        x_t = x[:, t, :]
        i_t = jax.nn.sigmoid(x_t @ p["W_ii"] + h @ p["W_hi"] + p["b_ii"] + c @ p["W_ci"])
        f_t = jax.nn.sigmoid(x_t @ p["W_if"] + h @ p["W_hf"] + p["b_if"] + c @ p["W_cf"])
        g_t = jnp.tanh(x_t @ p["W_ig"] + h @ p["W_hg"] + p["b_ig"])
        c = f_t * c + i_t * g_t
        o_t = jax.nn.sigmoid(x_t @ p["W_io"] + h @ p["W_ho"] + p["b_io"] + c @ p["W_co"])
        h = o_t * jnp.tanh(c)
    return h @ p["out_w"] + p["out_b"]


if __name__ == "__main__":
    batch, seq_len = 8, 8
    input_size, hidden_size, categories = 16, 32, 10

    key = jax.random.PRNGKey(0)
    k_params, k_x = jax.random.split(key)
    params = init_params(k_params, input_size, hidden_size, categories)
    x = jax.random.normal(k_x, (batch, seq_len, input_size), jnp.float32)

    out = peephole_lstm_forward(x, params)      # f32 MXU operands (exact path)
    out = jax.block_until_ready(out)

    ref = reference_forward(x, params)
    assert out.shape == (batch, categories)
    assert jnp.allclose(out, ref, atol=1e-5, rtol=1e-5), "mismatch vs reference"

    print("KERNEL_OK")
</pallas_src>

<mosaic_0001>
module attributes {stable_mosaic.version = 11 : i64} {
  func.func @kernel(%arg0: i32, %arg1: memref<64x16xf32, #tpu.memory_space<vmem>>, %arg2: memref<16x512xf32, #tpu.memory_space<vmem>>, %arg3: memref<128x512xf32, #tpu.memory_space<vmem>>, %arg4: memref<128x256xf32, #tpu.memory_space<vmem>>, %arg5: memref<128x128xf32, #tpu.memory_space<vmem>>, %arg6: memref<1x512xf32, #tpu.memory_space<vmem>>, %arg7: memref<128x128xf32, #tpu.memory_space<vmem>>, %arg8: memref<1x128xf32, #tpu.memory_space<vmem>>, %arg9: memref<8x128xf32, #tpu.memory_space<vmem>>, %arg10: memref<64x512xf32, #tpu.memory_space<vmem>>) attributes {dimension_semantics = [#tpu.dimension_semantics<parallel>], iteration_bounds = array<i64: 1>, scalar_prefetch = 0 : i64, scratch_operands = 1 : i64, tpu.core_type = #tpu.core_type<tc>, window_params = [{transform_indices = @transform_0, window_bounds = array<i64: 64, 16>}, {pipeline_mode = #tpu.pipeline_mode<synchronous>, transform_indices = @transform_1, window_bounds = array<i64: 16, 512>}, {pipeline_mode = #tpu.pipeline_mode<synchronous>, transform_indices = @transform_2, window_bounds = array<i64: 128, 512>}, {pipeline_mode = #tpu.pipeline_mode<synchronous>, transform_indices = @transform_3, window_bounds = array<i64: 128, 256>}, {pipeline_mode = #tpu.pipeline_mode<synchronous>, transform_indices = @transform_4, window_bounds = array<i64: 128, 128>}, {pipeline_mode = #tpu.pipeline_mode<synchronous>, transform_indices = @transform_5, window_bounds = array<i64: 1, 512>}, {pipeline_mode = #tpu.pipeline_mode<synchronous>, transform_indices = @transform_6, window_bounds = array<i64: 128, 128>}, {pipeline_mode = #tpu.pipeline_mode<synchronous>, transform_indices = @transform_7, window_bounds = array<i64: 1, 128>}, {transform_indices = @transform_8, window_bounds = array<i64: 8, 128>}]} {
    %c0 = arith.constant 0 : index
    %c0_0 = arith.constant 0 : index
    %0 = vector.load %arg6[%c0, %c0_0] : memref<1x512xf32, #tpu.memory_space<vmem>>, vector<1x512xf32>
    %cst = arith.constant 0.000000e+00 : f32
    %1 = vector.broadcast %cst : f32 to vector<8x128xf32>
    %cst_1 = arith.constant 0.000000e+00 : f32
    %2 = vector.broadcast %cst_1 : f32 to vector<8x128xf32>
    %c0_2 = arith.constant 0 : index
    %c0_3 = arith.constant 0 : index
    %3 = vector.load %arg1[%c0_2, %c0_3] : memref<64x16xf32, #tpu.memory_space<vmem>>, vector<64x16xf32>
    %c0_4 = arith.constant 0 : index
    %c0_5 = arith.constant 0 : index
    %4 = vector.load %arg2[%c0_4, %c0_5] : memref<16x512xf32, #tpu.memory_space<vmem>>, vector<16x512xf32>
    %cst_6 = arith.constant dense<0.000000e+00> : vector<64x512xf32>
    %5 = tpu.matmul %3, %4, %cst_6 {dimension_numbers = #tpu.dot_dimension_numbers<[1], [0], [0], [1], [0, 0, 1, 1], [], []>} : vector<64x16xf32>, vector<16x512xf32>, vector<64x512xf32> -> vector<64x512xf32>
    %6 = vector.broadcast %0 : vector<1x512xf32> to vector<64x512xf32>
    %7 = arith.addf %5, %6 : vector<64x512xf32>
    %c0_7 = arith.constant 0 : index
    %c0_8 = arith.constant 0 : index
    %8 = vector.load %arg10[%c0_7, %c0_8] : memref<64x512xf32, #tpu.memory_space<vmem>>, vector<64x512xf32>
    tpu.vector_store %arg10[%c0_7, %c0_8], %7 {strides = array<i32>} : memref<64x512xf32, #tpu.memory_space<vmem>>, vector<64x512xf32>,
    %c0_i32 = arith.constant 0 : i32
    %c8_i32 = arith.constant 8 : i32
    %9 = arith.muli %c0_i32, %c8_i32 : i32
    %10 = tpu.assume_multiple %9, 8 : i32
    %11 = arith.index_cast %10 : i32 to index
    %c0_9 = arith.constant 0 : index
    %12 = vector.load %arg10[%11, %c0_9] : memref<64x512xf32, #tpu.memory_space<vmem>>, vector<8x512xf32>
    %c0_10 = arith.constant 0 : index
    %c0_11 = arith.constant 0 : index
    %13 = vector.load %arg3[%c0_10, %c0_11] : memref<128x512xf32, #tpu.memory_space<vmem>>, vector<128x512xf32>
    %cst_12 = arith.constant dense<0.000000e+00> : vector<8x512xf32>
    %14 = tpu.matmul %1, %13, %cst_12 {dimension_numbers = #tpu.dot_dimension_numbers<[1], [0], [0], [1], [0, 0, 1, 1], [], []>} : vector<8x128xf32>, vector<128x512xf32>, vector<8x512xf32> -> vector<8x512xf32>
    %c0_13 = arith.constant 0 : index
    %c0_14 = arith.constant 0 : index
    %15 = vector.load %arg4[%c0_13, %c0_14] : memref<128x256xf32, #tpu.memory_space<vmem>>, vector<128x256xf32>
    %cst_15 = arith.constant dense<0.000000e+00> : vector<8x256xf32>
    %16 = tpu.matmul %2, %15, %cst_15 {dimension_numbers = #tpu.dot_dimension_numbers<[1], [0], [0], [1], [0, 0, 1, 1], [], []>} : vector<8x128xf32>, vector<128x256xf32>, vector<8x256xf32> -> vector<8x256xf32>
    %17 = arith.addf %12, %14 : vector<8x512xf32>
    %18 = vector.extract_strided_slice %17 {offsets = [0, 0], sizes = [8, 128], strides = [1, 1]} : vector<8x512xf32> to vector<8x128xf32>
    %19 = vector.extract_strided_slice %16 {offsets = [0, 0], sizes = [8, 128], strides = [1, 1]} : vector<8x256xf32> to vector<8x128xf32>
    %20 = arith.addf %18, %19 : vector<8x128xf32>
    %cst_16 = arith.constant 5.000000e-01 : f32
    %21 = vector.broadcast %cst_16 : f32 to vector<8x128xf32>
    %22 = arith.mulf %21, %20 : vector<8x128xf32>
    %23 = math.tanh %22 : vector<8x128xf32>
    %cst_17 = arith.constant 5.000000e-01 : f32
    %24 = vector.broadcast %cst_17 : f32 to vector<8x128xf32>
    %25 = arith.mulf %24, %23 : vector<8x128xf32>
    %cst_18 = arith.constant 5.000000e-01 : f32
    %26 = vector.broadcast %cst_18 : f32 to vector<8x128xf32>
    %27 = arith.addf %25, %26 : vector<8x128xf32>
    %28 = vector.extract_strided_slice %17 {offsets = [0, 128], sizes = [8, 128], strides = [1, 1]} : vector<8x512xf32> to vector<8x128xf32>
    %29 = vector.extract_strided_slice %16 {offsets = [0, 128], sizes = [8, 128], strides = [1, 1]} : vector<8x256xf32> to vector<8x128xf32>
    %30 = arith.addf %28, %29 : vector<8x128xf32>
    %cst_19 = arith.constant 5.000000e-01 : f32
    %31 = vector.broadcast %cst_19 : f32 to vector<8x128xf32>
    %32 = arith.mulf %31, %30 : vector<8x128xf32>
    %33 = math.tanh %32 : vector<8x128xf32>
    %cst_20 = arith.constant 5.000000e-01 : f32
    %34 = vector.broadcast %cst_20 : f32 to vector<8x128xf32>
    %35 = arith.mulf %34, %33 : vector<8x128xf32>
    %cst_21 = arith.constant 5.000000e-01 : f32
    %36 = vector.broadcast %cst_21 : f32 to vector<8x128xf32>
    %37 = arith.addf %35, %36 : vector<8x128xf32>
    %38 = vector.extract_strided_slice %17 {offsets = [0, 256], sizes = [8, 128], strides = [1, 1]} : vector<8x512xf32> to vector<8x128xf32>
    %39 = math.tanh %38 : vector<8x128xf32>
    %40 = arith.mulf %37, %2 : vector<8x128xf32>
    %41 = arith.mulf %27, %39 : vector<8x128xf32>
    %42 = arith.addf %40, %41 : vector<8x128xf32>
    %43 = vector.extract_strided_slice %17 {offsets = [0, 384], sizes = [8, 128], strides = [1, 1]} : vector<8x512xf32> to vector<8x128xf32>
    %c0_22 = arith.constant 0 : index
    %c0_23 = arith.constant 0 : index
    %44 = vector.load %arg5[%c0_22, %c0_23] : memref<128x128xf32, #tpu.memory_space<vmem>>, vector<128x128xf32>
    %cst_24 = arith.constant dense<0.000000e+00> : vector<8x128xf32>
    %45 = tpu.matmul %42, %44, %cst_24 {dimension_numbers = #tpu.dot_dimension_numbers<[1], [0], [0], [1], [0, 0, 1, 1], [], []>} : vector<8x128xf32>, vector<128x128xf32>, vector<8x128xf32> -> vector<8x128xf32>
    %46 = arith.addf %43, %45 : vector<8x128xf32>
    %cst_25 = arith.constant 5.000000e-01 : f32
    %47 = vector.broadcast %cst_25 : f32 to vector<8x128xf32>
    %48 = arith.mulf %47, %46 : vector<8x128xf32>
    %49 = math.tanh %48 : vector<8x128xf32>
    %cst_26 = arith.constant 5.000000e-01 : f32
    %50 = vector.broadcast %cst_26 : f32 to vector<8x128xf32>
    %51 = arith.mulf %50, %49 : vector<8x128xf32>
    %cst_27 = arith.constant 5.000000e-01 : f32
    %52 = vector.broadcast %cst_27 : f32 to vector<8x128xf32>
    %53 = arith.addf %51, %52 : vector<8x128xf32>
    %54 = math.tanh %42 : vector<8x128xf32>
    %55 = arith.mulf %53, %54 : vector<8x128xf32>
    %c1_i32 = arith.constant 1 : i32
    %c8_i32_28 = arith.constant 8 : i32
    %56 = arith.muli %c1_i32, %c8_i32_28 : i32
    %57 = tpu.assume_multiple %56, 8 : i32
    %58 = arith.index_cast %57 : i32 to index
    %c0_29 = arith.constant 0 : index
    %59 = vector.load %arg10[%58, %c0_29] : memref<64x512xf32, #tpu.memory_space<vmem>>, vector<8x512xf32>
    %c0_30 = arith.constant 0 : index
    %c0_31 = arith.constant 0 : index
    %60 = vector.load %arg3[%c0_30, %c0_31] : memref<128x512xf32, #tpu.memory_space<vmem>>, vector<128x512xf32>
    %cst_32 = arith.constant dense<0.000000e+00> : vector<8x512xf32>
    %61 = tpu.matmul %55, %60, %cst_32 {dimension_numbers = #tpu.dot_dimension_numbers<[1], [0], [0], [1], [0, 0, 1, 1], [], []>} : vector<8x128xf32>, vector<128x512xf32>, vector<8x512xf32> -> vector<8x512xf32>
    %c0_33 = arith.constant 0 : index
    %c0_34 = arith.constant 0 : index
    %62 = vector.load %arg4[%c0_33, %c0_34] : memref<128x256xf32, #tpu.memory_space<vmem>>, vector<128x256xf32>
    %cst_35 = arith.constant dense<0.000000e+00> : vector<8x256xf32>
    %63 = tpu.matmul %42, %62, %cst_35 {dimension_numbers = #tpu.dot_dimension_numbers<[1], [0], [0], [1], [0, 0, 1, 1], [], []>} : vector<8x128xf32>, vector<128x256xf32>, vector<8x256xf32> -> vector<8x256xf32>
    %64 = arith.addf %59, %61 : vector<8x512xf32>
    %65 = vector.extract_strided_slice %64 {offsets = [0, 0], sizes = [8, 128], strides = [1, 1]} : vector<8x512xf32> to vector<8x128xf32>
    %66 = vector.extract_strided_slice %63 {offsets = [0, 0], sizes = [8, 128], strides = [1, 1]} : vector<8x256xf32> to vector<8x128xf32>
    %67 = arith.addf %65, %66 : vector<8x128xf32>
    %cst_36 = arith.constant 5.000000e-01 : f32
    %68 = vector.broadcast %cst_36 : f32 to vector<8x128xf32>
    %69 = arith.mulf %68, %67 : vector<8x128xf32>
    %70 = math.tanh %69 : vector<8x128xf32>
    %cst_37 = arith.constant 5.000000e-01 : f32
    %71 = vector.broadcast %cst_37 : f32 to vector<8x128xf32>
    %72 = arith.mulf %71, %70 : vector<8x128xf32>
    %cst_38 = arith.constant 5.000000e-01 : f32
    %73 = vector.broadcast %cst_38 : f32 to vector<8x128xf32>
    %74 = arith.addf %72, %73 : vector<8x128xf32>
    %75 = vector.extract_strided_slice %64 {offsets = [0, 128], sizes = [8, 128], strides = [1, 1]} : vector<8x512xf32> to vector<8x128xf32>
    %76 = vector.extract_strided_slice %63 {offsets = [0, 128], sizes = [8, 128], strides = [1, 1]} : vector<8x256xf32> to vector<8x128xf32>
    %77 = arith.addf %75, %76 : vector<8x128xf32>
    %cst_39 = arith.constant 5.000000e-01 : f32
    %78 = vector.broadcast %cst_39 : f32 to vector<8x128xf32>
    %79 = arith.mulf %78, %77 : vector<8x128xf32>
    %80 = math.tanh %79 : vector<8x128xf32>
    %cst_40 = arith.constant 5.000000e-01 : f32
    %81 = vector.broadcast %cst_40 : f32 to vector<8x128xf32>
    %82 = arith.mulf %81, %80 : vector<8x128xf32>
    %cst_41 = arith.constant 5.000000e-01 : f32
    %83 = vector.broadcast %cst_41 : f32 to vector<8x128xf32>
    %84 = arith.addf %82, %83 : vector<8x128xf32>
    %85 = vector.extract_strided_slice %64 {offsets = [0, 256], sizes = [8, 128], strides = [1, 1]} : vector<8x512xf32> to vector<8x128xf32>
    %86 = math.tanh %85 : vector<8x128xf32>
    %87 = arith.mulf %84, %42 : vector<8x128xf32>
    %88 = arith.mulf %74, %86 : vector<8x128xf32>
    %89 = arith.addf %87, %88 : vector<8x128xf32>
    %90 = vector.extract_strided_slice %64 {offsets = [0, 384], sizes = [8, 128], strides = [1, 1]} : vector<8x512xf32> to vector<8x128xf32>
    %c0_42 = arith.constant 0 : index
    %c0_43 = arith.constant 0 : index
    %91 = vector.load %arg5[%c0_42, %c0_43] : memref<128x128xf32, #tpu.memory_space<vmem>>, vector<128x128xf32>
    %cst_44 = arith.constant dense<0.000000e+00> : vector<8x128xf32>
    %92 = tpu.matmul %89, %91, %cst_44 {dimension_numbers = #tpu.dot_dimension_numbers<[1], [0], [0], [1], [0, 0, 1, 1], [], []>} : vector<8x128xf32>, vector<128x128xf32>, vector<8x128xf32> -> vector<8x128xf32>
    %93 = arith.addf %90, %92 : vector<8x128xf32>
    %cst_45 = arith.constant 5.000000e-01 : f32
    %94 = vector.broadcast %cst_45 : f32 to vector<8x128xf32>
    %95 = arith.mulf %94, %93 : vector<8x128xf32>
    %96 = math.tanh %95 : vector<8x128xf32>
    %cst_46 = arith.constant 5.000000e-01 : f32
    %97 = vector.broadcast %cst_46 : f32 to vector<8x128xf32>
    %98 = arith.mulf %97, %96 : vector<8x128xf32>
    %cst_47 = arith.constant 5.000000e-01 : f32
    %99 = vector.broadcast %cst_47 : f32 to vector<8x128xf32>
    %100 = arith.addf %98, %99 : vector<8x128xf32>
    %101 = math.tanh %89 : vector<8x128xf32>
    %102 = arith.mulf %100, %101 : vector<8x128xf32>
    %c2_i32 = arith.constant 2 : i32
    %c8_i32_48 = arith.constant 8 : i32
    %103 = arith.muli %c2_i32, %c8_i32_48 : i32
    %104 = tpu.assume_multiple %103, 8 : i32
    %105 = arith.index_cast %104 : i32 to index
    %c0_49 = arith.constant 0 : index
    %106 = vector.load %arg10[%105, %c0_49] : memref<64x512xf32, #tpu.memory_space<vmem>>, vector<8x512xf32>
    %c0_50 = arith.constant 0 : index
    %c0_51 = arith.constant 0 : index
    %107 = vector.load %arg3[%c0_50, %c0_51] : memref<128x512xf32, #tpu.memory_space<vmem>>, vector<128x512xf32>
    %cst_52 = arith.constant dense<0.000000e+00> : vector<8x512xf32>
    %108 = tpu.matmul %102, %107, %cst_52 {dimension_numbers = #tpu.dot_dimension_numbers<[1], [0], [0], [1], [0, 0, 1, 1], [], []>} : vector<8x128xf32>, vector<128x512xf32>, vector<8x512xf32> -> vector<8x512xf32>
    %c0_53 = arith.constant 0 : index
    %c0_54 = arith.constant 0 : index
    %109 = vector.load %arg4[%c0_53, %c0_54] : memref<128x256xf32, #tpu.memory_space<vmem>>, vector<128x256xf32>
    %cst_55 = arith.constant dense<0.000000e+00> : vector<8x256xf32>
    %110 = tpu.matmul %89, %109, %cst_55 {dimension_numbers = #tpu.dot_dimension_numbers<[1], [0], [0], [1], [0, 0, 1, 1], [], []>} : vector<8x128xf32>, vector<128x256xf32>, vector<8x256xf32> -> vector<8x256xf32>
    %111 = arith.addf %106, %108 : vector<8x512xf32>
    %112 = vector.extract_strided_slice %111 {offsets = [0, 0], sizes = [8, 128], strides = [1, 1]} : vector<8x512xf32> to vector<8x128xf32>
    %113 = vector.extract_strided_slice %110 {offsets = [0, 0], sizes = [8, 128], strides = [1, 1]} : vector<8x256xf32> to vector<8x128xf32>
    %114 = arith.addf %112, %113 : vector<8x128xf32>
    %cst_56 = arith.constant 5.000000e-01 : f32
    %115 = vector.broadcast %cst_56 : f32 to vector<8x128xf32>
    %116 = arith.mulf %115, %114 : vector<8x128xf32>
    %117 = math.tanh %116 : vector<8x128xf32>
    %cst_57 = arith.constant 5.000000e-01 : f32
    %118 = vector.broadcast %cst_57 : f32 to vector<8x128xf32>
    %119 = arith.mulf %118, %117 : vector<8x128xf32>
    %cst_58 = arith.constant 5.000000e-01 : f32
    %120 = vector.broadcast %cst_58 : f32 to vector<8x128xf32>
    %121 = arith.addf %119, %120 : vector<8x128xf32>
    %122 = vector.extract_strided_slice %111 {offsets = [0, 128], sizes = [8, 128], strides = [1, 1]} : vector<8x512xf32> to vector<8x128xf32>
    %123 = vector.extract_strided_slice %110 {offsets = [0, 128], sizes = [8, 128], strides = [1, 1]} : vector<8x256xf32> to vector<8x128xf32>
    %124 = arith.addf %122, %123 : vector<8x128xf32>
    %cst_59 = arith.constant 5.000000e-01 : f32
    %125 = vector.broadcast %cst_59 : f32 to vector<8x128xf32>
    %126 = arith.mulf %125, %124 : vector<8x128xf32>
    %127 = math.tanh %126 : vector<8x128xf32>
    %cst_60 = arith.constant 5.000000e-01 : f32
    %128 = vector.broadcast %cst_60 : f32 to vector<8x128xf32>
    %129 = arith.mulf %128, %127 : vector<8x128xf32>
    %cst_61 = arith.constant 5.000000e-01 : f32
    %130 = vector.broadcast %cst_61 : f32 to vector<8x128xf32>
    %131 = arith.addf %129, %130 : vector<8x128xf32>
    %132 = vector.extract_strided_slice %111 {offsets = [0, 256], sizes = [8, 128], strides = [1, 1]} : vector<8x512xf32> to vector<8x128xf32>
    %133 = math.tanh %132 : vector<8x128xf32>
    %134 = arith.mulf %131, %89 : vector<8x128xf32>
    %135 = arith.mulf %121, %133 : vector<8x128xf32>
    %136 = arith.addf %134, %135 : vector<8x128xf32>
    %137 = vector.extract_strided_slice %111 {offsets = [0, 384], sizes = [8, 128], strides = [1, 1]} : vector<8x512xf32> to vector<8x128xf32>
    %c0_62 = arith.constant 0 : index
    %c0_63 = arith.constant 0 : index
    %138 = vector.load %arg5[%c0_62, %c0_63] : memref<128x128xf32, #tpu.memory_space<vmem>>, vector<128x128xf32>
    %cst_64 = arith.constant dense<0.000000e+00> : vector<8x128xf32>
    %139 = tpu.matmul %136, %138, %cst_64 {dimension_numbers = #tpu.dot_dimension_numbers<[1], [0], [0], [1], [0, 0, 1, 1], [], []>} : vector<8x128xf32>, vector<128x128xf32>, vector<8x128xf32> -> vector<8x128xf32>
    %140 = arith.addf %137, %139 : vector<8x128xf32>
    %cst_65 = arith.constant 5.000000e-01 : f32
    %141 = vector.broadcast %cst_65 : f32 to vector<8x128xf32>
    %142 = arith.mulf %141, %140 : vector<8x128xf32>
    %143 = math.tanh %142 : vector<8x128xf32>
    %cst_66 = arith.constant 5.000000e-01 : f32
    %144 = vector.broadcast %cst_66 : f32 to vector<8x128xf32>
    %145 = arith.mulf %144, %143 : vector<8x128xf32>
    %cst_67 = arith.constant 5.000000e-01 : f32
    %146 = vector.broadcast %cst_67 : f32 to vector<8x128xf32>
    %147 = arith.addf %145, %146 : vector<8x128xf32>
    %148 = math.tanh %136 : vector<8x128xf32>
    %149 = arith.mulf %147, %148 : vector<8x128xf32>
    %c3_i32 = arith.constant 3 : i32
    %c8_i32_68 = arith.constant 8 : i32
    %150 = arith.muli %c3_i32, %c8_i32_68 : i32
    %151 = tpu.assume_multiple %150, 8 : i32
    %152 = arith.index_cast %151 : i32 to index
    %c0_69 = arith.constant 0 : index
    %153 = vector.load %arg10[%152, %c0_69] : memref<64x512xf32, #tpu.memory_space<vmem>>, vector<8x512xf32>
    %c0_70 = arith.constant 0 : index
    %c0_71 = arith.constant 0 : index
    %154 = vector.load %arg3[%c0_70, %c0_71] : memref<128x512xf32, #tpu.memory_space<vmem>>, vector<128x512xf32>
    %cst_72 = arith.constant dense<0.000000e+00> : vector<8x512xf32>
    %155 = tpu.matmul %149, %154, %cst_72 {dimension_numbers = #tpu.dot_dimension_numbers<[1], [0], [0], [1], [0, 0, 1, 1], [], []>} : vector<8x128xf32>, vector<128x512xf32>, vector<8x512xf32> -> vector<8x512xf32>
    %c0_73 = arith.constant 0 : index
    %c0_74 = arith.constant 0 : index
    %156 = vector.load %arg4[%c0_73, %c0_74] : memref<128x256xf32, #tpu.memory_space<vmem>>, vector<128x256xf32>
    %cst_75 = arith.constant dense<0.000000e+00> : vector<8x256xf32>
    %157 = tpu.matmul %136, %156, %cst_75 {dimension_numbers = #tpu.dot_dimension_numbers<[1], [0], [0], [1], [0, 0, 1, 1], [], []>} : vector<8x128xf32>, vector<128x256xf32>, vector<8x256xf32> -> vector<8x256xf32>
    %158 = arith.addf %153, %155 : vector<8x512xf32>
    %159 = vector.extract_strided_slice %158 {offsets = [0, 0], sizes = [8, 128], strides = [1, 1]} : vector<8x512xf32> to vector<8x128xf32>
    %160 = vector.extract_strided_slice %157 {offsets = [0, 0], sizes = [8, 128], strides = [1, 1]} : vector<8x256xf32> to vector<8x128xf32>
    %161 = arith.addf %159, %160 : vector<8x128xf32>
    %cst_76 = arith.constant 5.000000e-01 : f32
    %162 = vector.broadcast %cst_76 : f32 to vector<8x128xf32>
    %163 = arith.mulf %162, %161 : vector<8x128xf32>
    %164 = math.tanh %163 : vector<8x128xf32>
    %cst_77 = arith.constant 5.000000e-01 : f32
    %165 = vector.broadcast %cst_77 : f32 to vector<8x128xf32>
    %166 = arith.mulf %165, %164 : vector<8x128xf32>
    %cst_78 = arith.constant 5.000000e-01 : f32
    %167 = vector.broadcast %cst_78 : f32 to vector<8x128xf32>
    %168 = arith.addf %166, %167 : vector<8x128xf32>
    %169 = vector.extract_strided_slice %158 {offsets = [0, 128], sizes = [8, 128], strides = [1, 1]} : vector<8x512xf32> to vector<8x128xf32>
    %170 = vector.extract_strided_slice %157 {offsets = [0, 128], sizes = [8, 128], strides = [1, 1]} : vector<8x256xf32> to vector<8x128xf32>
    %171 = arith.addf %169, %170 : vector<8x128xf32>
    %cst_79 = arith.constant 5.000000e-01 : f32
    %172 = vector.broadcast %cst_79 : f32 to vector<8x128xf32>
    %173 = arith.mulf %172, %171 : vector<8x128xf32>
    %174 = math.tanh %173 : vector<8x128xf32>
    %cst_80 = arith.constant 5.000000e-01 : f32
    %175 = vector.broadcast %cst_80 : f32 to vector<8x128xf32>
    %176 = arith.mulf %175, %174 : vector<8x128xf32>
    %cst_81 = arith.constant 5.000000e-01 : f32
    %177 = vector.broadcast %cst_81 : f32 to vector<8x128xf32>
    %178 = arith.addf %176, %177 : vector<8x128xf32>
    %179 = vector.extract_strided_slice %158 {offsets = [0, 256], sizes = [8, 128], strides = [1, 1]} : vector<8x512xf32> to vector<8x128xf32>
    %180 = math.tanh %179 : vector<8x128xf32>
    %181 = arith.mulf %178, %136 : vector<8x128xf32>
    %182 = arith.mulf %168, %180 : vector<8x128xf32>
    %183 = arith.addf %181, %182 : vector<8x128xf32>
    %184 = vector.extract_strided_slice %158 {offsets = [0, 384], sizes = [8, 128], strides = [1, 1]} : vector<8x512xf32> to vector<8x128xf32>
    %c0_82 = arith.constant 0 : index
    %c0_83 = arith.constant 0 : index
    %185 = vector.load %arg5[%c0_82, %c0_83] : memref<128x128xf32, #tpu.memory_space<vmem>>, vector<128x128xf32>
    %cst_84 = arith.constant dense<0.000000e+00> : vector<8x128xf32>
    %186 = tpu.matmul %183, %185, %cst_84 {dimension_numbers = #tpu.dot_dimension_numbers<[1], [0], [0], [1], [0, 0, 1, 1], [], []>} : vector<8x128xf32>, vector<128x128xf32>, vector<8x128xf32> -> vector<8x128xf32>
    %187 = arith.addf %184, %186 : vector<8x128xf32>
    %cst_85 = arith.constant 5.000000e-01 : f32
    %188 = vector.broadcast %cst_85 : f32 to vector<8x128xf32>
    %189 = arith.mulf %188, %187 : vector<8x128xf32>
    %190 = math.tanh %189 : vector<8x128xf32>
    %cst_86 = arith.constant 5.000000e-01 : f32
    %191 = vector.broadcast %cst_86 : f32 to vector<8x128xf32>
    %192 = arith.mulf %191, %190 : vector<8x128xf32>
    %cst_87 = arith.constant 5.000000e-01 : f32
    %193 = vector.broadcast %cst_87 : f32 to vector<8x128xf32>
    %194 = arith.addf %192, %193 : vector<8x128xf32>
    %195 = math.tanh %183 : vector<8x128xf32>
    %196 = arith.mulf %194, %195 : vector<8x128xf32>
    %c4_i32 = arith.constant 4 : i32
    %c8_i32_88 = arith.constant 8 : i32
    %197 = arith.muli %c4_i32, %c8_i32_88 : i32
    %198 = tpu.assume_multiple %197, 8 : i32
    %199 = arith.index_cast %198 : i32 to index
    %c0_89 = arith.constant 0 : index
    %200 = vector.load %arg10[%199, %c0_89] : memref<64x512xf32, #tpu.memory_space<vmem>>, vector<8x512xf32>
    %c0_90 = arith.constant 0 : index
    %c0_91 = arith.constant 0 : index
    %201 = vector.load %arg3[%c0_90, %c0_91] : memref<128x512xf32, #tpu.memory_space<vmem>>, vector<128x512xf32>
    %cst_92 = arith.constant dense<0.000000e+00> : vector<8x512xf32>
    %202 = tpu.matmul %196, %201, %cst_92 {dimension_numbers = #tpu.dot_dimension_numbers<[1], [0], [0], [1], [0, 0, 1, 1], [], []>} : vector<8x128xf32>, vector<128x512xf32>, vector<8x512xf32> -> vector<8x512xf32>
    %c0_93 = arith.constant 0 : index
    %c0_94 = arith.constant 0 : index
    %203 = vector.load %arg4[%c0_93, %c0_94] : memref<128x256xf32, #tpu.memory_space<vmem>>, vector<128x256xf32>
    %cst_95 = arith.constant dense<0.000000e+00> : vector<8x256xf32>
    %204 = tpu.matmul %183, %203, %cst_95 {dimension_numbers = #tpu.dot_dimension_numbers<[1], [0], [0], [1], [0, 0, 1, 1], [], []>} : vector<8x128xf32>, vector<128x256xf32>, vector<8x256xf32> -> vector<8x256xf32>
    %205 = arith.addf %200, %202 : vector<8x512xf32>
    %206 = vector.extract_strided_slice %205 {offsets = [0, 0], sizes = [8, 128], strides = [1, 1]} : vector<8x512xf32> to vector<8x128xf32>
    %207 = vector.extract_strided_slice %204 {offsets = [0, 0], sizes = [8, 128], strides = [1, 1]} : vector<8x256xf32> to vector<8x128xf32>
    %208 = arith.addf %206, %207 : vector<8x128xf32>
    %cst_96 = arith.constant 5.000000e-01 : f32
    %209 = vector.broadcast %cst_96 : f32 to vector<8x128xf32>
    %210 = arith.mulf %209, %208 : vector<8x128xf32>
    %211 = math.tanh %210 : vector<8x128xf32>
    %cst_97 = arith.constant 5.000000e-01 : f32
    %212 = vector.broadcast %cst_97 : f32 to vector<8x128xf32>
    %213 = arith.mulf %212, %211 : vector<8x128xf32>
    %cst_98 = arith.constant 5.000000e-01 : f32
    %214 = vector.broadcast %cst_98 : f32 to vector<8x128xf32>
    %215 = arith.addf %213, %214 : vector<8x128xf32>
    %216 = vector.extract_strided_slice %205 {offsets = [0, 128], sizes = [8, 128], strides = [1, 1]} : vector<8x512xf32> to vector<8x128xf32>
    %217 = vector.extract_strided_slice %204 {offsets = [0, 128], sizes = [8, 128], strides = [1, 1]} : vector<8x256xf32> to vector<8x128xf32>
    %218 = arith.addf %216, %217 : vector<8x128xf32>
    %cst_99 = arith.constant 5.000000e-01 : f32
    %219 = vector.broadcast %cst_99 : f32 to vector<8x128xf32>
    %220 = arith.mulf %219, %218 : vector<8x128xf32>
    %221 = math.tanh %220 : vector<8x128xf32>
    %cst_100 = arith.constant 5.000000e-01 : f32
    %222 = vector.broadcast %cst_100 : f32 to vector<8x128xf32>
    %223 = arith.mulf %222, %221 : vector<8x128xf32>
    %cst_101 = arith.constant 5.000000e-01 : f32
    %224 = vector.broadcast %cst_101 : f32 to vector<8x128xf32>
    %225 = arith.addf %223, %224 : vector<8x128xf32>
    %226 = vector.extract_strided_slice %205 {offsets = [0, 256], sizes = [8, 128], strides = [1, 1]} : vector<8x512xf32> to vector<8x128xf32>
    %227 = math.tanh %226 : vector<8x128xf32>
    %228 = arith.mulf %225, %183 : vector<8x128xf32>
    %229 = arith.mulf %215, %227 : vector<8x128xf32>
    %230 = arith.addf %228, %229 : vector<8x128xf32>
    %231 = vector.extract_strided_slice %205 {offsets = [0, 384], sizes = [8, 128], strides = [1, 1]} : vector<8x512xf32> to vector<8x128xf32>
    %c0_102 = arith.constant 0 : index
    %c0_103 = arith.constant 0 : index
    %232 = vector.load %arg5[%c0_102, %c0_103] : memref<128x128xf32, #tpu.memory_space<vmem>>, vector<128x128xf32>
    %cst_104 = arith.constant dense<0.000000e+00> : vector<8x128xf32>
    %233 = tpu.matmul %230, %232, %cst_104 {dimension_numbers = #tpu.dot_dimension_numbers<[1], [0], [0], [1], [0, 0, 1, 1], [], []>} : vector<8x128xf32>, vector<128x128xf32>, vector<8x128xf32> -> vector<8x128xf32>
    %234 = arith.addf %231, %233 : vector<8x128xf32>
    %cst_105 = arith.constant 5.000000e-01 : f32
    %235 = vector.broadcast %cst_105 : f32 to vector<8x128xf32>
    %236 = arith.mulf %235, %234 : vector<8x128xf32>
    %237 = math.tanh %236 : vector<8x128xf32>
    %cst_106 = arith.constant 5.000000e-01 : f32
    %238 = vector.broadcast %cst_106 : f32 to vector<8x128xf32>
    %239 = arith.mulf %238, %237 : vector<8x128xf32>
    %cst_107 = arith.constant 5.000000e-01 : f32
    %240 = vector.broadcast %cst_107 : f32 to vector<8x128xf32>
    %241 = arith.addf %239, %240 : vector<8x128xf32>
    %242 = math.tanh %230 : vector<8x128xf32>
    %243 = arith.mulf %241, %242 : vector<8x128xf32>
    %c5_i32 = arith.constant 5 : i32
    %c8_i32_108 = arith.constant 8 : i32
    %244 = arith.muli %c5_i32, %c8_i32_108 : i32
    %245 = tpu.assume_multiple %244, 8 : i32
    %246 = arith.index_cast %245 : i32 to index
    %c0_109 = arith.constant 0 : index
    %247 = vector.load %arg10[%246, %c0_109] : memref<64x512xf32, #tpu.memory_space<vmem>>, vector<8x512xf32>
    %c0_110 = arith.constant 0 : index
    %c0_111 = arith.constant 0 : index
    %248 = vector.load %arg3[%c0_110, %c0_111] : memref<128x512xf32, #tpu.memory_space<vmem>>, vector<128x512xf32>
    %cst_112 = arith.constant dense<0.000000e+00> : vector<8x512xf32>
    %249 = tpu.matmul %243, %248, %cst_112 {dimension_numbers = #tpu.dot_dimension_numbers<[1], [0], [0], [1], [0, 0, 1, 1], [], []>} : vector<8x128xf32>, vector<128x512xf32>, vector<8x512xf32> -> vector<8x512xf32>
    %c0_113 = arith.constant 0 : index
    %c0_114 = arith.constant 0 : index
    %250 = vector.load %arg4[%c0_113, %c0_114] : memref<128x256xf32, #tpu.memory_space<vmem>>, vector<128x256xf32>
    %cst_115 = arith.constant dense<0.000000e+00> : vector<8x256xf32>
    %251 = tpu.matmul %230, %250, %cst_115 {dimension_numbers = #tpu.dot_dimension_numbers<[1], [0], [0], [1], [0, 0, 1, 1], [], []>} : vector<8x128xf32>, vector<128x256xf32>, vector<8x256xf32> -> vector<8x256xf32>
    %252 = arith.addf %247, %249 : vector<8x512xf32>
    %253 = vector.extract_strided_slice %252 {offsets = [0, 0], sizes = [8, 128], strides = [1, 1]} : vector<8x512xf32> to vector<8x128xf32>
    %254 = vector.extract_strided_slice %251 {offsets = [0, 0], sizes = [8, 128], strides = [1, 1]} : vector<8x256xf32> to vector<8x128xf32>
    %255 = arith.addf %253, %254 : vector<8x128xf32>
    %cst_116 = arith.constant 5.000000e-01 : f32
    %256 = vector.broadcast %cst_116 : f32 to vector<8x128xf32>
    %257 = arith.mulf %256, %255 : vector<8x128xf32>
    %258 = math.tanh %257 : vector<8x128xf32>
    %cst_117 = arith.constant 5.000000e-01 : f32
    %259 = vector.broadcast %cst_117 : f32 to vector<8x128xf32>
    %260 = arith.mulf %259, %258 : vector<8x128xf32>
    %cst_118 = arith.constant 5.000000e-01 : f32
    %261 = vector.broadcast %cst_118 : f32 to vector<8x128xf32>
    %262 = arith.addf %260, %261 : vector<8x128xf32>
    %263 = vector.extract_strided_slice %252 {offsets = [0, 128], sizes = [8, 128], strides = [1, 1]} : vector<8x512xf32> to vector<8x128xf32>
    %264 = vector.extract_strided_slice %251 {offsets = [0, 128], sizes = [8, 128], strides = [1, 1]} : vector<8x256xf32> to vector<8x128xf32>
    %265 = arith.addf %263, %264 : vector<8x128xf32>
    %cst_119 = arith.constant 5.000000e-01 : f32
    %266 = vector.broadcast %cst_119 : f32 to vector<8x128xf32>
    %267 = arith.mulf %266, %265 : vector<8x128xf32>
    %268 = math.tanh %267 : vector<8x128xf32>
    %cst_120 = arith.constant 5.000000e-01 : f32
    %269 = vector.broadcast %cst_120 : f32 to vector<8x128xf32>
    %270 = arith.mulf %269, %268 : vector<8x128xf32>
    %cst_121 = arith.constant 5.000000e-01 : f32
    %271 = vector.broadcast %cst_121 : f32 to vector<8x128xf32>
    %272 = arith.addf %270, %271 : vector<8x128xf32>
    %273 = vector.extract_strided_slice %252 {offsets = [0, 256], sizes = [8, 128], strides = [1, 1]} : vector<8x512xf32> to vector<8x128xf32>
    %274 = math.tanh %273 : vector<8x128xf32>
    %275 = arith.mulf %272, %230 : vector<8x128xf32>
    %276 = arith.mulf %262, %274 : vector<8x128xf32>
    %277 = arith.addf %275, %276 : vector<8x128xf32>
    %278 = vector.extract_strided_slice %252 {offsets = [0, 384], sizes = [8, 128], strides = [1, 1]} : vector<8x512xf32> to vector<8x128xf32>
    %c0_122 = arith.constant 0 : index
    %c0_123 = arith.constant 0 : index
    %279 = vector.load %arg5[%c0_122, %c0_123] : memref<128x128xf32, #tpu.memory_space<vmem>>, vector<128x128xf32>
    %cst_124 = arith.constant dense<0.000000e+00> : vector<8x128xf32>
    %280 = tpu.matmul %277, %279, %cst_124 {dimension_numbers = #tpu.dot_dimension_numbers<[1], [0], [0], [1], [0, 0, 1, 1], [], []>} : vector<8x128xf32>, vector<128x128xf32>, vector<8x128xf32> -> vector<8x128xf32>
    %281 = arith.addf %278, %280 : vector<8x128xf32>
    %cst_125 = arith.constant 5.000000e-01 : f32
    %282 = vector.broadcast %cst_125 : f32 to vector<8x128xf32>
    %283 = arith.mulf %282, %281 : vector<8x128xf32>
    %284 = math.tanh %283 : vector<8x128xf32>
    %cst_126 = arith.constant 5.000000e-01 : f32
    %285 = vector.broadcast %cst_126 : f32 to vector<8x128xf32>
    %286 = arith.mulf %285, %284 : vector<8x128xf32>
    %cst_127 = arith.constant 5.000000e-01 : f32
    %287 = vector.broadcast %cst_127 : f32 to vector<8x128xf32>
    %288 = arith.addf %286, %287 : vector<8x128xf32>
    %289 = math.tanh %277 : vector<8x128xf32>
    %290 = arith.mulf %288, %289 : vector<8x128xf32>
    %c6_i32 = arith.constant 6 : i32
    %c8_i32_128 = arith.constant 8 : i32
    %291 = arith.muli %c6_i32, %c8_i32_128 : i32
    %292 = tpu.assume_multiple %291, 8 : i32
    %293 = arith.index_cast %292 : i32 to index
    %c0_129 = arith.constant 0 : index
    %294 = vector.load %arg10[%293, %c0_129] : memref<64x512xf32, #tpu.memory_space<vmem>>, vector<8x512xf32>
    %c0_130 = arith.constant 0 : index
    %c0_131 = arith.constant 0 : index
    %295 = vector.load %arg3[%c0_130, %c0_131] : memref<128x512xf32, #tpu.memory_space<vmem>>, vector<128x512xf32>
    %cst_132 = arith.constant dense<0.000000e+00> : vector<8x512xf32>
    %296 = tpu.matmul %290, %295, %cst_132 {dimension_numbers = #tpu.dot_dimension_numbers<[1], [0], [0], [1], [0, 0, 1, 1], [], []>} : vector<8x128xf32>, vector<128x512xf32>, vector<8x512xf32> -> vector<8x512xf32>
    %c0_133 = arith.constant 0 : index
    %c0_134 = arith.constant 0 : index
    %297 = vector.load %arg4[%c0_133, %c0_134] : memref<128x256xf32, #tpu.memory_space<vmem>>, vector<128x256xf32>
    %cst_135 = arith.constant dense<0.000000e+00> : vector<8x256xf32>
    %298 = tpu.matmul %277, %297, %cst_135 {dimension_numbers = #tpu.dot_dimension_numbers<[1], [0], [0], [1], [0, 0, 1, 1], [], []>} : vector<8x128xf32>, vector<128x256xf32>, vector<8x256xf32> -> vector<8x256xf32>
    %299 = arith.addf %294, %296 : vector<8x512xf32>
    %300 = vector.extract_strided_slice %299 {offsets = [0, 0], sizes = [8, 128], strides = [1, 1]} : vector<8x512xf32> to vector<8x128xf32>
    %301 = vector.extract_strided_slice %298 {offsets = [0, 0], sizes = [8, 128], strides = [1, 1]} : vector<8x256xf32> to vector<8x128xf32>
    %302 = arith.addf %300, %301 : vector<8x128xf32>
    %cst_136 = arith.constant 5.000000e-01 : f32
    %303 = vector.broadcast %cst_136 : f32 to vector<8x128xf32>
    %304 = arith.mulf %303, %302 : vector<8x128xf32>
    %305 = math.tanh %304 : vector<8x128xf32>
    %cst_137 = arith.constant 5.000000e-01 : f32
    %306 = vector.broadcast %cst_137 : f32 to vector<8x128xf32>
    %307 = arith.mulf %306, %305 : vector<8x128xf32>
    %cst_138 = arith.constant 5.000000e-01 : f32
    %308 = vector.broadcast %cst_138 : f32 to vector<8x128xf32>
    %309 = arith.addf %307, %308 : vector<8x128xf32>
    %310 = vector.extract_strided_slice %299 {offsets = [0, 128], sizes = [8, 128], strides = [1, 1]} : vector<8x512xf32> to vector<8x128xf32>
    %311 = vector.extract_strided_slice %298 {offsets = [0, 128], sizes = [8, 128], strides = [1, 1]} : vector<8x256xf32> to vector<8x128xf32>
    %312 = arith.addf %310, %311 : vector<8x128xf32>
    %cst_139 = arith.constant 5.000000e-01 : f32
    %313 = vector.broadcast %cst_139 : f32 to vector<8x128xf32>
    %314 = arith.mulf %313, %312 : vector<8x128xf32>
    %315 = math.tanh %314 : vector<8x128xf32>
    %cst_140 = arith.constant 5.000000e-01 : f32
    %316 = vector.broadcast %cst_140 : f32 to vector<8x128xf32>
    %317 = arith.mulf %316, %315 : vector<8x128xf32>
    %cst_141 = arith.constant 5.000000e-01 : f32
    %318 = vector.broadcast %cst_141 : f32 to vector<8x128xf32>
    %319 = arith.addf %317, %318 : vector<8x128xf32>
    %320 = vector.extract_strided_slice %299 {offsets = [0, 256], sizes = [8, 128], strides = [1, 1]} : vector<8x512xf32> to vector<8x128xf32>
    %321 = math.tanh %320 : vector<8x128xf32>
    %322 = arith.mulf %319, %277 : vector<8x128xf32>
    %323 = arith.mulf %309, %321 : vector<8x128xf32>
    %324 = arith.addf %322, %323 : vector<8x128xf32>
    %325 = vector.extract_strided_slice %299 {offsets = [0, 384], sizes = [8, 128], strides = [1, 1]} : vector<8x512xf32> to vector<8x128xf32>
    %c0_142 = arith.constant 0 : index
    %c0_143 = arith.constant 0 : index
    %326 = vector.load %arg5[%c0_142, %c0_143] : memref<128x128xf32, #tpu.memory_space<vmem>>, vector<128x128xf32>
    %cst_144 = arith.constant dense<0.000000e+00> : vector<8x128xf32>
    %327 = tpu.matmul %324, %326, %cst_144 {dimension_numbers = #tpu.dot_dimension_numbers<[1], [0], [0], [1], [0, 0, 1, 1], [], []>} : vector<8x128xf32>, vector<128x128xf32>, vector<8x128xf32> -> vector<8x128xf32>
    %328 = arith.addf %325, %327 : vector<8x128xf32>
    %cst_145 = arith.constant 5.000000e-01 : f32
    %329 = vector.broadcast %cst_145 : f32 to vector<8x128xf32>
    %330 = arith.mulf %329, %328 : vector<8x128xf32>
    %331 = math.tanh %330 : vector<8x128xf32>
    %cst_146 = arith.constant 5.000000e-01 : f32
    %332 = vector.broadcast %cst_146 : f32 to vector<8x128xf32>
    %333 = arith.mulf %332, %331 : vector<8x128xf32>
    %cst_147 = arith.constant 5.000000e-01 : f32
    %334 = vector.broadcast %cst_147 : f32 to vector<8x128xf32>
    %335 = arith.addf %333, %334 : vector<8x128xf32>
    %336 = math.tanh %324 : vector<8x128xf32>
    %337 = arith.mulf %335, %336 : vector<8x128xf32>
    %c7_i32 = arith.constant 7 : i32
    %c8_i32_148 = arith.constant 8 : i32
    %338 = arith.muli %c7_i32, %c8_i32_148 : i32
    %339 = tpu.assume_multiple %338, 8 : i32
    %340 = arith.index_cast %339 : i32 to index
    %c0_149 = arith.constant 0 : index
    %341 = vector.load %arg10[%340, %c0_149] : memref<64x512xf32, #tpu.memory_space<vmem>>, vector<8x512xf32>
    %c0_150 = arith.constant 0 : index
    %c0_151 = arith.constant 0 : index
    %342 = vector.load %arg3[%c0_150, %c0_151] : memref<128x512xf32, #tpu.memory_space<vmem>>, vector<128x512xf32>
    %cst_152 = arith.constant dense<0.000000e+00> : vector<8x512xf32>
    %343 = tpu.matmul %337, %342, %cst_152 {dimension_numbers = #tpu.dot_dimension_numbers<[1], [0], [0], [1], [0, 0, 1, 1], [], []>} : vector<8x128xf32>, vector<128x512xf32>, vector<8x512xf32> -> vector<8x512xf32>
    %c0_153 = arith.constant 0 : index
    %c0_154 = arith.constant 0 : index
    %344 = vector.load %arg4[%c0_153, %c0_154] : memref<128x256xf32, #tpu.memory_space<vmem>>, vector<128x256xf32>
    %cst_155 = arith.constant dense<0.000000e+00> : vector<8x256xf32>
    %345 = tpu.matmul %324, %344, %cst_155 {dimension_numbers = #tpu.dot_dimension_numbers<[1], [0], [0], [1], [0, 0, 1, 1], [], []>} : vector<8x128xf32>, vector<128x256xf32>, vector<8x256xf32> -> vector<8x256xf32>
    %346 = arith.addf %341, %343 : vector<8x512xf32>
    %347 = vector.extract_strided_slice %346 {offsets = [0, 0], sizes = [8, 128], strides = [1, 1]} : vector<8x512xf32> to vector<8x128xf32>
    %348 = vector.extract_strided_slice %345 {offsets = [0, 0], sizes = [8, 128], strides = [1, 1]} : vector<8x256xf32> to vector<8x128xf32>
    %349 = arith.addf %347, %348 : vector<8x128xf32>
    %cst_156 = arith.constant 5.000000e-01 : f32
    %350 = vector.broadcast %cst_156 : f32 to vector<8x128xf32>
    %351 = arith.mulf %350, %349 : vector<8x128xf32>
    %352 = math.tanh %351 : vector<8x128xf32>
    %cst_157 = arith.constant 5.000000e-01 : f32
    %353 = vector.broadcast %cst_157 : f32 to vector<8x128xf32>
    %354 = arith.mulf %353, %352 : vector<8x128xf32>
    %cst_158 = arith.constant 5.000000e-01 : f32
    %355 = vector.broadcast %cst_158 : f32 to vector<8x128xf32>
    %356 = arith.addf %354, %355 : vector<8x128xf32>
    %357 = vector.extract_strided_slice %346 {offsets = [0, 128], sizes = [8, 128], strides = [1, 1]} : vector<8x512xf32> to vector<8x128xf32>
    %358 = vector.extract_strided_slice %345 {offsets = [0, 128], sizes = [8, 128], strides = [1, 1]} : vector<8x256xf32> to vector<8x128xf32>
    %359 = arith.addf %357, %358 : vector<8x128xf32>
    %cst_159 = arith.constant 5.000000e-01 : f32
    %360 = vector.broadcast %cst_159 : f32 to vector<8x128xf32>
    %361 = arith.mulf %360, %359 : vector<8x128xf32>
    %362 = math.tanh %361 : vector<8x128xf32>
    %cst_160 = arith.constant 5.000000e-01 : f32
    %363 = vector.broadcast %cst_160 : f32 to vector<8x128xf32>
    %364 = arith.mulf %363, %362 : vector<8x128xf32>
    %cst_161 = arith.constant 5.000000e-01 : f32
    %365 = vector.broadcast %cst_161 : f32 to vector<8x128xf32>
    %366 = arith.addf %364, %365 : vector<8x128xf32>
    %367 = vector.extract_strided_slice %346 {offsets = [0, 256], sizes = [8, 128], strides = [1, 1]} : vector<8x512xf32> to vector<8x128xf32>
    %368 = math.tanh %367 : vector<8x128xf32>
    %369 = arith.mulf %366, %324 : vector<8x128xf32>
    %370 = arith.mulf %356, %368 : vector<8x128xf32>
    %371 = arith.addf %369, %370 : vector<8x128xf32>
    %372 = vector.extract_strided_slice %346 {offsets = [0, 384], sizes = [8, 128], strides = [1, 1]} : vector<8x512xf32> to vector<8x128xf32>
    %c0_162 = arith.constant 0 : index
    %c0_163 = arith.constant 0 : index
    %373 = vector.load %arg5[%c0_162, %c0_163] : memref<128x128xf32, #tpu.memory_space<vmem>>, vector<128x128xf32>
    %cst_164 = arith.constant dense<0.000000e+00> : vector<8x128xf32>
    %374 = tpu.matmul %371, %373, %cst_164 {dimension_numbers = #tpu.dot_dimension_numbers<[1], [0], [0], [1], [0, 0, 1, 1], [], []>} : vector<8x128xf32>, vector<128x128xf32>, vector<8x128xf32> -> vector<8x128xf32>
    %375 = arith.addf %372, %374 : vector<8x128xf32>
    %cst_165 = arith.constant 5.000000e-01 : f32
    %376 = vector.broadcast %cst_165 : f32 to vector<8x128xf32>
    %377 = arith.mulf %376, %375 : vector<8x128xf32>
    %378 = math.tanh %377 : vector<8x128xf32>
    %cst_166 = arith.constant 5.000000e-01 : f32
    %379 = vector.broadcast %cst_166 : f32 to vector<8x128xf32>
    %380 = arith.mulf %379, %378 : vector<8x128xf32>
    %cst_167 = arith.constant 5.000000e-01 : f32
    %381 = vector.broadcast %cst_167 : f32 to vector<8x128xf32>
    %382 = arith.addf %380, %381 : vector<8x128xf32>
    %383 = math.tanh %371 : vector<8x128xf32>
    %384 = arith.mulf %382, %383 : vector<8x128xf32>
    %c8_i32_168 = arith.constant 8 : i32
    %c0_169 = arith.constant 0 : index
    %c0_170 = arith.constant 0 : index
    %385 = vector.load %arg7[%c0_169, %c0_170] : memref<128x128xf32, #tpu.memory_space<vmem>>, vector<128x128xf32>
    %cst_171 = arith.constant dense<0.000000e+00> : vector<8x128xf32>
    %386 = tpu.matmul %384, %385, %cst_171 {dimension_numbers = #tpu.dot_dimension_numbers<[1], [0], [0], [1], [0, 0, 1, 1], [], []>} : vector<8x128xf32>, vector<128x128xf32>, vector<8x128xf32> -> vector<8x128xf32>
    %c0_172 = arith.constant 0 : index
    %c0_173 = arith.constant 0 : index
    %387 = vector.load %arg8[%c0_172, %c0_173] : memref<1x128xf32, #tpu.memory_space<vmem>>, vector<1x128xf32>
    %388 = vector.broadcast %387 : vector<1x128xf32> to vector<8x128xf32>
    %389 = arith.addf %386, %388 : vector<8x128xf32>
    %c0_174 = arith.constant 0 : index
    %c0_175 = arith.constant 0 : index
    %390 = vector.load %arg9[%c0_174, %c0_175] : memref<8x128xf32, #tpu.memory_space<vmem>>, vector<8x128xf32>
    tpu.vector_store %arg9[%c0_174, %c0_175], %389 {strides = array<i32>} : memref<8x128xf32, #tpu.memory_space<vmem>>, vector<8x128xf32>,
    return
  }
  func.func @transform_0(%arg0: i32) -> (i32, i32) {
    %c0_i32 = arith.constant 0 : i32
    %c0_i32_0 = arith.constant 0 : i32
    return %arg0, %c0_i32 : i32, i32
  }
  func.func @transform_1(%arg0: i32) -> (i32, i32) {
    %c0_i32 = arith.constant 0 : i32
    %c0_i32_0 = arith.constant 0 : i32
    %c0_i32_1 = arith.constant 0 : i32
    return %c0_i32, %c0_i32_0 : i32, i32
  }
  func.func @transform_2(%arg0: i32) -> (i32, i32) {
    %c0_i32 = arith.constant 0 : i32
    %c0_i32_0 = arith.constant 0 : i32
    %c0_i32_1 = arith.constant 0 : i32
    return %c0_i32, %c0_i32_0 : i32, i32
  }
  func.func @transform_3(%arg0: i32) -> (i32, i32) {
    %c0_i32 = arith.constant 0 : i32
    %c0_i32_0 = arith.constant 0 : i32
    %c0_i32_1 = arith.constant 0 : i32
    return %c0_i32, %c0_i32_0 : i32, i32
  }
  func.func @transform_4(%arg0: i32) -> (i32, i32) {
    %c0_i32 = arith.constant 0 : i32
    %c0_i32_0 = arith.constant 0 : i32
    %c0_i32_1 = arith.constant 0 : i32
    return %c0_i32, %c0_i32_0 : i32, i32
  }
  func.func @transform_5(%arg0: i32) -> (i32, i32) {
    %c0_i32 = arith.constant 0 : i32
    %c0_i32_0 = arith.constant 0 : i32
    %c0_i32_1 = arith.constant 0 : i32
    return %c0_i32, %c0_i32_0 : i32, i32
  }
  func.func @transform_6(%arg0: i32) -> (i32, i32) {
    %c0_i32 = arith.constant 0 : i32
    %c0_i32_0 = arith.constant 0 : i32
    %c0_i32_1 = arith.constant 0 : i32
    return %c0_i32, %c0_i32_0 : i32, i32
  }
  func.func @transform_7(%arg0: i32) -> (i32, i32) {
    %c0_i32 = arith.constant 0 : i32
    %c0_i32_0 = arith.constant 0 : i32
    %c0_i32_1 = arith.constant 0 : i32
    return %c0_i32, %c0_i32_0 : i32, i32
  }
  func.func @transform_8(%arg0: i32) -> (i32, i32) {
    %c0_i32 = arith.constant 0 : i32
    %c0_i32_0 = arith.constant 0 : i32
    return %arg0, %c0_i32 : i32, i32
  }
}

module attributes {stable_mosaic.version = 11 : i64} {
  func.func @kernel(%arg0: i32, %arg1: memref<64x16xf32, #tpu.memory_space<vmem>>, %arg2: memref<16x512xf32, #tpu.memory_space<vmem>>, %arg3: memref<128x512xf32, #tpu.memory_space<vmem>>, %arg4: memref<128x256xf32, #tpu.memory_space<vmem>>, %arg5: memref<128x128xf32, #tpu.memory_space<vmem>>, %arg6: memref<1x512xf32, #tpu.memory_space<vmem>>, %arg7: memref<128x128xf32, #tpu.memory_space<vmem>>, %arg8: memref<1x128xf32, #tpu.memory_space<vmem>>, %arg9: memref<8x128xf32, #tpu.memory_space<vmem>>, %arg10: memref<64x512xf32, #tpu.memory_space<vmem>>) attributes {dimension_semantics = [#tpu.dimension_semantics<parallel>], iteration_bounds = array<i64: 1>, scalar_prefetch = 0 : i64, scratch_operands = 1 : i64, tpu.core_type = #tpu.core_type<tc>, window_params = [{transform_indices = @transform_0, window_bounds = array<i64: 64, 16>}, {pipeline_mode = #tpu.pipeline_mode<synchronous>, transform_indices = @transform_1, window_bounds = array<i64: 16, 512>}, {pipeline_mode = #tpu.pipeline_mode<synchronous>, transform_indices = @transform_2, window_bounds = array<i64: 128, 512>}, {pipeline_mode = #tpu.pipeline_mode<synchronous>, transform_indices = @transform_3, window_bounds = array<i64: 128, 256>}, {pipeline_mode = #tpu.pipeline_mode<synchronous>, transform_indices = @transform_4, window_bounds = array<i64: 128, 128>}, {pipeline_mode = #tpu.pipeline_mode<synchronous>, transform_indices = @transform_5, window_bounds = array<i64: 1, 512>}, {pipeline_mode = #tpu.pipeline_mode<synchronous>, transform_indices = @transform_6, window_bounds = array<i64: 128, 128>}, {pipeline_mode = #tpu.pipeline_mode<synchronous>, transform_indices = @transform_7, window_bounds = array<i64: 1, 128>}, {transform_indices = @transform_8, window_bounds = array<i64: 8, 128>}]} {
    %c0 = arith.constant 0 : index
    %c0_0 = arith.constant 0 : index
    %0 = vector.load %arg6[%c0, %c0_0] : memref<1x512xf32, #tpu.memory_space<vmem>>, vector<1x512xf32>
    %cst = arith.constant 0.000000e+00 : f32
    %1 = vector.broadcast %cst : f32 to vector<8x128xf32>
    %cst_1 = arith.constant 0.000000e+00 : f32
    %2 = vector.broadcast %cst_1 : f32 to vector<8x128xf32>
    %c0_2 = arith.constant 0 : index
    %c0_3 = arith.constant 0 : index
    %3 = vector.load %arg1[%c0_2, %c0_3] : memref<64x16xf32, #tpu.memory_space<vmem>>, vector<64x16xf32>
    %c0_4 = arith.constant 0 : index
    %c0_5 = arith.constant 0 : index
    %4 = vector.load %arg2[%c0_4, %c0_5] : memref<16x512xf32, #tpu.memory_space<vmem>>, vector<16x512xf32>
    %cst_6 = arith.constant dense<0.000000e+00> : vector<64x512xf32>
    %5 = tpu.matmul %3, %4, %cst_6 {dimension_numbers = #tpu.dot_dimension_numbers<[1], [0], [0], [1], [0, 0, 1, 1], [], []>} : vector<64x16xf32>, vector<16x512xf32>, vector<64x512xf32> -> vector<64x512xf32>
    %6 = vector.broadcast %0 : vector<1x512xf32> to vector<64x512xf32>
    %7 = arith.addf %5, %6 : vector<64x512xf32>
    %c0_7 = arith.constant 0 : index
    %c0_8 = arith.constant 0 : index
    %8 = vector.load %arg10[%c0_7, %c0_8] : memref<64x512xf32, #tpu.memory_space<vmem>>, vector<64x512xf32>
    tpu.vector_store %arg10[%c0_7, %c0_8], %7 {strides = array<i32>} : memref<64x512xf32, #tpu.memory_space<vmem>>, vector<64x512xf32>,
    %c0_i32 = arith.constant 0 : i32
    %c8_i32 = arith.constant 8 : i32
    %9 = arith.muli %c0_i32, %c8_i32 : i32
    %10 = tpu.assume_multiple %9, 8 : i32
    %11 = arith.index_cast %10 : i32 to index
    %c0_9 = arith.constant 0 : index
    %12 = vector.load %arg10[%11, %c0_9] : memref<64x512xf32, #tpu.memory_space<vmem>>, vector<8x512xf32>
    %c0_10 = arith.constant 0 : index
    %c0_11 = arith.constant 0 : index
    %13 = vector.load %arg3[%c0_10, %c0_11] : memref<128x512xf32, #tpu.memory_space<vmem>>, vector<128x512xf32>
    %cst_12 = arith.constant dense<0.000000e+00> : vector<8x512xf32>
    %14 = tpu.matmul %1, %13, %cst_12 {dimension_numbers = #tpu.dot_dimension_numbers<[1], [0], [0], [1], [0, 0, 1, 1], [], []>} : vector<8x128xf32>, vector<128x512xf32>, vector<8x512xf32> -> vector<8x512xf32>
    %c0_13 = arith.constant 0 : index
    %c0_14 = arith.constant 0 : index
    %15 = vector.load %arg4[%c0_13, %c0_14] : memref<128x256xf32, #tpu.memory_space<vmem>>, vector<128x256xf32>
    %cst_15 = arith.constant dense<0.000000e+00> : vector<8x256xf32>
    %16 = tpu.matmul %2, %15, %cst_15 {dimension_numbers = #tpu.dot_dimension_numbers<[1], [0], [0], [1], [0, 0, 1, 1], [], []>} : vector<8x128xf32>, vector<128x256xf32>, vector<8x256xf32> -> vector<8x256xf32>
    %17 = arith.addf %12, %14 : vector<8x512xf32>
    %18 = vector.extract_strided_slice %17 {offsets = [0, 0], sizes = [8, 128], strides = [1, 1]} : vector<8x512xf32> to vector<8x128xf32>
    %19 = vector.extract_strided_slice %16 {offsets = [0, 0], sizes = [8, 128], strides = [1, 1]} : vector<8x256xf32> to vector<8x128xf32>
    %20 = arith.addf %18, %19 : vector<8x128xf32>
    %cst_16 = arith.constant 5.000000e-01 : f32
    %21 = vector.broadcast %cst_16 : f32 to vector<8x128xf32>
    %22 = arith.mulf %21, %20 : vector<8x128xf32>
    %23 = math.tanh %22 : vector<8x128xf32>
    %cst_17 = arith.constant 5.000000e-01 : f32
    %24 = vector.broadcast %cst_17 : f32 to vector<8x128xf32>
    %25 = arith.mulf %24, %23 : vector<8x128xf32>
    %cst_18 = arith.constant 5.000000e-01 : f32
    %26 = vector.broadcast %cst_18 : f32 to vector<8x128xf32>
    %27 = arith.addf %25, %26 : vector<8x128xf32>
    %28 = vector.extract_strided_slice %17 {offsets = [0, 128], sizes = [8, 128], strides = [1, 1]} : vector<8x512xf32> to vector<8x128xf32>
    %29 = vector.extract_strided_slice %16 {offsets = [0, 128], sizes = [8, 128], strides = [1, 1]} : vector<8x256xf32> to vector<8x128xf32>
    %30 = arith.addf %28, %29 : vector<8x128xf32>
    %cst_19 = arith.constant 5.000000e-01 : f32
    %31 = vector.broadcast %cst_19 : f32 to vector<8x128xf32>
    %32 = arith.mulf %31, %30 : vector<8x128xf32>
    %33 = math.tanh %32 : vector<8x128xf32>
    %cst_20 = arith.constant 5.000000e-01 : f32
    %34 = vector.broadcast %cst_20 : f32 to vector<8x128xf32>
    %35 = arith.mulf %34, %33 : vector<8x128xf32>
    %cst_21 = arith.constant 5.000000e-01 : f32
    %36 = vector.broadcast %cst_21 : f32 to vector<8x128xf32>
    %37 = arith.addf %35, %36 : vector<8x128xf32>
    %38 = vector.extract_strided_slice %17 {offsets = [0, 256], sizes = [8, 128], strides = [1, 1]} : vector<8x512xf32> to vector<8x128xf32>
    %39 = math.tanh %38 : vector<8x128xf32>
    %40 = arith.mulf %37, %2 : vector<8x128xf32>
    %41 = arith.mulf %27, %39 : vector<8x128xf32>
    %42 = arith.addf %40, %41 : vector<8x128xf32>
    %43 = vector.extract_strided_slice %17 {offsets = [0, 384], sizes = [8, 128], strides = [1, 1]} : vector<8x512xf32> to vector<8x128xf32>
    %c0_22 = arith.constant 0 : index
    %c0_23 = arith.constant 0 : index
    %44 = vector.load %arg5[%c0_22, %c0_23] : memref<128x128xf32, #tpu.memory_space<vmem>>, vector<128x128xf32>
    %cst_24 = arith.constant dense<0.000000e+00> : vector<8x128xf32>
    %45 = tpu.matmul %42, %44, %cst_24 {dimension_numbers = #tpu.dot_dimension_numbers<[1], [0], [0], [1], [0, 0, 1, 1], [], []>} : vector<8x128xf32>, vector<128x128xf32>, vector<8x128xf32> -> vector<8x128xf32>
    %46 = arith.addf %43, %45 : vector<8x128xf32>
    %cst_25 = arith.constant 5.000000e-01 : f32
    %47 = vector.broadcast %cst_25 : f32 to vector<8x128xf32>
    %48 = arith.mulf %47, %46 : vector<8x128xf32>
    %49 = math.tanh %48 : vector<8x128xf32>
    %cst_26 = arith.constant 5.000000e-01 : f32
    %50 = vector.broadcast %cst_26 : f32 to vector<8x128xf32>
    %51 = arith.mulf %50, %49 : vector<8x128xf32>
    %cst_27 = arith.constant 5.000000e-01 : f32
    %52 = vector.broadcast %cst_27 : f32 to vector<8x128xf32>
    %53 = arith.addf %51, %52 : vector<8x128xf32>
    %54 = math.tanh %42 : vector<8x128xf32>
    %55 = arith.mulf %53, %54 : vector<8x128xf32>
    %c1_i32 = arith.constant 1 : i32
    %c8_i32_28 = arith.constant 8 : i32
    %56 = arith.muli %c1_i32, %c8_i32_28 : i32
    %57 = tpu.assume_multiple %56, 8 : i32
    %58 = arith.index_cast %57 : i32 to index
    %c0_29 = arith.constant 0 : index
    %59 = vector.load %arg10[%58, %c0_29] : memref<64x512xf32, #tpu.memory_space<vmem>>, vector<8x512xf32>
    %c0_30 = arith.constant 0 : index
    %c0_31 = arith.constant 0 : index
    %60 = vector.load %arg3[%c0_30, %c0_31] : memref<128x512xf32, #tpu.memory_space<vmem>>, vector<128x512xf32>
    %cst_32 = arith.constant dense<0.000000e+00> : vector<8x512xf32>
    %61 = tpu.matmul %55, %60, %cst_32 {dimension_numbers = #tpu.dot_dimension_numbers<[1], [0], [0], [1], [0, 0, 1, 1], [], []>} : vector<8x128xf32>, vector<128x512xf32>, vector<8x512xf32> -> vector<8x512xf32>
    %c0_33 = arith.constant 0 : index
    %c0_34 = arith.constant 0 : index
    %62 = vector.load %arg4[%c0_33, %c0_34] : memref<128x256xf32, #tpu.memory_space<vmem>>, vector<128x256xf32>
    %cst_35 = arith.constant dense<0.000000e+00> : vector<8x256xf32>
    %63 = tpu.matmul %42, %62, %cst_35 {dimension_numbers = #tpu.dot_dimension_numbers<[1], [0], [0], [1], [0, 0, 1, 1], [], []>} : vector<8x128xf32>, vector<128x256xf32>, vector<8x256xf32> -> vector<8x256xf32>
    %64 = arith.addf %59, %61 : vector<8x512xf32>
    %65 = vector.extract_strided_slice %64 {offsets = [0, 0], sizes = [8, 128], strides = [1, 1]} : vector<8x512xf32> to vector<8x128xf32>
    %66 = vector.extract_strided_slice %63 {offsets = [0, 0], sizes = [8, 128], strides = [1, 1]} : vector<8x256xf32> to vector<8x128xf32>
    %67 = arith.addf %65, %66 : vector<8x128xf32>
    %cst_36 = arith.constant 5.000000e-01 : f32
    %68 = vector.broadcast %cst_36 : f32 to vector<8x128xf32>
    %69 = arith.mulf %68, %67 : vector<8x128xf32>
    %70 = math.tanh %69 : vector<8x128xf32>
    %cst_37 = arith.constant 5.000000e-01 : f32
    %71 = vector.broadcast %cst_37 : f32 to vector<8x128xf32>
    %72 = arith.mulf %71, %70 : vector<8x128xf32>
    %cst_38 = arith.constant 5.000000e-01 : f32
    %73 = vector.broadcast %cst_38 : f32 to vector<8x128xf32>
    %74 = arith.addf %72, %73 : vector<8x128xf32>
    %75 = vector.extract_strided_slice %64 {offsets = [0, 128], sizes = [8, 128], strides = [1, 1]} : vector<8x512xf32> to vector<8x128xf32>
    %76 = vector.extract_strided_slice %63 {offsets = [0, 128], sizes = [8, 128], strides = [1, 1]} : vector<8x256xf32> to vector<8x128xf32>
    %77 = arith.addf %75, %76 : vector<8x128xf32>
    %cst_39 = arith.constant 5.000000e-01 : f32
    %78 = vector.broadcast %cst_39 : f32 to vector<8x128xf32>
    %79 = arith.mulf %78, %77 : vector<8x128xf32>
    %80 = math.tanh %79 : vector<8x128xf32>
    %cst_40 = arith.constant 5.000000e-01 : f32
    %81 = vector.broadcast %cst_40 : f32 to vector<8x128xf32>
    %82 = arith.mulf %81, %80 : vector<8x128xf32>
    %cst_41 = arith.constant 5.000000e-01 : f32
    %83 = vector.broadcast %cst_41 : f32 to vector<8x128xf32>
    %84 = arith.addf %82, %83 : vector<8x128xf32>
    %85 = vector.extract_strided_slice %64 {offsets = [0, 256], sizes = [8, 128], strides = [1, 1]} : vector<8x512xf32> to vector<8x128xf32>
    %86 = math.tanh %85 : vector<8x128xf32>
    %87 = arith.mulf %84, %42 : vector<8x128xf32>
    %88 = arith.mulf %74, %86 : vector<8x128xf32>
    %89 = arith.addf %87, %88 : vector<8x128xf32>
    %90 = vector.extract_strided_slice %64 {offsets = [0, 384], sizes = [8, 128], strides = [1, 1]} : vector<8x512xf32> to vector<8x128xf32>
    %c0_42 = arith.constant 0 : index
    %c0_43 = arith.constant 0 : index
    %91 = vector.load %arg5[%c0_42, %c0_43] : memref<128x128xf32, #tpu.memory_space<vmem>>, vector<128x128xf32>
    %cst_44 = arith.constant dense<0.000000e+00> : vector<8x128xf32>
    %92 = tpu.matmul %89, %91, %cst_44 {dimension_numbers = #tpu.dot_dimension_numbers<[1], [0], [0], [1], [0, 0, 1, 1], [], []>} : vector<8x128xf32>, vector<128x128xf32>, vector<8x128xf32> -> vector<8x128xf32>
    %93 = arith.addf %90, %92 : vector<8x128xf32>
    %cst_45 = arith.constant 5.000000e-01 : f32
    %94 = vector.broadcast %cst_45 : f32 to vector<8x128xf32>
    %95 = arith.mulf %94, %93 : vector<8x128xf32>
    %96 = math.tanh %95 : vector<8x128xf32>
    %cst_46 = arith.constant 5.000000e-01 : f32
    %97 = vector.broadcast %cst_46 : f32 to vector<8x128xf32>
    %98 = arith.mulf %97, %96 : vector<8x128xf32>
    %cst_47 = arith.constant 5.000000e-01 : f32
    %99 = vector.broadcast %cst_47 : f32 to vector<8x128xf32>
    %100 = arith.addf %98, %99 : vector<8x128xf32>
    %101 = math.tanh %89 : vector<8x128xf32>
    %102 = arith.mulf %100, %101 : vector<8x128xf32>
    %c2_i32 = arith.constant 2 : i32
    %c8_i32_48 = arith.constant 8 : i32
    %103 = arith.muli %c2_i32, %c8_i32_48 : i32
    %104 = tpu.assume_multiple %103, 8 : i32
    %105 = arith.index_cast %104 : i32 to index
    %c0_49 = arith.constant 0 : index
    %106 = vector.load %arg10[%105, %c0_49] : memref<64x512xf32, #tpu.memory_space<vmem>>, vector<8x512xf32>
    %c0_50 = arith.constant 0 : index
    %c0_51 = arith.constant 0 : index
    %107 = vector.load %arg3[%c0_50, %c0_51] : memref<128x512xf32, #tpu.memory_space<vmem>>, vector<128x512xf32>
    %cst_52 = arith.constant dense<0.000000e+00> : vector<8x512xf32>
    %108 = tpu.matmul %102, %107, %cst_52 {dimension_numbers = #tpu.dot_dimension_numbers<[1], [0], [0], [1], [0, 0, 1, 1], [], []>} : vector<8x128xf32>, vector<128x512xf32>, vector<8x512xf32> -> vector<8x512xf32>
    %c0_53 = arith.constant 0 : index
    %c0_54 = arith.constant 0 : index
    %109 = vector.load %arg4[%c0_53, %c0_54] : memref<128x256xf32, #tpu.memory_space<vmem>>, vector<128x256xf32>
    %cst_55 = arith.constant dense<0.000000e+00> : vector<8x256xf32>
    %110 = tpu.matmul %89, %109, %cst_55 {dimension_numbers = #tpu.dot_dimension_numbers<[1], [0], [0], [1], [0, 0, 1, 1], [], []>} : vector<8x128xf32>, vector<128x256xf32>, vector<8x256xf32> -> vector<8x256xf32>
    %111 = arith.addf %106, %108 : vector<8x512xf32>
    %112 = vector.extract_strided_slice %111 {offsets = [0, 0], sizes = [8, 128], strides = [1, 1]} : vector<8x512xf32> to vector<8x128xf32>
    %113 = vector.extract_strided_slice %110 {offsets = [0, 0], sizes = [8, 128], strides = [1, 1]} : vector<8x256xf32> to vector<8x128xf32>
    %114 = arith.addf %112, %113 : vector<8x128xf32>
    %cst_56 = arith.constant 5.000000e-01 : f32
    %115 = vector.broadcast %cst_56 : f32 to vector<8x128xf32>
    %116 = arith.mulf %115, %114 : vector<8x128xf32>
    %117 = math.tanh %116 : vector<8x128xf32>
    %cst_57 = arith.constant 5.000000e-01 : f32
    %118 = vector.broadcast %cst_57 : f32 to vector<8x128xf32>
    %119 = arith.mulf %118, %117 : vector<8x128xf32>
    %cst_58 = arith.constant 5.000000e-01 : f32
    %120 = vector.broadcast %cst_58 : f32 to vector<8x128xf32>
    %121 = arith.addf %119, %120 : vector<8x128xf32>
    %122 = vector.extract_strided_slice %111 {offsets = [0, 128], sizes = [8, 128], strides = [1, 1]} : vector<8x512xf32> to vector<8x128xf32>
    %123 = vector.extract_strided_slice %110 {offsets = [0, 128], sizes = [8, 128], strides = [1, 1]} : vector<8x256xf32> to vector<8x128xf32>
    %124 = arith.addf %122, %123 : vector<8x128xf32>
    %cst_59 = arith.constant 5.000000e-01 : f32
    %125 = vector.broadcast %cst_59 : f32 to vector<8x128xf32>
    %126 = arith.mulf %125, %124 : vector<8x128xf32>
    %127 = math.tanh %126 : vector<8x128xf32>
    %cst_60 = arith.constant 5.000000e-01 : f32
    %128 = vector.broadcast %cst_60 : f32 to vector<8x128xf32>
    %129 = arith.mulf %128, %127 : vector<8x128xf32>
    %cst_61 = arith.constant 5.000000e-01 : f32
    %130 = vector.broadcast %cst_61 : f32 to vector<8x128xf32>
    %131 = arith.addf %129, %130 : vector<8x128xf32>
    %132 = vector.extract_strided_slice %111 {offsets = [0, 256], sizes = [8, 128], strides = [1, 1]} : vector<8x512xf32> to vector<8x128xf32>
    %133 = math.tanh %132 : vector<8x128xf32>
    %134 = arith.mulf %131, %89 : vector<8x128xf32>
    %135 = arith.mulf %121, %133 : vector<8x128xf32>
    %136 = arith.addf %134, %135 : vector<8x128xf32>
    %137 = vector.extract_strided_slice %111 {offsets = [0, 384], sizes = [8, 128], strides = [1, 1]} : vector<8x512xf32> to vector<8x128xf32>
    %c0_62 = arith.constant 0 : index
    %c0_63 = arith.constant 0 : index
    %138 = vector.load %arg5[%c0_62, %c0_63] : memref<128x128xf32, #tpu.memory_space<vmem>>, vector<128x128xf32>
    %cst_64 = arith.constant dense<0.000000e+00> : vector<8x128xf32>
    %139 = tpu.matmul %136, %138, %cst_64 {dimension_numbers = #tpu.dot_dimension_numbers<[1], [0], [0], [1], [0, 0, 1, 1], [], []>} : vector<8x128xf32>, vector<128x128xf32>, vector<8x128xf32> -> vector<8x128xf32>
    %140 = arith.addf %137, %139 : vector<8x128xf32>
    %cst_65 = arith.constant 5.000000e-01 : f32
    %141 = vector.broadcast %cst_65 : f32 to vector<8x128xf32>
    %142 = arith.mulf %141, %140 : vector<8x128xf32>
    %143 = math.tanh %142 : vector<8x128xf32>
    %cst_66 = arith.constant 5.000000e-01 : f32
    %144 = vector.broadcast %cst_66 : f32 to vector<8x128xf32>
    %145 = arith.mulf %144, %143 : vector<8x128xf32>
    %cst_67 = arith.constant 5.000000e-01 : f32
    %146 = vector.broadcast %cst_67 : f32 to vector<8x128xf32>
    %147 = arith.addf %145, %146 : vector<8x128xf32>
    %148 = math.tanh %136 : vector<8x128xf32>
    %149 = arith.mulf %147, %148 : vector<8x128xf32>
    %c3_i32 = arith.constant 3 : i32
    %c8_i32_68 = arith.constant 8 : i32
    %150 = arith.muli %c3_i32, %c8_i32_68 : i32
    %151 = tpu.assume_multiple %150, 8 : i32
    %152 = arith.index_cast %151 : i32 to index
    %c0_69 = arith.constant 0 : index
    %153 = vector.load %arg10[%152, %c0_69] : memref<64x512xf32, #tpu.memory_space<vmem>>, vector<8x512xf32>
    %c0_70 = arith.constant 0 : index
    %c0_71 = arith.constant 0 : index
    %154 = vector.load %arg3[%c0_70, %c0_71] : memref<128x512xf32, #tpu.memory_space<vmem>>, vector<128x512xf32>
    %cst_72 = arith.constant dense<0.000000e+00> : vector<8x512xf32>
    %155 = tpu.matmul %149, %154, %cst_72 {dimension_numbers = #tpu.dot_dimension_numbers<[1], [0], [0], [1], [0, 0, 1, 1], [], []>} : vector<8x128xf32>, vector<128x512xf32>, vector<8x512xf32> -> vector<8x512xf32>
    %c0_73 = arith.constant 0 : index
    %c0_74 = arith.constant 0 : index
    %156 = vector.load %arg4[%c0_73, %c0_74] : memref<128x256xf32, #tpu.memory_space<vmem>>, vector<128x256xf32>
    %cst_75 = arith.constant dense<0.000000e+00> : vector<8x256xf32>
    %157 = tpu.matmul %136, %156, %cst_75 {dimension_numbers = #tpu.dot_dimension_numbers<[1], [0], [0], [1], [0, 0, 1, 1], [], []>} : vector<8x128xf32>, vector<128x256xf32>, vector<8x256xf32> -> vector<8x256xf32>
    %158 = arith.addf %153, %155 : vector<8x512xf32>
    %159 = vector.extract_strided_slice %158 {offsets = [0, 0], sizes = [8, 128], strides = [1, 1]} : vector<8x512xf32> to vector<8x128xf32>
    %160 = vector.extract_strided_slice %157 {offsets = [0, 0], sizes = [8, 128], strides = [1, 1]} : vector<8x256xf32> to vector<8x128xf32>
    %161 = arith.addf %159, %160 : vector<8x128xf32>
    %cst_76 = arith.constant 5.000000e-01 : f32
    %162 = vector.broadcast %cst_76 : f32 to vector<8x128xf32>
    %163 = arith.mulf %162, %161 : vector<8x128xf32>
    %164 = math.tanh %163 : vector<8x128xf32>
    %cst_77 = arith.constant 5.000000e-01 : f32
    %165 = vector.broadcast %cst_77 : f32 to vector<8x128xf32>
    %166 = arith.mulf %165, %164 : vector<8x128xf32>
    %cst_78 = arith.constant 5.000000e-01 : f32
    %167 = vector.broadcast %cst_78 : f32 to vector<8x128xf32>
    %168 = arith.addf %166, %167 : vector<8x128xf32>
    %169 = vector.extract_strided_slice %158 {offsets = [0, 128], sizes = [8, 128], strides = [1, 1]} : vector<8x512xf32> to vector<8x128xf32>
    %170 = vector.extract_strided_slice %157 {offsets = [0, 128], sizes = [8, 128], strides = [1, 1]} : vector<8x256xf32> to vector<8x128xf32>
    %171 = arith.addf %169, %170 : vector<8x128xf32>
    %cst_79 = arith.constant 5.000000e-01 : f32
    %172 = vector.broadcast %cst_79 : f32 to vector<8x128xf32>
    %173 = arith.mulf %172, %171 : vector<8x128xf32>
    %174 = math.tanh %173 : vector<8x128xf32>
    %cst_80 = arith.constant 5.000000e-01 : f32
    %175 = vector.broadcast %cst_80 : f32 to vector<8x128xf32>
    %176 = arith.mulf %175, %174 : vector<8x128xf32>
    %cst_81 = arith.constant 5.000000e-01 : f32
    %177 = vector.broadcast %cst_81 : f32 to vector<8x128xf32>
    %178 = arith.addf %176, %177 : vector<8x128xf32>
    %179 = vector.extract_strided_slice %158 {offsets = [0, 256], sizes = [8, 128], strides = [1, 1]} : vector<8x512xf32> to vector<8x128xf32>
    %180 = math.tanh %179 : vector<8x128xf32>
    %181 = arith.mulf %178, %136 : vector<8x128xf32>
    %182 = arith.mulf %168, %180 : vector<8x128xf32>
    %183 = arith.addf %181, %182 : vector<8x128xf32>
    %184 = vector.extract_strided_slice %158 {offsets = [0, 384], sizes = [8, 128], strides = [1, 1]} : vector<8x512xf32> to vector<8x128xf32>
    %c0_82 = arith.constant 0 : index
    %c0_83 = arith.constant 0 : index
    %185 = vector.load %arg5[%c0_82, %c0_83] : memref<128x128xf32, #tpu.memory_space<vmem>>, vector<128x128xf32>
    %cst_84 = arith.constant dense<0.000000e+00> : vector<8x128xf32>
    %186 = tpu.matmul %183, %185, %cst_84 {dimension_numbers = #tpu.dot_dimension_numbers<[1], [0], [0], [1], [0, 0, 1, 1], [], []>} : vector<8x128xf32>, vector<128x128xf32>, vector<8x128xf32> -> vector<8x128xf32>
    %187 = arith.addf %184, %186 : vector<8x128xf32>
    %cst_85 = arith.constant 5.000000e-01 : f32
    %188 = vector.broadcast %cst_85 : f32 to vector<8x128xf32>
    %189 = arith.mulf %188, %187 : vector<8x128xf32>
    %190 = math.tanh %189 : vector<8x128xf32>
    %cst_86 = arith.constant 5.000000e-01 : f32
    %191 = vector.broadcast %cst_86 : f32 to vector<8x128xf32>
    %192 = arith.mulf %191, %190 : vector<8x128xf32>
    %cst_87 = arith.constant 5.000000e-01 : f32
    %193 = vector.broadcast %cst_87 : f32 to vector<8x128xf32>
    %194 = arith.addf %192, %193 : vector<8x128xf32>
    %195 = math.tanh %183 : vector<8x128xf32>
    %196 = arith.mulf %194, %195 : vector<8x128xf32>
    %c4_i32 = arith.constant 4 : i32
    %c8_i32_88 = arith.constant 8 : i32
    %197 = arith.muli %c4_i32, %c8_i32_88 : i32
    %198 = tpu.assume_multiple %197, 8 : i32
    %199 = arith.index_cast %198 : i32 to index
    %c0_89 = arith.constant 0 : index
    %200 = vector.load %arg10[%199, %c0_89] : memref<64x512xf32, #tpu.memory_space<vmem>>, vector<8x512xf32>
    %c0_90 = arith.constant 0 : index
    %c0_91 = arith.constant 0 : index
    %201 = vector.load %arg3[%c0_90, %c0_91] : memref<128x512xf32, #tpu.memory_space<vmem>>, vector<128x512xf32>
    %cst_92 = arith.constant dense<0.000000e+00> : vector<8x512xf32>
    %202 = tpu.matmul %196, %201, %cst_92 {dimension_numbers = #tpu.dot_dimension_numbers<[1], [0], [0], [1], [0, 0, 1, 1], [], []>} : vector<8x128xf32>, vector<128x512xf32>, vector<8x512xf32> -> vector<8x512xf32>
    %c0_93 = arith.constant 0 : index
    %c0_94 = arith.constant 0 : index
    %203 = vector.load %arg4[%c0_93, %c0_94] : memref<128x256xf32, #tpu.memory_space<vmem>>, vector<128x256xf32>
    %cst_95 = arith.constant dense<0.000000e+00> : vector<8x256xf32>
    %204 = tpu.matmul %183, %203, %cst_95 {dimension_numbers = #tpu.dot_dimension_numbers<[1], [0], [0], [1], [0, 0, 1, 1], [], []>} : vector<8x128xf32>, vector<128x256xf32>, vector<8x256xf32> -> vector<8x256xf32>
    %205 = arith.addf %200, %202 : vector<8x512xf32>
    %206 = vector.extract_strided_slice %205 {offsets = [0, 0], sizes = [8, 128], strides = [1, 1]} : vector<8x512xf32> to vector<8x128xf32>
    %207 = vector.extract_strided_slice %204 {offsets = [0, 0], sizes = [8, 128], strides = [1, 1]} : vector<8x256xf32> to vector<8x128xf32>
    %208 = arith.addf %206, %207 : vector<8x128xf32>
    %cst_96 = arith.constant 5.000000e-01 : f32
    %209 = vector.broadcast %cst_96 : f32 to vector<8x128xf32>
    %210 = arith.mulf %209, %208 : vector<8x128xf32>
    %211 = math.tanh %210 : vector<8x128xf32>
    %cst_97 = arith.constant 5.000000e-01 : f32
    %212 = vector.broadcast %cst_97 : f32 to vector<8x128xf32>
    %213 = arith.mulf %212, %211 : vector<8x128xf32>
    %cst_98 = arith.constant 5.000000e-01 : f32
    %214 = vector.broadcast %cst_98 : f32 to vector<8x128xf32>
    %215 = arith.addf %213, %214 : vector<8x128xf32>
    %216 = vector.extract_strided_slice %205 {offsets = [0, 128], sizes = [8, 128], strides = [1, 1]} : vector<8x512xf32> to vector<8x128xf32>
    %217 = vector.extract_strided_slice %204 {offsets = [0, 128], sizes = [8, 128], strides = [1, 1]} : vector<8x256xf32> to vector<8x128xf32>
    %218 = arith.addf %216, %217 : vector<8x128xf32>
    %cst_99 = arith.constant 5.000000e-01 : f32
    %219 = vector.broadcast %cst_99 : f32 to vector<8x128xf32>
    %220 = arith.mulf %219, %218 : vector<8x128xf32>
    %221 = math.tanh %220 : vector<8x128xf32>
    %cst_100 = arith.constant 5.000000e-01 : f32
    %222 = vector.broadcast %cst_100 : f32 to vector<8x128xf32>
    %223 = arith.mulf %222, %221 : vector<8x128xf32>
    %cst_101 = arith.constant 5.000000e-01 : f32
    %224 = vector.broadcast %cst_101 : f32 to vector<8x128xf32>
    %225 = arith.addf %223, %224 : vector<8x128xf32>
    %226 = vector.extract_strided_slice %205 {offsets = [0, 256], sizes = [8, 128], strides = [1, 1]} : vector<8x512xf32> to vector<8x128xf32>
    %227 = math.tanh %226 : vector<8x128xf32>
    %228 = arith.mulf %225, %183 : vector<8x128xf32>
    %229 = arith.mulf %215, %227 : vector<8x128xf32>
    %230 = arith.addf %228, %229 : vector<8x128xf32>
    %231 = vector.extract_strided_slice %205 {offsets = [0, 384], sizes = [8, 128], strides = [1, 1]} : vector<8x512xf32> to vector<8x128xf32>
    %c0_102 = arith.constant 0 : index
    %c0_103 = arith.constant 0 : index
    %232 = vector.load %arg5[%c0_102, %c0_103] : memref<128x128xf32, #tpu.memory_space<vmem>>, vector<128x128xf32>
    %cst_104 = arith.constant dense<0.000000e+00> : vector<8x128xf32>
    %233 = tpu.matmul %230, %232, %cst_104 {dimension_numbers = #tpu.dot_dimension_numbers<[1], [0], [0], [1], [0, 0, 1, 1], [], []>} : vector<8x128xf32>, vector<128x128xf32>, vector<8x128xf32> -> vector<8x128xf32>
    %234 = arith.addf %231, %233 : vector<8x128xf32>
    %cst_105 = arith.constant 5.000000e-01 : f32
    %235 = vector.broadcast %cst_105 : f32 to vector<8x128xf32>
    %236 = arith.mulf %235, %234 : vector<8x128xf32>
    %237 = math.tanh %236 : vector<8x128xf32>
    %cst_106 = arith.constant 5.000000e-01 : f32
    %238 = vector.broadcast %cst_106 : f32 to vector<8x128xf32>
    %239 = arith.mulf %238, %237 : vector<8x128xf32>
    %cst_107 = arith.constant 5.000000e-01 : f32
    %240 = vector.broadcast %cst_107 : f32 to vector<8x128xf32>
    %241 = arith.addf %239, %240 : vector<8x128xf32>
    %242 = math.tanh %230 : vector<8x128xf32>
    %243 = arith.mulf %241, %242 : vector<8x128xf32>
    %c5_i32 = arith.constant 5 : i32
    %c8_i32_108 = arith.constant 8 : i32
    %244 = arith.muli %c5_i32, %c8_i32_108 : i32
    %245 = tpu.assume_multiple %244, 8 : i32
    %246 = arith.index_cast %245 : i32 to index
    %c0_109 = arith.constant 0 : index
    %247 = vector.load %arg10[%246, %c0_109] : memref<64x512xf32, #tpu.memory_space<vmem>>, vector<8x512xf32>
    %c0_110 = arith.constant 0 : index
    %c0_111 = arith.constant 0 : index
    %248 = vector.load %arg3[%c0_110, %c0_111] : memref<128x512xf32, #tpu.memory_space<vmem>>, vector<128x512xf32>
    %cst_112 = arith.constant dense<0.000000e+00> : vector<8x512xf32>
    %249 = tpu.matmul %243, %248, %cst_112 {dimension_numbers = #tpu.dot_dimension_numbers<[1], [0], [0], [1], [0, 0, 1, 1], [], []>} : vector<8x128xf32>, vector<128x512xf32>, vector<8x512xf32> -> vector<8x512xf32>
    %c0_113 = arith.constant 0 : index
    %c0_114 = arith.constant 0 : index
    %250 = vector.load %arg4[%c0_113, %c0_114] : memref<128x256xf32, #tpu.memory_space<vmem>>, vector<128x256xf32>
    %cst_115 = arith.constant dense<0.000000e+00> : vector<8x256xf32>
    %251 = tpu.matmul %230, %250, %cst_115 {dimension_numbers = #tpu.dot_dimension_numbers<[1], [0], [0], [1], [0, 0, 1, 1], [], []>} : vector<8x128xf32>, vector<128x256xf32>, vector<8x256xf32> -> vector<8x256xf32>
    %252 = arith.addf %247, %249 : vector<8x512xf32>
    %253 = vector.extract_strided_slice %252 {offsets = [0, 0], sizes = [8, 128], strides = [1, 1]} : vector<8x512xf32> to vector<8x128xf32>
    %254 = vector.extract_strided_slice %251 {offsets = [0, 0], sizes = [8, 128], strides = [1, 1]} : vector<8x256xf32> to vector<8x128xf32>
    %255 = arith.addf %253, %254 : vector<8x128xf32>
    %cst_116 = arith.constant 5.000000e-01 : f32
    %256 = vector.broadcast %cst_116 : f32 to vector<8x128xf32>
    %257 = arith.mulf %256, %255 : vector<8x128xf32>
    %258 = math.tanh %257 : vector<8x128xf32>
    %cst_117 = arith.constant 5.000000e-01 : f32
    %259 = vector.broadcast %cst_117 : f32 to vector<8x128xf32>
    %260 = arith.mulf %259, %258 : vector<8x128xf32>
    %cst_118 = arith.constant 5.000000e-01 : f32
    %261 = vector.broadcast %cst_118 : f32 to vector<8x128xf32>
    %262 = arith.addf %260, %261 : vector<8x128xf32>
    %263 = vector.extract_strided_slice %252 {offsets = [0, 128], sizes = [8, 128], strides = [1, 1]} : vector<8x512xf32> to vector<8x128xf32>
    %264 = vector.extract_strided_slice %251 {offsets = [0, 128], sizes = [8, 128], strides = [1, 1]} : vector<8x256xf32> to vector<8x128xf32>
    %265 = arith.addf %263, %264 : vector<8x128xf32>
    %cst_119 = arith.constant 5.000000e-01 : f32
    %266 = vector.broadcast %cst_119 : f32 to vector<8x128xf32>
    %267 = arith.mulf %266, %265 : vector<8x128xf32>
    %268 = math.tanh %267 : vector<8x128xf32>
    %cst_120 = arith.constant 5.000000e-01 : f32
    %269 = vector.broadcast %cst_120 : f32 to vector<8x128xf32>
    %270 = arith.mulf %269, %268 : vector<8x128xf32>
    %cst_121 = arith.constant 5.000000e-01 : f32
    %271 = vector.broadcast %cst_121 : f32 to vector<8x128xf32>
    %272 = arith.addf %270, %271 : vector<8x128xf32>
    %273 = vector.extract_strided_slice %252 {offsets = [0, 256], sizes = [8, 128], strides = [1, 1]} : vector<8x512xf32> to vector<8x128xf32>
    %274 = math.tanh %273 : vector<8x128xf32>
    %275 = arith.mulf %272, %230 : vector<8x128xf32>
    %276 = arith.mulf %262, %274 : vector<8x128xf32>
    %277 = arith.addf %275, %276 : vector<8x128xf32>
    %278 = vector.extract_strided_slice %252 {offsets = [0, 384], sizes = [8, 128], strides = [1, 1]} : vector<8x512xf32> to vector<8x128xf32>
    %c0_122 = arith.constant 0 : index
    %c0_123 = arith.constant 0 : index
    %279 = vector.load %arg5[%c0_122, %c0_123] : memref<128x128xf32, #tpu.memory_space<vmem>>, vector<128x128xf32>
    %cst_124 = arith.constant dense<0.000000e+00> : vector<8x128xf32>
    %280 = tpu.matmul %277, %279, %cst_124 {dimension_numbers = #tpu.dot_dimension_numbers<[1], [0], [0], [1], [0, 0, 1, 1], [], []>} : vector<8x128xf32>, vector<128x128xf32>, vector<8x128xf32> -> vector<8x128xf32>
    %281 = arith.addf %278, %280 : vector<8x128xf32>
    %cst_125 = arith.constant 5.000000e-01 : f32
    %282 = vector.broadcast %cst_125 : f32 to vector<8x128xf32>
    %283 = arith.mulf %282, %281 : vector<8x128xf32>
    %284 = math.tanh %283 : vector<8x128xf32>
    %cst_126 = arith.constant 5.000000e-01 : f32
    %285 = vector.broadcast %cst_126 : f32 to vector<8x128xf32>
    %286 = arith.mulf %285, %284 : vector<8x128xf32>
    %cst_127 = arith.constant 5.000000e-01 : f32
    %287 = vector.broadcast %cst_127 : f32 to vector<8x128xf32>
    %288 = arith.addf %286, %287 : vector<8x128xf32>
    %289 = math.tanh %277 : vector<8x128xf32>
    %290 = arith.mulf %288, %289 : vector<8x128xf32>
    %c6_i32 = arith.constant 6 : i32
    %c8_i32_128 = arith.constant 8 : i32
    %291 = arith.muli %c6_i32, %c8_i32_128 : i32
    %292 = tpu.assume_multiple %291, 8 : i32
    %293 = arith.index_cast %292 : i32 to index
    %c0_129 = arith.constant 0 : index
    %294 = vector.load %arg10[%293, %c0_129] : memref<64x512xf32, #tpu.memory_space<vmem>>, vector<8x512xf32>
    %c0_130 = arith.constant 0 : index
    %c0_131 = arith.constant 0 : index
    %295 = vector.load %arg3[%c0_130, %c0_131] : memref<128x512xf32, #tpu.memory_space<vmem>>, vector<128x512xf32>
    %cst_132 = arith.constant dense<0.000000e+00> : vector<8x512xf32>
    %296 = tpu.matmul %290, %295, %cst_132 {dimension_numbers = #tpu.dot_dimension_numbers<[1], [0], [0], [1], [0, 0, 1, 1], [], []>} : vector<8x128xf32>, vector<128x512xf32>, vector<8x512xf32> -> vector<8x512xf32>
    %c0_133 = arith.constant 0 : index
    %c0_134 = arith.constant 0 : index
    %297 = vector.load %arg4[%c0_133, %c0_134] : memref<128x256xf32, #tpu.memory_space<vmem>>, vector<128x256xf32>
    %cst_135 = arith.constant dense<0.000000e+00> : vector<8x256xf32>
    %298 = tpu.matmul %277, %297, %cst_135 {dimension_numbers = #tpu.dot_dimension_numbers<[1], [0], [0], [1], [0, 0, 1, 1], [], []>} : vector<8x128xf32>, vector<128x256xf32>, vector<8x256xf32> -> vector<8x256xf32>
    %299 = arith.addf %294, %296 : vector<8x512xf32>
    %300 = vector.extract_strided_slice %299 {offsets = [0, 0], sizes = [8, 128], strides = [1, 1]} : vector<8x512xf32> to vector<8x128xf32>
    %301 = vector.extract_strided_slice %298 {offsets = [0, 0], sizes = [8, 128], strides = [1, 1]} : vector<8x256xf32> to vector<8x128xf32>
    %302 = arith.addf %300, %301 : vector<8x128xf32>
    %cst_136 = arith.constant 5.000000e-01 : f32
    %303 = vector.broadcast %cst_136 : f32 to vector<8x128xf32>
    %304 = arith.mulf %303, %302 : vector<8x128xf32>
    %305 = math.tanh %304 : vector<8x128xf32>
    %cst_137 = arith.constant 5.000000e-01 : f32
    %306 = vector.broadcast %cst_137 : f32 to vector<8x128xf32>
    %307 = arith.mulf %306, %305 : vector<8x128xf32>
    %cst_138 = arith.constant 5.000000e-01 : f32
    %308 = vector.broadcast %cst_138 : f32 to vector<8x128xf32>
    %309 = arith.addf %307, %308 : vector<8x128xf32>
    %310 = vector.extract_strided_slice %299 {offsets = [0, 128], sizes = [8, 128], strides = [1, 1]} : vector<8x512xf32> to vector<8x128xf32>
    %311 = vector.extract_strided_slice %298 {offsets = [0, 128], sizes = [8, 128], strides = [1, 1]} : vector<8x256xf32> to vector<8x128xf32>
    %312 = arith.addf %310, %311 : vector<8x128xf32>
    %cst_139 = arith.constant 5.000000e-01 : f32
    %313 = vector.broadcast %cst_139 : f32 to vector<8x128xf32>
    %314 = arith.mulf %313, %312 : vector<8x128xf32>
    %315 = math.tanh %314 : vector<8x128xf32>
    %cst_140 = arith.constant 5.000000e-01 : f32
    %316 = vector.broadcast %cst_140 : f32 to vector<8x128xf32>
    %317 = arith.mulf %316, %315 : vector<8x128xf32>
    %cst_141 = arith.constant 5.000000e-01 : f32
    %318 = vector.broadcast %cst_141 : f32 to vector<8x128xf32>
    %319 = arith.addf %317, %318 : vector<8x128xf32>
    %320 = vector.extract_strided_slice %299 {offsets = [0, 256], sizes = [8, 128], strides = [1, 1]} : vector<8x512xf32> to vector<8x128xf32>
    %321 = math.tanh %320 : vector<8x128xf32>
    %322 = arith.mulf %319, %277 : vector<8x128xf32>
    %323 = arith.mulf %309, %321 : vector<8x128xf32>
    %324 = arith.addf %322, %323 : vector<8x128xf32>
    %325 = vector.extract_strided_slice %299 {offsets = [0, 384], sizes = [8, 128], strides = [1, 1]} : vector<8x512xf32> to vector<8x128xf32>
    %c0_142 = arith.constant 0 : index
    %c0_143 = arith.constant 0 : index
    %326 = vector.load %arg5[%c0_142, %c0_143] : memref<128x128xf32, #tpu.memory_space<vmem>>, vector<128x128xf32>
    %cst_144 = arith.constant dense<0.000000e+00> : vector<8x128xf32>
    %327 = tpu.matmul %324, %326, %cst_144 {dimension_numbers = #tpu.dot_dimension_numbers<[1], [0], [0], [1], [0, 0, 1, 1], [], []>} : vector<8x128xf32>, vector<128x128xf32>, vector<8x128xf32> -> vector<8x128xf32>
    %328 = arith.addf %325, %327 : vector<8x128xf32>
    %cst_145 = arith.constant 5.000000e-01 : f32
    %329 = vector.broadcast %cst_145 : f32 to vector<8x128xf32>
    %330 = arith.mulf %329, %328 : vector<8x128xf32>
    %331 = math.tanh %330 : vector<8x128xf32>
    %cst_146 = arith.constant 5.000000e-01 : f32
    %332 = vector.broadcast %cst_146 : f32 to vector<8x128xf32>
    %333 = arith.mulf %332, %331 : vector<8x128xf32>
    %cst_147 = arith.constant 5.000000e-01 : f32
    %334 = vector.broadcast %cst_147 : f32 to vector<8x128xf32>
    %335 = arith.addf %333, %334 : vector<8x128xf32>
    %336 = math.tanh %324 : vector<8x128xf32>
    %337 = arith.mulf %335, %336 : vector<8x128xf32>
    %c7_i32 = arith.constant 7 : i32
    %c8_i32_148 = arith.constant 8 : i32
    %338 = arith.muli %c7_i32, %c8_i32_148 : i32
    %339 = tpu.assume_multiple %338, 8 : i32
    %340 = arith.index_cast %339 : i32 to index
    %c0_149 = arith.constant 0 : index
    %341 = vector.load %arg10[%340, %c0_149] : memref<64x512xf32, #tpu.memory_space<vmem>>, vector<8x512xf32>
    %c0_150 = arith.constant 0 : index
    %c0_151 = arith.constant 0 : index
    %342 = vector.load %arg3[%c0_150, %c0_151] : memref<128x512xf32, #tpu.memory_space<vmem>>, vector<128x512xf32>
    %cst_152 = arith.constant dense<0.000000e+00> : vector<8x512xf32>
    %343 = tpu.matmul %337, %342, %cst_152 {dimension_numbers = #tpu.dot_dimension_numbers<[1], [0], [0], [1], [0, 0, 1, 1], [], []>} : vector<8x128xf32>, vector<128x512xf32>, vector<8x512xf32> -> vector<8x512xf32>
    %c0_153 = arith.constant 0 : index
    %c0_154 = arith.constant 0 : index
    %344 = vector.load %arg4[%c0_153, %c0_154] : memref<128x256xf32, #tpu.memory_space<vmem>>, vector<128x256xf32>
    %cst_155 = arith.constant dense<0.000000e+00> : vector<8x256xf32>
    %345 = tpu.matmul %324, %344, %cst_155 {dimension_numbers = #tpu.dot_dimension_numbers<[1], [0], [0], [1], [0, 0, 1, 1], [], []>} : vector<8x128xf32>, vector<128x256xf32>, vector<8x256xf32> -> vector<8x256xf32>
    %346 = arith.addf %341, %343 : vector<8x512xf32>
    %347 = vector.extract_strided_slice %346 {offsets = [0, 0], sizes = [8, 128], strides = [1, 1]} : vector<8x512xf32> to vector<8x128xf32>
    %348 = vector.extract_strided_slice %345 {offsets = [0, 0], sizes = [8, 128], strides = [1, 1]} : vector<8x256xf32> to vector<8x128xf32>
    %349 = arith.addf %347, %348 : vector<8x128xf32>
    %cst_156 = arith.constant 5.000000e-01 : f32
    %350 = vector.broadcast %cst_156 : f32 to vector<8x128xf32>
    %351 = arith.mulf %350, %349 : vector<8x128xf32>
    %352 = math.tanh %351 : vector<8x128xf32>
    %cst_157 = arith.constant 5.000000e-01 : f32
    %353 = vector.broadcast %cst_157 : f32 to vector<8x128xf32>
    %354 = arith.mulf %353, %352 : vector<8x128xf32>
    %cst_158 = arith.constant 5.000000e-01 : f32
    %355 = vector.broadcast %cst_158 : f32 to vector<8x128xf32>
    %356 = arith.addf %354, %355 : vector<8x128xf32>
    %357 = vector.extract_strided_slice %346 {offsets = [0, 128], sizes = [8, 128], strides = [1, 1]} : vector<8x512xf32> to vector<8x128xf32>
    %358 = vector.extract_strided_slice %345 {offsets = [0, 128], sizes = [8, 128], strides = [1, 1]} : vector<8x256xf32> to vector<8x128xf32>
    %359 = arith.addf %357, %358 : vector<8x128xf32>
    %cst_159 = arith.constant 5.000000e-01 : f32
    %360 = vector.broadcast %cst_159 : f32 to vector<8x128xf32>
    %361 = arith.mulf %360, %359 : vector<8x128xf32>
    %362 = math.tanh %361 : vector<8x128xf32>
    %cst_160 = arith.constant 5.000000e-01 : f32
    %363 = vector.broadcast %cst_160 : f32 to vector<8x128xf32>
    %364 = arith.mulf %363, %362 : vector<8x128xf32>
    %cst_161 = arith.constant 5.000000e-01 : f32
    %365 = vector.broadcast %cst_161 : f32 to vector<8x128xf32>
    %366 = arith.addf %364, %365 : vector<8x128xf32>
    %367 = vector.extract_strided_slice %346 {offsets = [0, 256], sizes = [8, 128], strides = [1, 1]} : vector<8x512xf32> to vector<8x128xf32>
    %368 = math.tanh %367 : vector<8x128xf32>
    %369 = arith.mulf %366, %324 : vector<8x128xf32>
    %370 = arith.mulf %356, %368 : vector<8x128xf32>
    %371 = arith.addf %369, %370 : vector<8x128xf32>
    %372 = vector.extract_strided_slice %346 {offsets = [0, 384], sizes = [8, 128], strides = [1, 1]} : vector<8x512xf32> to vector<8x128xf32>
    %c0_162 = arith.constant 0 : index
    %c0_163 = arith.constant 0 : index
    %373 = vector.load %arg5[%c0_162, %c0_163] : memref<128x128xf32, #tpu.memory_space<vmem>>, vector<128x128xf32>
    %cst_164 = arith.constant dense<0.000000e+00> : vector<8x128xf32>
    %374 = tpu.matmul %371, %373, %cst_164 {dimension_numbers = #tpu.dot_dimension_numbers<[1], [0], [0], [1], [0, 0, 1, 1], [], []>} : vector<8x128xf32>, vector<128x128xf32>, vector<8x128xf32> -> vector<8x128xf32>
    %375 = arith.addf %372, %374 : vector<8x128xf32>
    %cst_165 = arith.constant 5.000000e-01 : f32
    %376 = vector.broadcast %cst_165 : f32 to vector<8x128xf32>
    %377 = arith.mulf %376, %375 : vector<8x128xf32>
    %378 = math.tanh %377 : vector<8x128xf32>
    %cst_166 = arith.constant 5.000000e-01 : f32
    %379 = vector.broadcast %cst_166 : f32 to vector<8x128xf32>
    %380 = arith.mulf %379, %378 : vector<8x128xf32>
    %cst_167 = arith.constant 5.000000e-01 : f32
    %381 = vector.broadcast %cst_167 : f32 to vector<8x128xf32>
    %382 = arith.addf %380, %381 : vector<8x128xf32>
    %383 = math.tanh %371 : vector<8x128xf32>
    %384 = arith.mulf %382, %383 : vector<8x128xf32>
    %c8_i32_168 = arith.constant 8 : i32
    %c0_169 = arith.constant 0 : index
    %c0_170 = arith.constant 0 : index
    %385 = vector.load %arg7[%c0_169, %c0_170] : memref<128x128xf32, #tpu.memory_space<vmem>>, vector<128x128xf32>
    %cst_171 = arith.constant dense<0.000000e+00> : vector<8x128xf32>
    %386 = tpu.matmul %384, %385, %cst_171 {dimension_numbers = #tpu.dot_dimension_numbers<[1], [0], [0], [1], [0, 0, 1, 1], [], []>} : vector<8x128xf32>, vector<128x128xf32>, vector<8x128xf32> -> vector<8x128xf32>
    %c0_172 = arith.constant 0 : index
    %c0_173 = arith.constant 0 : index
    %387 = vector.load %arg8[%c0_172, %c0_173] : memref<1x128xf32, #tpu.memory_space<vmem>>, vector<1x128xf32>
    %388 = vector.broadcast %387 : vector<1x128xf32> to vector<8x128xf32>
    %389 = arith.addf %386, %388 : vector<8x128xf32>
    %c0_174 = arith.constant 0 : index
    %c0_175 = arith.constant 0 : index
    %390 = vector.load %arg9[%c0_174, %c0_175] : memref<8x128xf32, #tpu.memory_space<vmem>>, vector<8x128xf32>
    tpu.vector_store %arg9[%c0_174, %c0_175], %389 {strides = array<i32>} : memref<8x128xf32, #tpu.memory_space<vmem>>, vector<8x128xf32>,
    return
  }
  func.func @transform_0(%arg0: i32) -> (i32, i32) {
    %c0_i32 = arith.constant 0 : i32
    %c0_i32_0 = arith.constant 0 : i32
    return %arg0, %c0_i32 : i32, i32
  }
  func.func @transform_1(%arg0: i32) -> (i32, i32) {
    %c0_i32 = arith.constant 0 : i32
    %c0_i32_0 = arith.constant 0 : i32
    %c0_i32_1 = arith.constant 0 : i32
    return %c0_i32, %c0_i32_0 : i32, i32
  }
  func.func @transform_2(%arg0: i32) -> (i32, i32) {
    %c0_i32 = arith.constant 0 : i32
    %c0_i32_0 = arith.constant 0 : i32
    %c0_i32_1 = arith.constant 0 : i32
    return %c0_i32, %c0_i32_0 : i32, i32
  }
  func.func @transform_3(%arg0: i32) -> (i32, i32) {
    %c0_i32 = arith.constant 0 : i32
    %c0_i32_0 = arith.constant 0 : i32
    %c0_i32_1 = arith.constant 0 : i32
    return %c0_i32, %c0_i32_0 : i32, i32
  }
  func.func @transform_4(%arg0: i32) -> (i32, i32) {
    %c0_i32 = arith.constant 0 : i32
    %c0_i32_0 = arith.constant 0 : i32
    %c0_i32_1 = arith.constant 0 : i32
    return %c0_i32, %c0_i32_0 : i32, i32
  }
  func.func @transform_5(%arg0: i32) -> (i32, i32) {
    %c0_i32 = arith.constant 0 : i32
    %c0_i32_0 = arith.constant 0 : i32
    %c0_i32_1 = arith.constant 0 : i32
    return %c0_i32, %c0_i32_0 : i32, i32
  }
  func.func @transform_6(%arg0: i32) -> (i32, i32) {
    %c0_i32 = arith.constant 0 : i32
    %c0_i32_0 = arith.constant 0 : i32
    %c0_i32_1 = arith.constant 0 : i32
    return %c0_i32, %c0_i32_0 : i32, i32
  }
  func.func @transform_7(%arg0: i32) -> (i32, i32) {
    %c0_i32 = arith.constant 0 : i32
    %c0_i32_0 = arith.constant 0 : i32
    %c0_i32_1 = arith.constant 0 : i32
    return %c0_i32, %c0_i32_0 : i32, i32
  }
  func.func @transform_8(%arg0: i32) -> (i32, i32) {
    %c0_i32 = arith.constant 0 : i32
    %c0_i32_0 = arith.constant 0 : i32
    return %arg0, %c0_i32 : i32, i32
  }
}

</mosaic_0001>

<bundles_post_ra>
// kernel: tpu_custom_call.1
= control target key start
LH: loop header
LB: loop body
LE: loop exit
PB: predicated region body
PF: predicated region fallthrough
CT: control target
= control target key end

     0   :  { %13 = vsyncpa [#allocation4], 0  ;;  %s5889_s0 = inlined_call_operand.vmem [shape: f32[64,16], index: 0, kind: input, shape index: {}]   ;;  %s5890_s1 = inlined_call_operand.vmem [shape: f32[16,512], index: 1, kind: input, shape index: {}]   ;;  %s5891_s2 = inlined_call_operand.hbm [shape: f32[128,512], index: 2, kind: input, shape index: {}]   ;;  %s5892_s3 = inlined_call_operand.hbm [shape: f32[128,256], index: 3, kind: input, shape index: {}]   ;;  %s5893_s4 = inlined_call_operand.hbm [shape: f32[128,128], index: 4, kind: input, shape index: {}]   ;;  %s5894_s5 = inlined_call_operand.vmem [shape: f32[1,512], index: 5, kind: input, shape index: {}]   ;;  %s5895_s6 = inlined_call_operand.hbm [shape: f32[128,128], index: 6, kind: input, shape index: {}]   ;;  %s5896_s7 = inlined_call_operand.vmem [shape: f32[1,128], index: 7, kind: input, shape index: {}]   ;;  %s5897_s8 = inlined_call_operand.hbm [shape: f32[8,128], index: 8, kind: output, shape index: {}]  }
   0x1   :  { %14 = vsyncpa [#allocation7], 0 }
   0x2   :  { %15 = vsyncpa [#allocation10], 0 }
   0x3   :  { %16 = vsyncpa [#allocation5], 0  ;;  %s4925_s27 = smov [#allocation6]   ;;  %s4807_s9 = scalar_lea.hbm %s5892_s3, 4096 }
   0x4   :  { %s38_s28 = sshll.u32 %s4925_s27, 4  ;;  %p4808_p0 = scmp.ne.s32.totalorder %s5892_s3, %s4807_s9  ;;  %s39_s28 = int_to_ptr.vmem [resolvable:$true] %s38_s28 }
   0x5   :  { %p4811_p1 = scmp.lt.u32.totalorder %s4807_s9, %s5892_s3 }
   0x7   :  { %p4813_p2 = pnand %p4811_p1, %p4808_p0 }
   0x9   :  { %4816 = shalt.err (!%p4813_p2)
}
   0xa   :  { %s4817_s14 = scalar_lea.vmem %s39_s28, 4096  ;;  %p4822_p4 = scmp.lt.s32.totalorder %s39_s28, %s39_s28 }
   0xb   :  { %p4818_p3 = scmp.ne.s32.totalorder %s39_s28, %s4817_s14  ;;  %p4823_p5 = scmp.lt.s32.totalorder %s4817_s14, %s4817_s14 }
   0xd   :  { %p4824_p6 = por %p4823_p5, %p4822_p4 }
   0xf   :  { %p4825_p7 = pnand %p4824_p6, %p4818_p3 }
  0x11   :  { %4828 = shalt.err (!%p4825_p7)
}
  0x12   :  { %s4926_s15 = smov 256   ;;  %s4927_s16 = smov 16  }
  0x13   :  { %44 = dma.hbm_to_vmem [thread:$0]  %s5892_s3, 4096, %s39_s28, [#allocation7], %s4926_s15, %s4926_s15, %s4927_s16  }
  0x14   :  { %s4928_s19 = smov [#allocation3]   ;;  %s4829_s23 = scalar_lea.hbm %s5891_s2, 8192 }
  0x15   :  { %s26_s20 = sshll.u32 %s4928_s19, 4  ;;  %p4830_p8 = scmp.ne.s32.totalorder %s5891_s2, %s4829_s23  ;;  %s27_s20 = int_to_ptr.vmem [resolvable:$true] %s26_s20 }
  0x16   :  { %p4833_p9 = scmp.lt.u32.totalorder %s4829_s23, %s5891_s2 }
  0x18   :  { %p4835_p10 = pnand %p4833_p9, %p4830_p8 }
  0x1a   :  { %4838 = shalt.err (!%p4835_p10)
}
  0x1b   :  { %s4839_s29 = scalar_lea.vmem %s27_s20, 8192  ;;  %p4844_p12 = scmp.lt.s32.totalorder %s27_s20, %s27_s20 }
  0x1c   :  { %p4840_p11 = scmp.ne.s32.totalorder %s27_s20, %s4839_s29  ;;  %p4845_p13 = scmp.lt.s32.totalorder %s4839_s29, %s4839_s29 }
  0x1e   :  { %p4846_p0 = por %p4845_p13, %p4844_p12 }
  0x20   :  { %p4847_p1 = pnand %p4846_p0, %p4840_p11 }
  0x22   :  { %4850 = shalt.err (!%p4847_p1)
}
  0x23   :  { %s4929_s3 = smov 512   ;;  %s4930_s28 = smov 32  }
  0x24   :  { %32 = dma.hbm_to_vmem [thread:$0]  %s5891_s2, 8192, %s27_s20, [#allocation4], %s4929_s3, %s4929_s3, %s4930_s28  }
  0x25   :  { %s4931_s10 = smov [#allocation8]   ;;  %s4851_s14 = scalar_lea.hbm %s5893_s4, 2048 }
  0x26   :  { %s50_s11 = sshll.u32 %s4931_s10, 4  ;;  %p4852_p2 = scmp.ne.s32.totalorder %s5893_s4, %s4851_s14  ;;  %s51_s11 = int_to_ptr.vmem [resolvable:$true] %s50_s11 }
  0x27   :  { %p4855_p3 = scmp.lt.u32.totalorder %s4851_s14, %s5893_s4 }
  0x29   :  { %p4857_p4 = pnand %p4855_p3, %p4852_p2 }
  0x2b   :  { %4860 = shalt.err (!%p4857_p4)
}
  0x2c   :  { %s4861_s19 = scalar_lea.vmem %s51_s11, 2048  ;;  %p4866_p6 = scmp.lt.s32.totalorder %s51_s11, %s51_s11 }
  0x2d   :  { %p4862_p5 = scmp.ne.s32.totalorder %s51_s11, %s4861_s19  ;;  %p4867_p7 = scmp.lt.s32.totalorder %s4861_s19, %s4861_s19 }
  0x2f   :  { %p4868_p8 = por %p4867_p7, %p4866_p6 }
  0x31   :  { %p4869_p9 = pnand %p4868_p8, %p4862_p5 }
  0x33   :  { %4872 = shalt.err (!%p4869_p9)
}
  0x34   :  { %s4932_s2 = smov 128   ;;  %s4933_s20 = smov 8  }
  0x35   :  { %56 = dma.hbm_to_vmem [thread:$0]  %s5893_s4, 2048, %s51_s11, [#allocation7], %s4932_s2, %s4932_s2, %s4933_s20  }
  0x36   :  { %s4934_s23 = smov [#allocation9]   ;;  %s4873_s27 = scalar_lea.hbm %s5895_s6, 2048 }
  0x37   :  { %s64_s24 = sshll.u32 %s4934_s23, 4  ;;  %p4874_p10 = scmp.ne.s32.totalorder %s5895_s6, %s4873_s27  ;;  %s65_s24 = int_to_ptr.vmem [resolvable:$true] %s64_s24 }
  0x38   :  { %p4877_p11 = scmp.lt.u32.totalorder %s4873_s27, %s5895_s6 }
  0x3a   :  { %p4879_p12 = pnand %p4877_p11, %p4874_p10 }
  0x3c   :  { %4882 = shalt.err (!%p4879_p12)
}
  0x3d   :  { %s4883_s9 = scalar_lea.vmem %s65_s24, 2048  ;;  %p4888_p0 = scmp.lt.s32.totalorder %s65_s24, %s65_s24 }
  0x3e   :  { %p4884_p13 = scmp.ne.s32.totalorder %s65_s24, %s4883_s9  ;;  %p4889_p1 = scmp.lt.s32.totalorder %s4883_s9, %s4883_s9 }
  0x40   :  { %p4890_p2 = por %p4889_p1, %p4888_p0 }
  0x42   :  { %p4891_p3 = pnand %p4890_p2, %p4884_p13 }
  0x44   :  { %4894 = shalt.err (!%p4891_p3)
}
  0x45   :  { %70 = dma.hbm_to_vmem [thread:$0]  %s5895_s6, 2048, %s65_s24, [#allocation10], %s4932_s2, %s4932_s2, %s4933_s20  }
  0x46   :  { %4917 = dma.done.wait [#allocation4], 8192  }
  0x47   :  { %4918 = vsyncadd [#allocation4], 4294959104 }
  0x48   :  { %4919 = dma.done.wait [#allocation7], 6144  }
  0x49   :  { %4920 = vsyncadd [#allocation7], 4294961152 }
  0x4a   :  { %4921 = dma.done.wait [#allocation10], 2048  }
  0x4b   :  { %4922 = vsyncadd [#allocation10], 4294965248  ;;  %v5910_v0 = vmov 0.0   ;;  %v95_v1 = vld [vmem:[%s5890_s1 + $0x8] sm:$0xff]  ;;  %v94_v3 = vld [vmem:[%s5890_s1] sm:$0xff]  ;;  %vm123_vm0 = vcmask 130048  }
  0x4c   :  { %212 = vmatprep.mubr.f32.mxu0 %v5910_v0  ;;  %325 = vmatprep.mubr.f32.mxu1 %v5910_v0  ;;  %v99_v2 = vld [vmem:[%s5890_s1 + $0x28] sm:$0xff]  ;;  %v98_v5 = vld [vmem:[%s5890_s1 + $0x20] sm:$0xff]  ;;  %v97_v13 = vld [vmem:[%s5890_s1 + $0x18] sm:$0xff]  ;;  %vm4937_vm1 = vmmov 0   ;;  %s4938_s17 = smov [#allocation11]  }
  0x4d   :  { %v3641_v4 = vpack.c.bf16 %v99_v2, %v95_v1  ;;  %v414_v6 = vld [vmem:[#allocation3 + $0x8] sm:$0xff]  ;;  %v3643_v8 = vpack.c.bf16 %v98_v5, %v94_v3  ;;  %v86_v10 = vld [vmem:[%s5889_s0] sm:$0xff]  ;;  %v101_v14 = vld [vmem:[%s5890_s1 + $0x38] sm:$0xff]  ;;  %s3138_s18 = sshll.u32 %s4938_s17, 4  ;;  %s3139_s18 = int_to_ptr.vmem [resolvable:$true] %s3138_s18 }
  0x4e   :  { %v418_v7 = vld [vmem:[#allocation3 + $0x28] sm:$0xff]  ;;  %v413_v11 = vld [vmem:[#allocation3] sm:$0xff]  ;;  %v96_v15 = vld [vmem:[%s5890_s1 + $0x10] sm:$0xff]  ;;  %v3645_v17 = vpack.c.bf16 %v101_v14, %v97_v13  ;;  %s4895_s19 = scalar_lea.vmem %s3139_s18, 128  ;;  %p4900_p5 = scmp.lt.s32.totalorder %s3139_s18, %s3139_s18 }
  0x4f   :  { %v5046_v9 = vpack.c.bf16 %v418_v7, %v414_v6  ;;  %v417_v12 = vld [vmem:[#allocation3 + $0x20] sm:$0xff]  ;;  %3642 = vmatprep.subr.bf16.mxu0 %v3641_v4  ;;  %v100_v18 = vld [vmem:[%s5890_s1 + $0x30] sm:$0xff]  ;;  %v422_v19 = vld [vmem:[#allocation3 + $0x48] sm:$0xff]  ;;  %p4896_p4 = scmp.ne.s32.totalorder %s3139_s18, %s4895_s19  ;;  %p4901_p6 = scmp.lt.s32.totalorder %s4895_s19, %s4895_s19 }
  0x50   :  { %3644 = vmatpush1.bf16.msra.mxu0 %v3643_v8  ;;  %v5060_v16 = vpack.c.bf16 %v417_v12, %v413_v11  ;;  %v426_v20 = vld [vmem:[#allocation3 + $0x68] sm:$0xff]  ;;  %v3647_v21 = vpack.c.bf16 %v100_v18, %v96_v15  ;;  %v421_v23 = vld [vmem:[#allocation3 + $0x40] sm:$0xff]  ;;  %3646 = vmatprep.subr.bf16.mxu1 %v3645_v17  ;;  %v416_v25 = vld [vmem:[#allocation3 + $0x18] sm:$0xff] }
  0x51   :  { %3650 = vmatprep.subr.bf16.mxu0 %v5046_v9  ;;  %v5066_v22 = vpack.c.bf16 %v426_v20, %v422_v19  ;;  %v425_v24 = vld [vmem:[#allocation3 + $0x60] sm:$0xff]  ;;  %v420_v26 = vld [vmem:[#allocation3 + $0x38] sm:$0xff]  ;;  %v415_v27 = vld [vmem:[#allocation3 + $0x10] sm:$0xff]  ;;  %p4902_p7 = por %p4901_p6, %p4900_p5 }
  0x52   :  { %5936 = vst [vmem:[#allocation16_spill] sm:$0xff] %v5060_v16  ;;  %3648 = vmatpush1.bf16.msra.mxu1 %v3647_v21  ;;  %v5069_v28 = vpack.c.bf16 %v420_v26, %v416_v25  ;;  %v419_v29 = vld [vmem:[#allocation3 + $0x30] sm:$0xff]  ;;  %v430_v30 = vld [vmem:[#allocation3 + $0x88] sm:$0xff]  ;;  %v5076_v33 = vpack.c.bf16 %v425_v24, %v421_v23  ;;  %v429_v35 = vld [vmem:[#allocation3 + $0x80] sm:$0xff] }
  0x53   :  { %5937 = vst [vmem:[#allocation17_spill] sm:$0xff] %v5066_v22  ;;  %3156 = vmatmul.mubr.msk.f32.vlgmr.msra.gmra.mrb[0].mxu0 %vm123_vm0, %v86_v10  ;;  %v434_v31 = vld [vmem:[#allocation3 + $0xa8] sm:$0xff]  ;;  %v5078_v34 = vpack.c.bf16 %v419_v29, %v415_v27  ;;  %v433_v36 = vld [vmem:[#allocation3 + $0xa0] sm:$0xff]  ;;  %v424_v38 = vld [vmem:[#allocation3 + $0x58] sm:$0xff]  ;;  %p4903_p8 = pnand %p4902_p7, %p4896_p4 }
  0x54   :  { %3652 = vmatpush1.bf16.msra.mxu0 %v5060_v16  ;;  %218 = vmatprep.mubr.f32.mxu0 %v5910_v0  ;;  %v87_v32 = vld [vmem:[%s5889_s0 + $0x8] sm:$0xff]  ;;  %5938 = vst [vmem:[#allocation18_spill] sm:$0xff] %v5076_v33  ;;  %v5082_v37 = vpack.c.bf16 %v434_v31, %v430_v30  ;;  %v428_v39 = vld [vmem:[#allocation3 + $0x78] sm:$0xff]  ;;  %v423_v40 = vld [vmem:[#allocation3 + $0x50] sm:$0xff]  ;;  %v5096_v47 = vpack.c.bf16 %v433_v36, %v429_v35 }
  0x55   :  { %3654 = vmatprep.subr.bf16.mxu0 %v5066_v22  ;;  %3682 = vmatprep.subr.bf16.mxu1 %v5069_v28  ;;  %v5085_v41 = vpack.c.bf16 %v428_v39, %v424_v38  ;;  %v427_v42 = vld [vmem:[#allocation3 + $0x70] sm:$0xff]  ;;  %v438_v43 = vld [vmem:[#allocation3 + $0xc8] sm:$0xff]  ;;  %v432_v48 = vld [vmem:[#allocation3 + $0x98] sm:$0xff] }
  0x56   :  { %5939 = vst [vmem:[#allocation19_spill] sm:$0xff] %v5082_v37  ;;  %3164 = vmatmul.mubr.msk.f32.vlgmr.msra.gmra.mrb[0].mxu1 %vm123_vm0, %v86_v10  ;;  %v442_v44 = vld [vmem:[#allocation3 + $0xe8] sm:$0xff]  ;;  %v88_v45 = vld [vmem:[%s5889_s0 + $0x10] sm:$0xff]  ;;  %v5092_v46 = vpack.c.bf16 %v427_v42, %v423_v40  ;;  %5940 = vst [vmem:[#allocation20_spill] sm:$0xff] %v5096_v47 }
  0x57   :  { %3157 = vmatmul.mubr.msk.f32.gmra.mrb[2].mxu0 %vm123_vm0, %v87_v32  ;;  %3684 = vmatpush1.bf16.msra.mxu1 %v5078_v34  ;;  %v436_v49 = vld [vmem:[#allocation3 + $0xb8] sm:$0xff]  ;;  %v431_v50 = vld [vmem:[#allocation3 + $0x90] sm:$0xff]  ;;  %v5100_v51 = vpack.c.bf16 %v442_v44, %v438_v43  ;;  %v437_v52 = vld [vmem:[#allocation3 + $0xc0] sm:$0xff] }
  0x58   :  { %3656 = vmatpush1.bf16.msra.mxu0 %v5076_v33  ;;  %224 = vmatprep.mubr.f32.mxu0 %v5910_v0  ;;  %v441_v53 = vld [vmem:[#allocation3 + $0xe0] sm:$0xff]  ;;  %v435_v54 = vld [vmem:[#allocation3 + $0xb0] sm:$0xff]  ;;  %v5104_v55 = vpack.c.bf16 %v436_v49, %v432_v48  ;;  %v446_v56 = vld [vmem:[#allocation3 + $0x108] sm:$0xff] }
  0x59   :  { %3658 = vmatprep.subr.bf16.mxu0 %v5082_v37  ;;  %331 = vmatprep.mubr.f32.mxu1 %v5910_v0  ;;  %5941 = vst [vmem:[#allocation21_spill] sm:$0xff] %v5100_v51  ;;  %v450_v57 = vld [vmem:[#allocation3 + $0x128] sm:$0xff]  ;;  %v5108_v58 = vpack.c.bf16 %v435_v54, %v431_v50  ;;  %v440_v59 = vld [vmem:[#allocation3 + $0xd8] sm:$0xff]  ;;  %v5115_v62 = vpack.c.bf16 %v441_v53, %v437_v52  ;;  %v439_v63 = vld [vmem:[#allocation3 + $0xd0] sm:$0xff] }
  0x5a   :  { %3165 = vmatmul.mubr.msk.f32.gmra.mrb[2].mxu1 %vm123_vm0, %v87_v32  ;;  %3686 = vmatprep.subr.bf16.mxu1 %v5085_v41  ;;  %v444_v60 = vld [vmem:[#allocation3 + $0xf8] sm:$0xff]  ;;  %v443_v1 = vld [vmem:[#allocation3 + $0xf0] sm:$0xff]  ;;  %v5119_v2 = vpack.c.bf16 %v450_v57, %v446_v56  ;;  %v445_v3 = vld [vmem:[#allocation3 + $0x100] sm:$0xff] }
  0x5b   :  { %3158 = vmatmul.mubr.msk.f32.gmra.mrb[4].mxu0 %vm123_vm0, %v88_v45  ;;  %3688 = vmatpush1.bf16.msra.mxu1 %v5092_v46  ;;  %v89_v61 = vld [vmem:[%s5889_s0 + $0x18] sm:$0xff]  ;;  %5942 = vst [vmem:[#allocation22_spill] sm:$0xff] %v5115_v62  ;;  %v449_v4 = vld [vmem:[#allocation3 + $0x120] sm:$0xff]  ;;  %v5123_v5 = vpack.c.bf16 %v444_v60, %v440_v59  ;;  %v454_v6 = vld [vmem:[#allocation3 + $0x148] sm:$0xff]  ;;  %v5127_v8 = vpack.c.bf16 %v443_v1, %v439_v63 }
  0x5c   :  { %3660 = vmatpush1.bf16.msra.mxu0 %v5096_v47  ;;  %230 = vmatprep.mubr.f32.mxu0 %v5910_v0  ;;  %5943 = vst [vmem:[#allocation23_spill] sm:$0xff] %v5119_v2  ;;  %v458_v7 = vld [vmem:[#allocation3 + $0x168] sm:$0xff]  ;;  %v448_v10 = vld [vmem:[#allocation3 + $0x118] sm:$0xff]  ;;  %v90_v12 = vld [vmem:[%s5889_s0 + $0x20] sm:$0xff]  ;;  %v5134_v13 = vpack.c.bf16 %v449_v4, %v445_v3 }
  0x5d   :  { %3662 = vmatprep.subr.bf16.mxu0 %v5100_v51  ;;  %337 = vmatprep.mubr.f32.mxu1 %v5910_v0  ;;  %v452_v11 = vld [vmem:[#allocation3 + $0x138] sm:$0xff]  ;;  %v447_v14 = vld [vmem:[#allocation3 + $0x110] sm:$0xff]  ;;  %v5138_v17 = vpack.c.bf16 %v458_v7, %v454_v6  ;;  %v453_v18 = vld [vmem:[#allocation3 + $0x140] sm:$0xff] }
  0x5e   :  { %3166 = vmatmul.mubr.msk.f32.gmra.mrb[4].mxu1 %vm123_vm0, %v88_v45  ;;  %3690 = vmatprep.subr.bf16.mxu1 %v5104_v55  ;;  %5944 = vst [vmem:[#allocation24_spill] sm:$0xff] %v5134_v13  ;;  %v451_v15 = vld [vmem:[#allocation3 + $0x130] sm:$0xff]  ;;  %v457_v19 = vld [vmem:[#allocation3 + $0x160] sm:$0xff]  ;;  %v5142_v20 = vpack.c.bf16 %v452_v11, %v448_v10  ;;  %v462_v21 = vld [vmem:[#allocation3 + $0x188] sm:$0xff] }
  0x5f   :  { %3159 = vmatmul.mubr.msk.f32.gmra.mrb[6].mxu0 %vm123_vm0, %v89_v61  ;;  %3692 = vmatpush1.bf16.msra.mxu1 %v5108_v58  ;;  %5945 = vst [vmem:[#allocation25_spill] sm:$0xff] %v5138_v17  ;;  %v466_v23 = vld [vmem:[#allocation3 + $0x1a8] sm:$0xff]  ;;  %v5146_v24 = vpack.c.bf16 %v451_v15, %v447_v14  ;;  %v456_v25 = vld [vmem:[#allocation3 + $0x158] sm:$0xff]  ;;  %v5153_v29 = vpack.c.bf16 %v457_v19, %v453_v18  ;;  %v455_v30 = vld [vmem:[#allocation3 + $0x150] sm:$0xff] }
  0x60   :  { %3664 = vmatpush1.bf16.msra.mxu0 %v5115_v62  ;;  %236 = vmatprep.mubr.f32.mxu0 %v5910_v0  ;;  %v460_v26 = vld [vmem:[#allocation3 + $0x178] sm:$0xff]  ;;  %v91_v27 = vld [vmem:[%s5889_s0 + $0x28] sm:$0xff]  ;;  %v459_v31 = vld [vmem:[#allocation3 + $0x170] sm:$0xff]  ;;  %v5157_v32 = vpack.c.bf16 %v466_v23, %v462_v21 }
  0x61   :  { %3666 = vmatprep.subr.bf16.mxu0 %v5119_v2  ;;  %343 = vmatprep.mubr.f32.mxu1 %v5910_v0  ;;  %5946 = vst [vmem:[#allocation26_spill] sm:$0xff] %v5153_v29  ;;  %v461_v35 = vld [vmem:[#allocation3 + $0x180] sm:$0xff]  ;;  %v5161_v38 = vpack.c.bf16 %v460_v26, %v456_v25  ;;  %v470_v39 = vld [vmem:[#allocation3 + $0x1c8] sm:$0xff]  ;;  %v5165_v42 = vpack.c.bf16 %v459_v31, %v455_v30  ;;  %v464_v43 = vld [vmem:[#allocation3 + $0x198] sm:$0xff] }
  0x62   :  { %3167 = vmatmul.mubr.msk.f32.gmra.mrb[6].mxu1 %vm123_vm0, %v89_v61  ;;  %3694 = vmatprep.subr.bf16.mxu1 %v5123_v5  ;;  %5947 = vst [vmem:[#allocation27_spill] sm:$0xff] %v5157_v32  ;;  %v465_v36 = vld [vmem:[#allocation3 + $0x1a0] sm:$0xff]  ;;  %v474_v40 = vld [vmem:[#allocation3 + $0x1e8] sm:$0xff]  ;;  %v468_v44 = vld [vmem:[#allocation3 + $0x1b8] sm:$0xff] }
  0x63   :  { %3160 = vmatmul.mubr.msk.f32.gmra.mrb[8].mxu0 %vm123_vm0, %v90_v12  ;;  %3696 = vmatpush1.bf16.msra.mxu1 %v5127_v8  ;;  %v92_v45 = vld [vmem:[%s5889_s0 + $0x30] sm:$0xff]  ;;  %v5172_v48 = vpack.c.bf16 %v465_v36, %v461_v35  ;;  %v5176_v52 = vpack.c.bf16 %v474_v40, %v470_v39  ;;  %v469_v53 = vld [vmem:[#allocation3 + $0x1c0] sm:$0xff]  ;;  %v5180_v56 = vpack.c.bf16 %v468_v44, %v464_v43  ;;  %v620_v57 = vld [vmem:[#allocation6 + $0x8] sm:$0xff] }
  0x64   :  { %3668 = vmatpush1.bf16.msra.mxu0 %v5134_v13  ;;  %242 = vmatprep.mubr.f32.mxu0 %v5910_v0  ;;  %v463_v49 = vld [vmem:[#allocation3 + $0x190] sm:$0xff]  ;;  %v473_v54 = vld [vmem:[#allocation3 + $0x1e0] sm:$0xff]  ;;  %v622_v59 = vld [vmem:[#allocation6 + $0x18] sm:$0xff] }
  0x65   :  { %3670 = vmatprep.subr.bf16.mxu0 %v5138_v17  ;;  %349 = vmatprep.mubr.f32.mxu1 %v5910_v0  ;;  %5948 = vst [vmem:[#allocation28_spill] sm:$0xff] %v5172_v48  ;;  %v467_v50 = vld [vmem:[#allocation3 + $0x1b0] sm:$0xff]  ;;  %5949 = vst [vmem:[#allocation29_spill] sm:$0xff] %v5176_v52  ;;  %v472_v61 = vld [vmem:[#allocation3 + $0x1d8] sm:$0xff]  ;;  %v5191_v3 = vpack.c.bf16 %v473_v54, %v469_v53  ;;  %v5195_v7 = vpack.c.bf16 %v622_v59, %v620_v57 }
  0x66   :  { %3168 = vmatmul.mubr.msk.f32.gmra.mrb[8].mxu1 %vm123_vm0, %v90_v12  ;;  %3698 = vmatprep.subr.bf16.mxu1 %v5142_v20  ;;  %v5184_v60 = vpack.c.bf16 %v467_v50, %v463_v49  ;;  %v476_v63 = vld [vmem:[#allocation3 + $0x1f8] sm:$0xff]  ;;  %v471_v4 = vld [vmem:[#allocation3 + $0x1d0] sm:$0xff]  ;;  %v619_v10 = vld [vmem:[#allocation6] sm:$0xff] }
  0x67   :  { %3161 = vmatmul.mubr.msk.f32.gmra.mrb[10].mxu0 %vm123_vm0, %v91_v27  ;;  %3700 = vmatpush1.bf16.msra.mxu1 %v5146_v24  ;;  %v93_v1 = vld [vmem:[%s5889_s0 + $0x38] sm:$0xff]  ;;  %5950 = vst [vmem:[#allocation30_spill] sm:$0xff] %v5191_v3  ;;  %v475_v6 = vld [vmem:[#allocation3 + $0x1f0] sm:$0xff]  ;;  %5951 = vst [vmem:[#allocation31_spill] sm:$0xff] %v5195_v7  ;;  %v5199_v12 = vpack.c.bf16 %v476_v63, %v472_v61 }
  0x68   :  { %3672 = vmatpush1.bf16.msra.mxu0 %v5153_v29  ;;  %248 = vmatprep.mubr.f32.mxu0 %v5910_v0  ;;  %v621_v11 = vld [vmem:[#allocation6 + $0x10] sm:$0xff]  ;;  %v624_v14 = vld [vmem:[#allocation6 + $0x28] sm:$0xff]  ;;  %v626_v15 = vld [vmem:[#allocation6 + $0x38] sm:$0xff]  ;;  %v5203_v18 = vpack.c.bf16 %v475_v6, %v471_v4 }
  0x69   :  { %3674 = vmatprep.subr.bf16.mxu0 %v5157_v32  ;;  %355 = vmatprep.mubr.f32.mxu1 %v5910_v0  ;;  %v5207_v19 = vpack.c.bf16 %v621_v11, %v619_v10  ;;  %v5211_v21 = vpack.c.bf16 %v626_v15, %v624_v14  ;;  %v623_v23 = vld [vmem:[#allocation6 + $0x20] sm:$0xff]  ;;  %v625_v25 = vld [vmem:[#allocation6 + $0x30] sm:$0xff]  ;;  %v628_v26 = vld [vmem:[#allocation6 + $0x48] sm:$0xff] }
  0x6a   :  { %3169 = vmatmul.mubr.msk.f32.gmra.mrb[10].mxu1 %vm123_vm0, %v91_v27  ;;  %3702 = vmatprep.subr.bf16.mxu1 %v5161_v38  ;;  %v630_v27 = vld [vmem:[#allocation6 + $0x58] sm:$0xff]  ;;  %v5219_v30 = vpack.c.bf16 %v625_v25, %v623_v23  ;;  %v627_v35 = vld [vmem:[#allocation6 + $0x40] sm:$0xff]  ;;  %v629_v36 = vld [vmem:[#allocation6 + $0x50] sm:$0xff] }
  0x6b   :  { %3162 = vmatmul.mubr.msk.f32.gmra.mrb[12].mxu0 %vm123_vm0, %v92_v45  ;;  %3704 = vmatpush1.bf16.msra.mxu1 %v5165_v42  ;;  %v5222_v31 = vpack.c.bf16 %v630_v27, %v628_v26  ;;  %v632_v39 = vld [vmem:[#allocation6 + $0x68] sm:$0xff]  ;;  %v634_v40 = vld [vmem:[#allocation6 + $0x78] sm:$0xff]  ;;  %v5227_v43 = vpack.c.bf16 %v629_v36, %v627_v35  ;;  %v633_v49 = vld [vmem:[#allocation6 + $0x70] sm:$0xff] }
  0x6c   :  { %3676 = vmatpush1.bf16.msra.mxu0 %v5172_v48  ;;  %254 = vmatprep.mubr.f32.mxu0 %v5910_v0  ;;  %v5230_v44 = vpack.c.bf16 %v634_v40, %v632_v39  ;;  %v636_v50 = vld [vmem:[#allocation6 + $0x88] sm:$0xff]  ;;  %v638_v53 = vld [vmem:[#allocation6 + $0x98] sm:$0xff]  ;;  %v635_v59 = vld [vmem:[#allocation6 + $0x80] sm:$0xff] }
  0x6d   :  { %3678 = vmatprep.subr.bf16.mxu0 %v5176_v52  ;;  %361 = vmatprep.mubr.f32.mxu1 %v5910_v0  ;;  %v5236_v57 = vpack.c.bf16 %v638_v53, %v636_v50  ;;  %v637_v61 = vld [vmem:[#allocation6 + $0x90] sm:$0xff]  ;;  %v640_v63 = vld [vmem:[#allocation6 + $0xa8] sm:$0xff]  ;;  %v639_v10 = vld [vmem:[#allocation6 + $0xa0] sm:$0xff] }
  0x6e   :  { %3170 = vmatmul.mubr.msk.f32.gmra.mrb[12].mxu1 %vm123_vm0, %v92_v45  ;;  %3706 = vmatprep.subr.bf16.mxu1 %v5180_v56  ;;  %v631_v45 = vld [vmem:[#allocation6 + $0x60] sm:$0xff]  ;;  %v5239_v4 = vpack.c.bf16 %v637_v61, %v635_v59  ;;  %v641_v11 = vld [vmem:[#allocation6 + $0xb0] sm:$0xff]  ;;  %v644_v14 = vld [vmem:[#allocation6 + $0xc8] sm:$0xff] }
  0x6f   :  { %3163 = vmatmul.mubr.msk.f32.gmra.mrb[14].mxu0 %vm123_vm0, %v93_v1  ;;  %3708 = vmatpush1.bf16.msra.mxu1 %v5184_v60  ;;  %v5233_v54 = vpack.c.bf16 %v633_v49, %v631_v45  ;;  %v646_v15 = vld [vmem:[#allocation6 + $0xd8] sm:$0xff]  ;;  %v5245_v23 = vpack.c.bf16 %v641_v11, %v639_v10  ;;  %v643_v26 = vld [vmem:[#allocation6 + $0xc0] sm:$0xff]  ;;  %v645_v27 = vld [vmem:[#allocation6 + $0xd0] sm:$0xff] }
  0x70   :  { %3680 = vmatpush1.bf16.msra.mxu0 %v5191_v3  ;;  %541 = vmatprep.mubr.f32.mxu0 %v5910_v0  ;;  %v5248_v25 = vpack.c.bf16 %v646_v15, %v644_v14  ;;  %v648_v35 = vld [vmem:[#allocation6 + $0xe8] sm:$0xff]  ;;  %v650_v36 = vld [vmem:[#allocation6 + $0xf8] sm:$0xff]  ;;  %v5251_v39 = vpack.c.bf16 %v645_v27, %v643_v26  ;;  %v647_v45 = vld [vmem:[#allocation6 + $0xe0] sm:$0xff] }
  0x71   :  { %3714 = vmatprep.subr.bf16.mxu0 %v5195_v7  ;;  %367 = vmatprep.mubr.f32.mxu1 %v5910_v0  ;;  %v5254_v40 = vpack.c.bf16 %v650_v36, %v648_v35  ;;  %v649_v49 = vld [vmem:[#allocation6 + $0xf0] sm:$0xff]  ;;  %v740_v53 = vld [vmem:[#allocation8] sm:$0xff]  ;;  %v741_v59 = vld [vmem:[#allocation8 + $0x8] sm:$0xff] }
  0x72   :  { %3171 = vmatmul.mubr.msk.f32.gmra.mrb[14].mxu1 %vm123_vm0, %v93_v1  ;;  %3710 = vmatprep.subr.bf16.mxu1 %v5199_v12  ;;  %v642_v1 = vld [vmem:[#allocation6 + $0xb8] sm:$0xff]  ;;  %v5257_v50 = vpack.c.bf16 %v649_v49, %v647_v45  ;;  %v742_v61 = vld [vmem:[#allocation8 + $0x10] sm:$0xff]  ;;  %v744_v14 = vld [vmem:[#allocation8 + $0x20] sm:$0xff] }
  0x73   :  { %542 = vmatmul.mubr.f32.vlgmr.msra.gmra.mrb[0].mxu0 %v5910_v0  ;;  %3712 = vmatpush1.bf16.msra.mxu1 %v5203_v18  ;;  %v5242_v6 = vpack.c.bf16 %v642_v1, %v640_v63  ;;  %v5902_v63 = vmov 0.0|0.0   ;;  %v5281_v1 = vpack.c.bf16 %v741_v59, %v740_v53  ;;  %v743_v10 = vld [vmem:[#allocation8 + $0x18] sm:$0xff]  ;;  %v745_v15 = vld [vmem:[#allocation8 + $0x28] sm:$0xff]  ;;  %v746_v27 = vld [vmem:[#allocation8 + $0x30] sm:$0xff] }
  0x74   :  { %3716 = vmatpush1.bf16.msra.mxu0 %v5207_v19  ;;  %612 = vmatprep.mubr.f32.mxu1 %v5910_v0  ;;  %v5284_v11 = vpack.c.bf16 %v743_v10, %v742_v61  ;;  %v5289_v26 = vpack.c.bf16 %v745_v15, %v744_v14  ;;  %v747_v35 = vld [vmem:[#allocation8 + $0x38] sm:$0xff]  ;;  %v748_v45 = vld [vmem:[#allocation8 + $0x40] sm:$0xff]  ;;  %v749_v49 = vld [vmem:[#allocation8 + $0x48] sm:$0xff] }
  0x75   :  { %3718 = vmatprep.subr.bf16.mxu0 %v5211_v21  ;;  %715 = vmatprep.mubr.f32.mxu0 %v5910_v0  ;;  %v5293_v36 = vpack.c.bf16 %v747_v35, %v746_v27  ;;  %v5297_v53 = vpack.c.bf16 %v749_v49, %v748_v45  ;;  %v750_v59 = vld [vmem:[#allocation8 + $0x50] sm:$0xff]  ;;  %v751_v61 = vld [vmem:[#allocation8 + $0x58] sm:$0xff]  ;;  %v752_v14 = vld [vmem:[#allocation8 + $0x60] sm:$0xff] }
  0x76   :  { %613 = vmatmul.mubr.f32.vlgmr.msra.gmra.mrb[0].mxu1 %v5910_v0  ;;  %3745 = vmatprep.subr.bf16.mxu1 %v5902_v63  ;;  %v5301_v10 = vpack.c.bf16 %v751_v61, %v750_v59  ;;  %v753_v15 = vld [vmem:[#allocation8 + $0x68] sm:$0xff]  ;;  %v754_v35 = vld [vmem:[#allocation8 + $0x70] sm:$0xff]  ;;  %v755_v45 = vld [vmem:[#allocation8 + $0x78] sm:$0xff] }
  0x77   :  { %3747 = vmatpush3.bf16.msra.mxu1 %v5281_v1  ;;  %v5305_v27 = vpack.c.bf16 %v753_v15, %v752_v14  ;;  %v5309_v49 = vpack.c.bf16 %v755_v45, %v754_v35  ;;  %3358 = vmatprep.mubr.msk.f32.mxu1 %vm4937_vm1, %v5910_v0  ;;  %v103_v14 = vlaneseq }
  0x78   :  { %3720 = vmatpush1.bf16.msra.mxu0 %v5219_v30  ;;  %3748 = vmatprep.subr.bf16.mxu1 %v5902_v63 }
  0x79   :  { %3722 = vmatprep.subr.bf16.mxu0 %v5222_v31  ;;  %v104_v15 = vshrl.u32 %v103_v14, 7 }
  0x7b   :  { %3750 = vmatpush3.bf16.msra.mxu1 %v5284_v11  ;;  %v113_v35 = vsub.s32 2, %v104_v15 }
  0x7c   :  { %3724 = vmatpush1.bf16.msra.mxu0 %v5227_v43  ;;  %3751 = vmatprep.subr.bf16.mxu1 %v5902_v63 }
  0x7d   :  { %3726 = vmatprep.subr.bf16.mxu0 %v5230_v44 }
  0x7f   :  { %3753 = vmatpush3.bf16.msra.mxu1 %v5289_v26 }
  0x80   :  { %3728 = vmatpush1.bf16.msra.mxu0 %v5233_v54  ;;  %3754 = vmatprep.subr.bf16.mxu1 %v5902_v63 }
  0x81   :  { %3730 = vmatprep.subr.bf16.mxu0 %v5236_v57 }
  0x83   :  { %3756 = vmatpush3.bf16.msra.mxu1 %v5293_v36 }
  0x84   :  { %3732 = vmatpush1.bf16.msra.mxu0 %v5239_v4  ;;  %3757 = vmatprep.subr.bf16.mxu1 %v5902_v63 }
  0x85   :  { %3734 = vmatprep.subr.bf16.mxu0 %v5242_v6 }
  0x87   :  { %3759 = vmatpush3.bf16.msra.mxu1 %v5297_v53 }
  0x88   :  { %3736 = vmatpush1.bf16.msra.mxu0 %v5245_v23  ;;  %3760 = vmatprep.subr.bf16.mxu1 %v5902_v63 }
  0x89   :  { %3738 = vmatprep.subr.bf16.mxu0 %v5248_v25 }
  0x8b   :  { %3762 = vmatpush3.bf16.msra.mxu1 %v5301_v10 }
  0x8c   :  { %3740 = vmatpush1.bf16.msra.mxu0 %v5251_v39  ;;  %3763 = vmatprep.subr.bf16.mxu1 %v5902_v63 }
  0x8d   :  { %3742 = vmatprep.subr.bf16.mxu0 %v5254_v40 }
  0x8f   :  { %3765 = vmatpush3.bf16.msra.mxu1 %v5305_v27 }
  0x90   :  { %3744 = vmatpush1.bf16.msra.mxu0 %v5257_v50  ;;  %3766 = vmatprep.subr.bf16.mxu1 %v5902_v63  ;;  %v85_v63 = vld [vmem:[%s5894_s5] sm:$0xf] }
  0x91   :  { %3770 = vmatprep.subr.bf16.mxu0 %v5046_v9 }
  0x93   :  { %716 = vmatmul.mubr.f32.vlgmr.msra.gmra.mrb[0].mxu0 %v5910_v0  ;;  %3768 = vmatpush3.bf16.msra.mxu1 %v5309_v49 }
  0x94   :  { %3772 = vmatpush1.bf16.msra.mxu0 %v5060_v16  ;;  %904 = vmatprep.mubr.f32.mxu0 %v5910_v0 }
  0x95   :  { %3774 = vmatprep.subr.bf16.mxu0 %v5066_v22  ;;  %3802 = vmatprep.subr.bf16.mxu1 %v5069_v28 }
  0x98   :  { %3776 = vmatpush1.bf16.msra.mxu0 %v5076_v33 }
  0x99   :  { %3778 = vmatprep.subr.bf16.mxu0 %v5082_v37 }
  0x9c   :  { %3780 = vmatpush1.bf16.msra.mxu0 %v5096_v47 }
  0x9d   :  { %3782 = vmatprep.subr.bf16.mxu0 %v5100_v51 }
  0xa0   :  { %3784 = vmatpush1.bf16.msra.mxu0 %v5115_v62 }
  0xa1   :  { %3786 = vmatprep.subr.bf16.mxu0 %v5119_v2 }
  0xa4   :  { %3788 = vmatpush1.bf16.msra.mxu0 %v5134_v13 }
  0xa5   :  { %3790 = vmatprep.subr.bf16.mxu0 %v5138_v17 }
  0xa8   :  { %3792 = vmatpush1.bf16.msra.mxu0 %v5153_v29 }
  0xa9   :  { %3794 = vmatprep.subr.bf16.mxu0 %v5157_v32  ;;  %v5322_v32 = vrot.slane %v85_v63, %v113_v35 }
  0xac   :  { %3796 = vmatpush1.bf16.msra.mxu0 %v5172_v48 }
  0xad   :  { %3798 = vmatprep.subr.bf16.mxu0 %v5176_v52 }
  0xb0   :  { %3800 = vmatpush1.bf16.msra.mxu0 %v5191_v3  ;;  %v109_v3 = vsub.s32 1, %v104_v15 }
  0xb1   :  { %3834 = vmatprep.subr.bf16.mxu0 %v5195_v7  ;;  %v105_v7 = vsub.s32 0, %v104_v15 }
  0xb2   :  { %v5320_v52 = vrot.slane %v85_v63, %v109_v3 }
  0xb3   :  { %v5318_v45 = vrot.slane %v85_v63, %v105_v7 }
  0xb5   :  { %5952 = vst [vmem:[#allocation32_spill] sm:$0xff] %v5318_v45 }
 0x149   :  { %v614_v59 = vpop.f32.mrb[0].mxu1 }
 0x14a   :  { %v616_v61 = vpop.f32.mrb[1].mxu1  ;;  %v4649_v2 = vadd.f32 %v614_v59, %v5322_v32 }
 0x166   :  { %v717_v48 = vpop.f32.mrb[0].mxu0 }
 0x167   :  { %v4633_v0 = vadd.f32 %v717_v48, %v5318_v45  ;;  %v719_v29 = vpop.f32.mrb[1].mxu0 }
 0x168   :  { %v4634_v17 = vadd.f32 %v719_v29, %v5320_v52 }
 0x169   :  { %v727_v14 = vmul.f32 0.5, %v4633_v0  ;;  %v5953_v0 = vmov 0.0  }
 0x16a   :  { %v732_v13 = vmul.f32 0.5, %v4634_v17 }
 0x16b   :  { %4727 = vtanh.f32 %v727_v14 }
 0x16c   :  { %4729 = vtanh.f32 %v732_v13 }
 0x16d   :  { %4731 = vtanh.f32 %v4649_v2 }
 0x175   :  { %v4728_v62 = vpop.eup %4727 }
 0x176   :  { %v4730_v7 = vpop.eup %4729  ;;  %v729_v51 = vmul.f32 0.5, %v4728_v62 }
 0x177   :  { %v734_v3 = vmul.f32 0.5, %v4730_v7  ;;  %v4732_v37 = vpop.eup %4731 }
 0x178   :  { %v730_v47 = vadd.f32 0.5, %v729_v51 }
 0x179   :  { %v735_v35 = vadd.f32 0.5, %v734_v3  ;;  %v5958_v3 = vld [vmem:[#allocation20_spill] sm:$0xff] }
 0x17a   :  { %v738_v33 = vmul.f32 %v4732_v37, %v730_v47 }
 0x17b   :  { %v737_v22 = vmul.f32 0.0, %v735_v35  ;;  %v5959_v35 = vld [vmem:[#allocation21_spill] sm:$0xff] }
 0x17d   :  { %v5327_v48 = vadd.f32 %v738_v33, %v737_v22  ;;  %v5954_v22 = vmov 0.0|0.0   ;;  %v117_v33 = vsub.s32 3, %v104_v15  ;;  %v5957_v15 = vld [vmem:[#allocation19_spill] sm:$0xff] }
 0x17f   :  { %3359 = vmatmul.mubr.f32.vlgmr.msra.gmra.mrb[16].mxu1 %v5327_v48  ;;  %v5347_v37 = vrot.slane %v85_v63, %v117_v33  ;;  %v5955_v63 = vld [vmem:[#allocation17_spill] sm:$0xff]  ;;  %v5960_v33 = vld [vmem:[#allocation22_spill] sm:$0xff] }
 0x180   :  { %3804 = vmatpush1.bf16.msra.mxu1 %v5078_v34  ;;  %975 = vmatprep.mubr.f32.mxu1 %v5953_v0 }
 0x181   :  { %3806 = vmatprep.subr.bf16.mxu1 %v5085_v41  ;;  %v4650_v47 = vadd.f32 %v616_v61, %v5347_v37  ;;  %v5956_v61 = vld [vmem:[#allocation18_spill] sm:$0xff] }
 0x184   :  { %3808 = vmatpush1.bf16.msra.mxu1 %v5092_v46 }
 0x185   :  { %3810 = vmatprep.subr.bf16.mxu1 %v5104_v55 }
 0x188   :  { %3812 = vmatpush1.bf16.msra.mxu1 %v5108_v58 }
 0x189   :  { %3814 = vmatprep.subr.bf16.mxu1 %v5123_v5 }
 0x18c   :  { %3816 = vmatpush1.bf16.msra.mxu1 %v5127_v8 }
 0x18d   :  { %3818 = vmatprep.subr.bf16.mxu1 %v5142_v20 }
 0x190   :  { %3820 = vmatpush1.bf16.msra.mxu1 %v5146_v24 }
 0x191   :  { %3822 = vmatprep.subr.bf16.mxu1 %v5161_v38 }
 0x194   :  { %3824 = vmatpush1.bf16.msra.mxu1 %v5165_v42 }
 0x195   :  { %3826 = vmatprep.subr.bf16.mxu1 %v5180_v56 }
 0x198   :  { %3828 = vmatpush1.bf16.msra.mxu1 %v5184_v60 }
 0x199   :  { %3830 = vmatprep.subr.bf16.mxu1 %v5199_v12 }
 0x19c   :  { %3832 = vmatpush1.bf16.msra.mxu1 %v5203_v18 }
 0x19d   :  { %3865 = vmatprep.subr.bf16.mxu1 %v5954_v22 }
 0x252   :  { %v822_v51 = vpop.f32.mrb[16].mxu1 }
 0x253   :  { %v826_v62 = vadd.f32 %v4650_v47, %v822_v51  ;;  %v3360_v2 = vpop.f32.mrb[17].mxu1  ;;  %v5961_v47 = vld [vmem:[#allocation23_spill] sm:$0xff]  ;;  %v5962_v51 = vld [vmem:[#allocation24_spill] sm:$0xff] }
 0x254   :  { %v5964_v2 = vld [vmem:[#allocation26_spill] sm:$0xff] }
 0x255   :  { %v827_v13 = vmul.f32 0.5, %v826_v62  ;;  %v5963_v62 = vld [vmem:[#allocation25_spill] sm:$0xff] }
 0x257   :  { %4733 = vtanh.f32 %v827_v13  ;;  %v5965_v13 = vld [vmem:[#allocation27_spill] sm:$0xff] }
 0x258   :  { %4735 = vtanh.f32 %v5327_v48 }
 0x261   :  { %v4734_v17 = vpop.eup %4733 }
 0x262   :  { %v829_v29 = vmul.f32 0.5, %v4734_v17  ;;  %v4736_v14 = vpop.eup %4735  ;;  %v5966_v17 = vld [vmem:[#allocation28_spill] sm:$0xff] }
 0x264   :  { %v830_v59 = vadd.f32 0.5, %v829_v29  ;;  %v5967_v29 = vld [vmem:[#allocation29_spill] sm:$0xff] }
 0x266   :  { %v832_v7 = vmul.f32 %v4736_v14, %v830_v59  ;;  %v5968_v59 = vld [vmem:[#allocation30_spill] sm:$0xff]  ;;  %v5969_v14 = vld [vmem:[#allocation31_spill] sm:$0xff] }
 0x268   :  { %905 = vmatmul.mubr.f32.vlgmr.msra.gmra.mrb[2].mxu0 %v832_v7  ;;  %976 = vmatmul.mubr.f32.vlgmr.msra.gmra.mrb[2].mxu1 %v832_v7 }
 0x269   :  { %3836 = vmatpush1.bf16.msra.mxu0 %v5207_v19  ;;  %1046 = vmatprep.mubr.f32.mxu0 %v5953_v0 }
 0x26a   :  { %3838 = vmatprep.subr.bf16.mxu0 %v5211_v21  ;;  %3867 = vmatpush3.bf16.msra.mxu1 %v5281_v1 }
 0x26b   :  { %3868 = vmatprep.subr.bf16.mxu1 %v5954_v22  ;;  %3393 = vmatprep.mubr.msk.f32.mxu1 %vm4937_vm1, %v5953_v0 }
 0x26d   :  { %3840 = vmatpush1.bf16.msra.mxu0 %v5219_v30 }
 0x26e   :  { %3842 = vmatprep.subr.bf16.mxu0 %v5222_v31  ;;  %3870 = vmatpush3.bf16.msra.mxu1 %v5284_v11 }
 0x26f   :  { %3871 = vmatprep.subr.bf16.mxu1 %v5954_v22 }
 0x271   :  { %3844 = vmatpush1.bf16.msra.mxu0 %v5227_v43 }
 0x272   :  { %3846 = vmatprep.subr.bf16.mxu0 %v5230_v44  ;;  %3873 = vmatpush3.bf16.msra.mxu1 %v5289_v26 }
 0x273   :  { %3874 = vmatprep.subr.bf16.mxu1 %v5954_v22 }
 0x275   :  { %3848 = vmatpush1.bf16.msra.mxu0 %v5233_v54 }
 0x276   :  { %3850 = vmatprep.subr.bf16.mxu0 %v5236_v57  ;;  %3876 = vmatpush3.bf16.msra.mxu1 %v5293_v36 }
 0x277   :  { %3877 = vmatprep.subr.bf16.mxu1 %v5954_v22 }
 0x279   :  { %3852 = vmatpush1.bf16.msra.mxu0 %v5239_v4 }
 0x27a   :  { %3854 = vmatprep.subr.bf16.mxu0 %v5242_v6  ;;  %3879 = vmatpush3.bf16.msra.mxu1 %v5297_v53 }
 0x27b   :  { %3880 = vmatprep.subr.bf16.mxu1 %v5954_v22 }
 0x27d   :  { %3856 = vmatpush1.bf16.msra.mxu0 %v5245_v23 }
 0x27e   :  { %3858 = vmatprep.subr.bf16.mxu0 %v5248_v25  ;;  %3882 = vmatpush3.bf16.msra.mxu1 %v5301_v10 }
 0x27f   :  { %3883 = vmatprep.subr.bf16.mxu1 %v5954_v22 }
 0x281   :  { %3860 = vmatpush1.bf16.msra.mxu0 %v5251_v39 }
 0x282   :  { %3862 = vmatprep.subr.bf16.mxu0 %v5254_v40  ;;  %3885 = vmatpush3.bf16.msra.mxu1 %v5305_v27 }
 0x283   :  { %3886 = vmatprep.subr.bf16.mxu1 %v5954_v22 }
 0x285   :  { %3864 = vmatpush1.bf16.msra.mxu0 %v5257_v50 }
 0x286   :  { %3888 = vmatpush3.bf16.msra.mxu1 %v5309_v49  ;;  %3890 = vmatprep.subr.bf16.mxu0 %v5046_v9 }
 0x287   :  { %3922 = vmatprep.subr.bf16.mxu1 %v5069_v28 }
 0x288   :  { %1047 = vmatmul.mubr.f32.vlgmr.msra.gmra.mrb[2].mxu0 %v5327_v48 }
 0x289   :  { %3892 = vmatpush1.bf16.msra.mxu0 %v5060_v16  ;;  %1219 = vmatprep.mubr.f32.mxu0 %v5953_v0 }
 0x28a   :  { %3894 = vmatprep.subr.bf16.mxu0 %v5955_v63 }
 0x28d   :  { %3896 = vmatpush1.bf16.msra.mxu0 %v5956_v61 }
 0x28e   :  { %3898 = vmatprep.subr.bf16.mxu0 %v5957_v15 }
 0x291   :  { %3900 = vmatpush1.bf16.msra.mxu0 %v5958_v3 }
 0x292   :  { %3902 = vmatprep.subr.bf16.mxu0 %v5959_v35 }
 0x295   :  { %3904 = vmatpush1.bf16.msra.mxu0 %v5960_v33 }
 0x296   :  { %3906 = vmatprep.subr.bf16.mxu0 %v5961_v47 }
 0x299   :  { %3908 = vmatpush1.bf16.msra.mxu0 %v5962_v51 }
 0x29a   :  { %3910 = vmatprep.subr.bf16.mxu0 %v5963_v62 }
 0x29d   :  { %3912 = vmatpush1.bf16.msra.mxu0 %v5964_v2 }
 0x29e   :  { %3914 = vmatprep.subr.bf16.mxu0 %v5965_v13 }
 0x2a1   :  { %3916 = vmatpush1.bf16.msra.mxu0 %v5966_v17 }
 0x2a2   :  { %3918 = vmatprep.subr.bf16.mxu0 %v5967_v29 }
 0x2a5   :  { %3920 = vmatpush1.bf16.msra.mxu0 %v5968_v59 }
 0x2a6   :  { %3954 = vmatprep.subr.bf16.mxu0 %v5969_v14 }
 0x33b   :  { %v977_v7 = vpop.f32.mrb[2].mxu1 }
 0x33c   :  { %v979_v33 = vpop.f32.mrb[3].mxu1  ;;  %v4651_v13 = vadd.f32 %v977_v7, %v5322_v32  ;;  %v5976_v7 = vld [vmem:[#allocation22_spill] sm:$0xff] }
 0x35b   :  { %v1048_v35 = vpop.f32.mrb[2].mxu0 }
 0x35c   :  { %v4635_v47 = vadd.f32 %v1048_v35, %v5318_v45  ;;  %v1050_v51 = vpop.f32.mrb[3].mxu0 }
 0x35d   :  { %v4636_v62 = vadd.f32 %v1050_v51, %v5320_v52 }
 0x35e   :  { %v1058_v3 = vmul.f32 0.5, %v4635_v47 }
 0x35f   :  { %v1063_v2 = vmul.f32 0.5, %v4636_v62 }
 0x360   :  { %4737 = vtanh.f32 %v1058_v3 }
 0x361   :  { %4739 = vtanh.f32 %v1063_v2 }
 0x362   :  { %4741 = vtanh.f32 %v4651_v13  ;;  %v5971_v13 = vld [vmem:[#allocation17_spill] sm:$0xff] }
 0x36a   :  { %v4738_v29 = vpop.eup %4737 }
 0x36b   :  { %v4740_v17 = vpop.eup %4739  ;;  %v1060_v59 = vmul.f32 0.5, %v4738_v29  ;;  %v5973_v29 = vld [vmem:[#allocation19_spill] sm:$0xff] }
 0x36c   :  { %v1065_v15 = vmul.f32 0.5, %v4740_v17  ;;  %v4742_v61 = vpop.eup %4741  ;;  %v5972_v17 = vld [vmem:[#allocation18_spill] sm:$0xff] }
 0x36d   :  { %v1061_v14 = vadd.f32 0.5, %v1060_v59  ;;  %v5974_v59 = vld [vmem:[#allocation20_spill] sm:$0xff] }
 0x36e   :  { %v1066_v63 = vadd.f32 0.5, %v1065_v15 }
 0x36f   :  { %v1069_v16 = vmul.f32 %v4742_v61, %v1061_v14  ;;  %v5975_v14 = vld [vmem:[#allocation21_spill] sm:$0xff] }
 0x370   :  { %v1068_v35 = vmul.f32 %v1066_v63, %v5327_v48 }
 0x372   :  { %v5408_v45 = vadd.f32 %v1069_v16, %v1068_v35  ;;  %v4652_v16 = vadd.f32 %v979_v33, %v5347_v37  ;;  %v5970_v33 = vld [vmem:[#allocation16_spill] sm:$0xff]  ;;  %v5977_v35 = vld [vmem:[#allocation23_spill] sm:$0xff] }
 0x374   :  { %3394 = vmatmul.mubr.f32.vlgmr.msra.gmra.mrb[18].mxu1 %v5408_v45 }
 0x375   :  { %3924 = vmatpush1.bf16.msra.mxu1 %v5078_v34  ;;  %1290 = vmatprep.mubr.f32.mxu1 %v5953_v0 }
 0x376   :  { %3926 = vmatprep.subr.bf16.mxu1 %v5085_v41 }
 0x379   :  { %3928 = vmatpush1.bf16.msra.mxu1 %v5092_v46 }
 0x37a   :  { %3930 = vmatprep.subr.bf16.mxu1 %v5104_v55 }
 0x37d   :  { %3932 = vmatpush1.bf16.msra.mxu1 %v5108_v58 }
 0x37e   :  { %3934 = vmatprep.subr.bf16.mxu1 %v5123_v5 }
 0x381   :  { %3936 = vmatpush1.bf16.msra.mxu1 %v5127_v8 }
 0x382   :  { %3938 = vmatprep.subr.bf16.mxu1 %v5142_v20 }
 0x385   :  { %3940 = vmatpush1.bf16.msra.mxu1 %v5146_v24 }
 0x386   :  { %3942 = vmatprep.subr.bf16.mxu1 %v5161_v38 }
 0x389   :  { %3944 = vmatpush1.bf16.msra.mxu1 %v5165_v42 }
 0x38a   :  { %3946 = vmatprep.subr.bf16.mxu1 %v5180_v56 }
 0x38d   :  { %3948 = vmatpush1.bf16.msra.mxu1 %v5184_v60 }
 0x38e   :  { %3950 = vmatprep.subr.bf16.mxu1 %v5199_v12 }
 0x391   :  { %3952 = vmatpush1.bf16.msra.mxu1 %v5203_v18 }
 0x392   :  { %3985 = vmatprep.subr.bf16.mxu1 %v5954_v22 }
 0x447   :  { %v1137_v48 = vpop.f32.mrb[18].mxu1 }
 0x448   :  { %v1141_v63 = vadd.f32 %v4652_v16, %v1137_v48  ;;  %v3395_v61 = vpop.f32.mrb[19].mxu1  ;;  %v5978_v16 = vld [vmem:[#allocation24_spill] sm:$0xff]  ;;  %v5979_v48 = vld [vmem:[#allocation25_spill] sm:$0xff] }
 0x449   :  { %v5981_v61 = vld [vmem:[#allocation27_spill] sm:$0xff] }
 0x44a   :  { %v1142_v15 = vmul.f32 0.5, %v1141_v63  ;;  %v5980_v63 = vld [vmem:[#allocation26_spill] sm:$0xff] }
 0x44c   :  { %4743 = vtanh.f32 %v1142_v15  ;;  %v5982_v15 = vld [vmem:[#allocation28_spill] sm:$0xff] }
 0x44d   :  { %4745 = vtanh.f32 %v5408_v45 }
 0x456   :  { %v4744_v3 = vpop.eup %4743 }
 0x457   :  { %v1144_v47 = vmul.f32 0.5, %v4744_v3  ;;  %v4746_v62 = vpop.eup %4745  ;;  %v5983_v3 = vld [vmem:[#allocation29_spill] sm:$0xff] }
 0x459   :  { %v1145_v51 = vadd.f32 0.5, %v1144_v47  ;;  %v5984_v47 = vld [vmem:[#allocation30_spill] sm:$0xff] }
 0x45b   :  { %v1147_v2 = vmul.f32 %v4746_v62, %v1145_v51  ;;  %v5985_v51 = vld [vmem:[#allocation31_spill] sm:$0xff] }
 0x45d   :  { %1220 = vmatmul.mubr.f32.vlgmr.msra.gmra.mrb[4].mxu0 %v1147_v2  ;;  %1291 = vmatmul.mubr.f32.vlgmr.msra.gmra.mrb[4].mxu1 %v1147_v2 }
 0x45e   :  { %3956 = vmatpush1.bf16.msra.mxu0 %v5207_v19  ;;  %1361 = vmatprep.mubr.f32.mxu0 %v5953_v0 }
 0x45f   :  { %3958 = vmatprep.subr.bf16.mxu0 %v5211_v21  ;;  %3987 = vmatpush3.bf16.msra.mxu1 %v5281_v1 }
 0x460   :  { %3988 = vmatprep.subr.bf16.mxu1 %v5954_v22  ;;  %3428 = vmatprep.mubr.msk.f32.mxu1 %vm4937_vm1, %v5953_v0 }
 0x462   :  { %3960 = vmatpush1.bf16.msra.mxu0 %v5219_v30 }
 0x463   :  { %3962 = vmatprep.subr.bf16.mxu0 %v5222_v31  ;;  %3990 = vmatpush3.bf16.msra.mxu1 %v5284_v11 }
 0x464   :  { %3991 = vmatprep.subr.bf16.mxu1 %v5954_v22 }
 0x466   :  { %3964 = vmatpush1.bf16.msra.mxu0 %v5227_v43 }
 0x467   :  { %3966 = vmatprep.subr.bf16.mxu0 %v5230_v44  ;;  %3993 = vmatpush3.bf16.msra.mxu1 %v5289_v26 }
 0x468   :  { %3994 = vmatprep.subr.bf16.mxu1 %v5954_v22 }
 0x46a   :  { %3968 = vmatpush1.bf16.msra.mxu0 %v5233_v54 }
 0x46b   :  { %3970 = vmatprep.subr.bf16.mxu0 %v5236_v57  ;;  %3996 = vmatpush3.bf16.msra.mxu1 %v5293_v36 }
 0x46c   :  { %3997 = vmatprep.subr.bf16.mxu1 %v5954_v22 }
 0x46e   :  { %3972 = vmatpush1.bf16.msra.mxu0 %v5239_v4 }
 0x46f   :  { %3974 = vmatprep.subr.bf16.mxu0 %v5242_v6  ;;  %3999 = vmatpush3.bf16.msra.mxu1 %v5297_v53 }
 0x470   :  { %4000 = vmatprep.subr.bf16.mxu1 %v5954_v22 }
 0x472   :  { %3976 = vmatpush1.bf16.msra.mxu0 %v5245_v23 }
 0x473   :  { %3978 = vmatprep.subr.bf16.mxu0 %v5248_v25  ;;  %4002 = vmatpush3.bf16.msra.mxu1 %v5301_v10 }
 0x474   :  { %4003 = vmatprep.subr.bf16.mxu1 %v5954_v22 }
 0x476   :  { %3980 = vmatpush1.bf16.msra.mxu0 %v5251_v39 }
 0x477   :  { %3982 = vmatprep.subr.bf16.mxu0 %v5254_v40  ;;  %4005 = vmatpush3.bf16.msra.mxu1 %v5305_v27 }
 0x478   :  { %4006 = vmatprep.subr.bf16.mxu1 %v5954_v22 }
 0x47a   :  { %3984 = vmatpush1.bf16.msra.mxu0 %v5257_v50 }
 0x47b   :  { %4008 = vmatpush3.bf16.msra.mxu1 %v5309_v49  ;;  %4010 = vmatprep.subr.bf16.mxu0 %v5046_v9 }
 0x47c   :  { %4042 = vmatprep.subr.bf16.mxu1 %v5069_v28 }
 0x47d   :  { %1362 = vmatmul.mubr.f32.vlgmr.msra.gmra.mrb[4].mxu0 %v5408_v45 }
 0x47e   :  { %4012 = vmatpush1.bf16.msra.mxu0 %v5970_v33  ;;  %1534 = vmatprep.mubr.f32.mxu0 %v5953_v0 }
 0x47f   :  { %4014 = vmatprep.subr.bf16.mxu0 %v5971_v13 }
 0x482   :  { %4016 = vmatpush1.bf16.msra.mxu0 %v5972_v17 }
 0x483   :  { %4018 = vmatprep.subr.bf16.mxu0 %v5973_v29 }
 0x486   :  { %4020 = vmatpush1.bf16.msra.mxu0 %v5974_v59 }
 0x487   :  { %4022 = vmatprep.subr.bf16.mxu0 %v5975_v14 }
 0x48a   :  { %4024 = vmatpush1.bf16.msra.mxu0 %v5976_v7 }
 0x48b   :  { %4026 = vmatprep.subr.bf16.mxu0 %v5977_v35  ;;  %v5986_v35 = vld [vmem:[#allocation32_spill] sm:$0xff] }
 0x48e   :  { %4028 = vmatpush1.bf16.msra.mxu0 %v5978_v16 }
 0x48f   :  { %4030 = vmatprep.subr.bf16.mxu0 %v5979_v48 }
 0x492   :  { %4032 = vmatpush1.bf16.msra.mxu0 %v5980_v63 }
 0x493   :  { %4034 = vmatprep.subr.bf16.mxu0 %v5981_v61 }
 0x496   :  { %4036 = vmatpush1.bf16.msra.mxu0 %v5982_v15 }
 0x497   :  { %4038 = vmatprep.subr.bf16.mxu0 %v5983_v3 }
 0x49a   :  { %4040 = vmatpush1.bf16.msra.mxu0 %v5984_v47 }
 0x49b   :  { %4074 = vmatprep.subr.bf16.mxu0 %v5985_v51 }
 0x530   :  { %v1292_v62 = vpop.f32.mrb[4].mxu1 }
 0x531   :  { %v1294_v2 = vpop.f32.mrb[5].mxu1  ;;  %v4653_v61 = vadd.f32 %v1292_v62, %v5322_v32  ;;  %v5992_v62 = vld [vmem:[#allocation21_spill] sm:$0xff] }
 0x550   :  { %v1363_v7 = vpop.f32.mrb[4].mxu0 }
 0x551   :  { %v4637_v14 = vadd.f32 %v1363_v7, %v5986_v35  ;;  %v1365_v16 = vpop.f32.mrb[5].mxu0 }
 0x552   :  { %v4638_v48 = vadd.f32 %v1365_v16, %v5320_v52 }
 0x553   :  { %v1373_v59 = vmul.f32 0.5, %v4637_v14 }
 0x554   :  { %v1378_v63 = vmul.f32 0.5, %v4638_v48 }
 0x555   :  { %4747 = vtanh.f32 %v1373_v59 }
 0x556   :  { %4749 = vtanh.f32 %v1378_v63 }
 0x557   :  { %4751 = vtanh.f32 %v4653_v61  ;;  %v5987_v61 = vld [vmem:[#allocation16_spill] sm:$0xff] }
 0x55f   :  { %v4748_v3 = vpop.eup %4747 }
 0x560   :  { %v4750_v15 = vpop.eup %4749  ;;  %v1375_v47 = vmul.f32 0.5, %v4748_v3  ;;  %v5989_v3 = vld [vmem:[#allocation18_spill] sm:$0xff] }
 0x561   :  { %v1380_v29 = vmul.f32 0.5, %v4750_v15  ;;  %v4752_v17 = vpop.eup %4751  ;;  %v5988_v15 = vld [vmem:[#allocation17_spill] sm:$0xff] }
 0x562   :  { %v1376_v51 = vadd.f32 0.5, %v1375_v47  ;;  %v5990_v47 = vld [vmem:[#allocation19_spill] sm:$0xff] }
 0x563   :  { %v1381_v13 = vadd.f32 0.5, %v1380_v29 }
 0x564   :  { %v1384_v33 = vmul.f32 %v4752_v17, %v1376_v51  ;;  %v5991_v51 = vld [vmem:[#allocation20_spill] sm:$0xff] }
 0x565   :  { %v1383_v7 = vmul.f32 %v1381_v13, %v5408_v45  ;;  %v4654_v45 = vadd.f32 %v1294_v2, %v5347_v37  ;;  %v5993_v2 = vld [vmem:[#allocation22_spill] sm:$0xff] }
 0x567   :  { %v5487_v35 = vadd.f32 %v1384_v33, %v1383_v7  ;;  %v5994_v7 = vld [vmem:[#allocation23_spill] sm:$0xff] }
 0x569   :  { %3429 = vmatmul.mubr.f32.vlgmr.msra.gmra.mrb[20].mxu1 %v5487_v35 }
 0x56a   :  { %4044 = vmatpush1.bf16.msra.mxu1 %v5078_v34  ;;  %1605 = vmatprep.mubr.f32.mxu1 %v5953_v0 }
 0x56b   :  { %4046 = vmatprep.subr.bf16.mxu1 %v5085_v41 }
 0x56e   :  { %4048 = vmatpush1.bf16.msra.mxu1 %v5092_v46 }
 0x56f   :  { %4050 = vmatprep.subr.bf16.mxu1 %v5104_v55 }
 0x572   :  { %4052 = vmatpush1.bf16.msra.mxu1 %v5108_v58 }
 0x573   :  { %4054 = vmatprep.subr.bf16.mxu1 %v5123_v5 }
 0x576   :  { %4056 = vmatpush1.bf16.msra.mxu1 %v5127_v8 }
 0x577   :  { %4058 = vmatprep.subr.bf16.mxu1 %v5142_v20 }
 0x57a   :  { %4060 = vmatpush1.bf16.msra.mxu1 %v5146_v24 }
 0x57b   :  { %4062 = vmatprep.subr.bf16.mxu1 %v5161_v38 }
 0x57e   :  { %4064 = vmatpush1.bf16.msra.mxu1 %v5165_v42 }
 0x57f   :  { %4066 = vmatprep.subr.bf16.mxu1 %v5180_v56 }
 0x582   :  { %4068 = vmatpush1.bf16.msra.mxu1 %v5184_v60 }
 0x583   :  { %4070 = vmatprep.subr.bf16.mxu1 %v5199_v12 }
 0x586   :  { %4072 = vmatpush1.bf16.msra.mxu1 %v5203_v18 }
 0x587   :  { %4105 = vmatprep.subr.bf16.mxu1 %v5954_v22 }
 0x63c   :  { %v1452_v33 = vpop.f32.mrb[20].mxu1 }
 0x63d   :  { %v1456_v13 = vadd.f32 %v4654_v45, %v1452_v33  ;;  %v3430_v17 = vpop.f32.mrb[21].mxu1  ;;  %v5995_v45 = vld [vmem:[#allocation24_spill] sm:$0xff]  ;;  %v5996_v33 = vld [vmem:[#allocation25_spill] sm:$0xff] }
 0x63e   :  { %v5998_v17 = vld [vmem:[#allocation27_spill] sm:$0xff] }
 0x63f   :  { %v1457_v29 = vmul.f32 0.5, %v1456_v13  ;;  %v5997_v13 = vld [vmem:[#allocation26_spill] sm:$0xff] }
 0x641   :  { %4753 = vtanh.f32 %v1457_v29  ;;  %v5999_v29 = vld [vmem:[#allocation28_spill] sm:$0xff] }
 0x642   :  { %4755 = vtanh.f32 %v5487_v35 }
 0x64b   :  { %v4754_v59 = vpop.eup %4753 }
 0x64c   :  { %v1459_v14 = vmul.f32 0.5, %v4754_v59  ;;  %v4756_v48 = vpop.eup %4755  ;;  %v6000_v59 = vld [vmem:[#allocation29_spill] sm:$0xff] }
 0x64e   :  { %v1460_v16 = vadd.f32 0.5, %v1459_v14  ;;  %v6001_v14 = vld [vmem:[#allocation30_spill] sm:$0xff] }
 0x650   :  { %v1462_v63 = vmul.f32 %v4756_v48, %v1460_v16  ;;  %v6002_v16 = vld [vmem:[#allocation31_spill] sm:$0xff] }
 0x652   :  { %1535 = vmatmul.mubr.f32.vlgmr.msra.gmra.mrb[6].mxu0 %v1462_v63  ;;  %1606 = vmatmul.mubr.f32.vlgmr.msra.gmra.mrb[6].mxu1 %v1462_v63 }
 0x653   :  { %4076 = vmatpush1.bf16.msra.mxu0 %v5207_v19  ;;  %1676 = vmatprep.mubr.f32.mxu0 %v5953_v0 }
 0x654   :  { %4078 = vmatprep.subr.bf16.mxu0 %v5211_v21  ;;  %4107 = vmatpush3.bf16.msra.mxu1 %v5281_v1 }
 0x655   :  { %4108 = vmatprep.subr.bf16.mxu1 %v5954_v22  ;;  %3463 = vmatprep.mubr.msk.f32.mxu1 %vm4937_vm1, %v5953_v0 }
 0x657   :  { %4080 = vmatpush1.bf16.msra.mxu0 %v5219_v30 }
 0x658   :  { %4082 = vmatprep.subr.bf16.mxu0 %v5222_v31  ;;  %4110 = vmatpush3.bf16.msra.mxu1 %v5284_v11 }
 0x659   :  { %4111 = vmatprep.subr.bf16.mxu1 %v5954_v22 }
 0x65b   :  { %4084 = vmatpush1.bf16.msra.mxu0 %v5227_v43 }
 0x65c   :  { %4086 = vmatprep.subr.bf16.mxu0 %v5230_v44  ;;  %4113 = vmatpush3.bf16.msra.mxu1 %v5289_v26 }
 0x65d   :  { %4114 = vmatprep.subr.bf16.mxu1 %v5954_v22 }
 0x65f   :  { %4088 = vmatpush1.bf16.msra.mxu0 %v5233_v54 }
 0x660   :  { %4090 = vmatprep.subr.bf16.mxu0 %v5236_v57  ;;  %4116 = vmatpush3.bf16.msra.mxu1 %v5293_v36 }
 0x661   :  { %4117 = vmatprep.subr.bf16.mxu1 %v5954_v22 }
 0x663   :  { %4092 = vmatpush1.bf16.msra.mxu0 %v5239_v4 }
 0x664   :  { %4094 = vmatprep.subr.bf16.mxu0 %v5242_v6  ;;  %4119 = vmatpush3.bf16.msra.mxu1 %v5297_v53 }
 0x665   :  { %4120 = vmatprep.subr.bf16.mxu1 %v5954_v22 }
 0x667   :  { %4096 = vmatpush1.bf16.msra.mxu0 %v5245_v23 }
 0x668   :  { %4098 = vmatprep.subr.bf16.mxu0 %v5248_v25  ;;  %4122 = vmatpush3.bf16.msra.mxu1 %v5301_v10 }
 0x669   :  { %4123 = vmatprep.subr.bf16.mxu1 %v5954_v22 }
 0x66b   :  { %4100 = vmatpush1.bf16.msra.mxu0 %v5251_v39 }
 0x66c   :  { %4102 = vmatprep.subr.bf16.mxu0 %v5254_v40  ;;  %4125 = vmatpush3.bf16.msra.mxu1 %v5305_v27 }
 0x66d   :  { %4126 = vmatprep.subr.bf16.mxu1 %v5954_v22 }
 0x66f   :  { %4104 = vmatpush1.bf16.msra.mxu0 %v5257_v50 }
 0x670   :  { %4128 = vmatpush3.bf16.msra.mxu1 %v5309_v49  ;;  %4130 = vmatprep.subr.bf16.mxu0 %v5046_v9 }
 0x671   :  { %4162 = vmatprep.subr.bf16.mxu1 %v5069_v28 }
 0x672   :  { %1677 = vmatmul.mubr.f32.vlgmr.msra.gmra.mrb[6].mxu0 %v5487_v35 }
 0x673   :  { %4132 = vmatpush1.bf16.msra.mxu0 %v5987_v61  ;;  %1849 = vmatprep.mubr.f32.mxu0 %v5953_v0 }
 0x674   :  { %4134 = vmatprep.subr.bf16.mxu0 %v5988_v15 }
 0x677   :  { %4136 = vmatpush1.bf16.msra.mxu0 %v5989_v3 }
 0x678   :  { %4138 = vmatprep.subr.bf16.mxu0 %v5990_v47 }
 0x67b   :  { %4140 = vmatpush1.bf16.msra.mxu0 %v5991_v51 }
 0x67c   :  { %4142 = vmatprep.subr.bf16.mxu0 %v5992_v62 }
 0x67f   :  { %4144 = vmatpush1.bf16.msra.mxu0 %v5993_v2 }
 0x680   :  { %4146 = vmatprep.subr.bf16.mxu0 %v5994_v7  ;;  %v6003_v7 = vld [vmem:[#allocation32_spill] sm:$0xff] }
 0x683   :  { %4148 = vmatpush1.bf16.msra.mxu0 %v5995_v45 }
 0x684   :  { %4150 = vmatprep.subr.bf16.mxu0 %v5996_v33 }
 0x687   :  { %4152 = vmatpush1.bf16.msra.mxu0 %v5997_v13 }
 0x688   :  { %4154 = vmatprep.subr.bf16.mxu0 %v5998_v17 }
 0x68b   :  { %4156 = vmatpush1.bf16.msra.mxu0 %v5999_v29 }
 0x68c   :  { %4158 = vmatprep.subr.bf16.mxu0 %v6000_v59 }
 0x68f   :  { %4160 = vmatpush1.bf16.msra.mxu0 %v6001_v14 }
 0x690   :  { %4194 = vmatprep.subr.bf16.mxu0 %v6002_v16 }
 0x725   :  { %v1607_v48 = vpop.f32.mrb[6].mxu1 }
 0x726   :  { %v1609_v63 = vpop.f32.mrb[7].mxu1  ;;  %v4655_v17 = vadd.f32 %v1607_v48, %v5322_v32  ;;  %v6009_v48 = vld [vmem:[#allocation21_spill] sm:$0xff] }
 0x745   :  { %v1678_v2 = vpop.f32.mrb[6].mxu0 }
 0x746   :  { %v4639_v62 = vadd.f32 %v1678_v2, %v6003_v7  ;;  %v1680_v45 = vpop.f32.mrb[7].mxu0 }
 0x747   :  { %v4640_v33 = vadd.f32 %v1680_v45, %v5320_v52 }
 0x748   :  { %v1688_v51 = vmul.f32 0.5, %v4639_v62 }
 0x749   :  { %v1693_v13 = vmul.f32 0.5, %v4640_v33 }
 0x74a   :  { %4757 = vtanh.f32 %v1688_v51 }
 0x74b   :  { %4759 = vtanh.f32 %v1693_v13 }
 0x74c   :  { %4761 = vtanh.f32 %v4655_v17  ;;  %v6004_v17 = vld [vmem:[#allocation16_spill] sm:$0xff] }
 0x754   :  { %v4758_v59 = vpop.eup %4757 }
 0x755   :  { %v4760_v29 = vpop.eup %4759  ;;  %v1690_v14 = vmul.f32 0.5, %v4758_v59  ;;  %v6006_v59 = vld [vmem:[#allocation18_spill] sm:$0xff] }
 0x756   :  { %v1695_v47 = vmul.f32 0.5, %v4760_v29  ;;  %v4762_v3 = vpop.eup %4761  ;;  %v6005_v29 = vld [vmem:[#allocation17_spill] sm:$0xff] }
 0x757   :  { %v1691_v16 = vadd.f32 0.5, %v1690_v14  ;;  %v6007_v14 = vld [vmem:[#allocation19_spill] sm:$0xff] }
 0x758   :  { %v1696_v15 = vadd.f32 0.5, %v1695_v47 }
 0x759   :  { %v1699_v61 = vmul.f32 %v4762_v3, %v1691_v16  ;;  %v6008_v16 = vld [vmem:[#allocation20_spill] sm:$0xff] }
 0x75a   :  { %v1698_v2 = vmul.f32 %v1696_v15, %v5487_v35  ;;  %v4656_v35 = vadd.f32 %v1609_v63, %v5347_v37  ;;  %v6010_v63 = vld [vmem:[#allocation22_spill] sm:$0xff] }
 0x75c   :  { %v5566_v7 = vadd.f32 %v1699_v61, %v1698_v2  ;;  %v6011_v2 = vld [vmem:[#allocation23_spill] sm:$0xff] }
 0x75e   :  { %3464 = vmatmul.mubr.f32.vlgmr.msra.gmra.mrb[22].mxu1 %v5566_v7 }
 0x75f   :  { %4164 = vmatpush1.bf16.msra.mxu1 %v5078_v34  ;;  %1920 = vmatprep.mubr.f32.mxu1 %v5953_v0 }
 0x760   :  { %4166 = vmatprep.subr.bf16.mxu1 %v5085_v41 }
 0x763   :  { %4168 = vmatpush1.bf16.msra.mxu1 %v5092_v46 }
 0x764   :  { %4170 = vmatprep.subr.bf16.mxu1 %v5104_v55 }
 0x767   :  { %4172 = vmatpush1.bf16.msra.mxu1 %v5108_v58 }
 0x768   :  { %4174 = vmatprep.subr.bf16.mxu1 %v5123_v5 }
 0x76b   :  { %4176 = vmatpush1.bf16.msra.mxu1 %v5127_v8 }
 0x76c   :  { %4178 = vmatprep.subr.bf16.mxu1 %v5142_v20 }
 0x76f   :  { %4180 = vmatpush1.bf16.msra.mxu1 %v5146_v24 }
 0x770   :  { %4182 = vmatprep.subr.bf16.mxu1 %v5161_v38 }
 0x773   :  { %4184 = vmatpush1.bf16.msra.mxu1 %v5165_v42 }
 0x774   :  { %4186 = vmatprep.subr.bf16.mxu1 %v5180_v56 }
 0x777   :  { %4188 = vmatpush1.bf16.msra.mxu1 %v5184_v60 }
 0x778   :  { %4190 = vmatprep.subr.bf16.mxu1 %v5199_v12 }
 0x77b   :  { %4192 = vmatpush1.bf16.msra.mxu1 %v5203_v18 }
 0x77c   :  { %4225 = vmatprep.subr.bf16.mxu1 %v5954_v22 }
 0x831   :  { %v1767_v61 = vpop.f32.mrb[22].mxu1 }
 0x832   :  { %v1771_v15 = vadd.f32 %v4656_v35, %v1767_v61  ;;  %v3465_v3 = vpop.f32.mrb[23].mxu1  ;;  %v6012_v35 = vld [vmem:[#allocation24_spill] sm:$0xff]  ;;  %v6013_v61 = vld [vmem:[#allocation25_spill] sm:$0xff] }
 0x833   :  { %v6015_v3 = vld [vmem:[#allocation27_spill] sm:$0xff] }
 0x834   :  { %v1772_v47 = vmul.f32 0.5, %v1771_v15  ;;  %v6014_v15 = vld [vmem:[#allocation26_spill] sm:$0xff] }
 0x836   :  { %4763 = vtanh.f32 %v1772_v47  ;;  %v6016_v47 = vld [vmem:[#allocation28_spill] sm:$0xff] }
 0x837   :  { %4765 = vtanh.f32 %v5566_v7 }
 0x840   :  { %v4764_v51 = vpop.eup %4763 }
 0x841   :  { %v1774_v62 = vmul.f32 0.5, %v4764_v51  ;;  %v4766_v33 = vpop.eup %4765  ;;  %v6017_v51 = vld [vmem:[#allocation29_spill] sm:$0xff] }
 0x843   :  { %v1775_v45 = vadd.f32 0.5, %v1774_v62  ;;  %v6018_v62 = vld [vmem:[#allocation30_spill] sm:$0xff] }
 0x845   :  { %v1777_v13 = vmul.f32 %v4766_v33, %v1775_v45  ;;  %v6019_v45 = vld [vmem:[#allocation31_spill] sm:$0xff] }
 0x847   :  { %1850 = vmatmul.mubr.f32.vlgmr.msra.gmra.mrb[8].mxu0 %v1777_v13  ;;  %1921 = vmatmul.mubr.f32.vlgmr.msra.gmra.mrb[8].mxu1 %v1777_v13 }
 0x848   :  { %4196 = vmatpush1.bf16.msra.mxu0 %v5207_v19  ;;  %1991 = vmatprep.mubr.f32.mxu0 %v5953_v0 }
 0x849   :  { %4198 = vmatprep.subr.bf16.mxu0 %v5211_v21  ;;  %4227 = vmatpush3.bf16.msra.mxu1 %v5281_v1 }
 0x84a   :  { %4228 = vmatprep.subr.bf16.mxu1 %v5954_v22  ;;  %3498 = vmatprep.mubr.msk.f32.mxu1 %vm4937_vm1, %v5953_v0 }
 0x84c   :  { %4200 = vmatpush1.bf16.msra.mxu0 %v5219_v30 }
 0x84d   :  { %4202 = vmatprep.subr.bf16.mxu0 %v5222_v31  ;;  %4230 = vmatpush3.bf16.msra.mxu1 %v5284_v11 }
 0x84e   :  { %4231 = vmatprep.subr.bf16.mxu1 %v5954_v22 }
 0x850   :  { %4204 = vmatpush1.bf16.msra.mxu0 %v5227_v43 }
 0x851   :  { %4206 = vmatprep.subr.bf16.mxu0 %v5230_v44  ;;  %4233 = vmatpush3.bf16.msra.mxu1 %v5289_v26 }
 0x852   :  { %4234 = vmatprep.subr.bf16.mxu1 %v5954_v22 }
 0x854   :  { %4208 = vmatpush1.bf16.msra.mxu0 %v5233_v54 }
 0x855   :  { %4210 = vmatprep.subr.bf16.mxu0 %v5236_v57  ;;  %4236 = vmatpush3.bf16.msra.mxu1 %v5293_v36 }
 0x856   :  { %4237 = vmatprep.subr.bf16.mxu1 %v5954_v22 }
 0x858   :  { %4212 = vmatpush1.bf16.msra.mxu0 %v5239_v4 }
 0x859   :  { %4214 = vmatprep.subr.bf16.mxu0 %v5242_v6  ;;  %4239 = vmatpush3.bf16.msra.mxu1 %v5297_v53 }
 0x85a   :  { %4240 = vmatprep.subr.bf16.mxu1 %v5954_v22 }
 0x85c   :  { %4216 = vmatpush1.bf16.msra.mxu0 %v5245_v23 }
 0x85d   :  { %4218 = vmatprep.subr.bf16.mxu0 %v5248_v25  ;;  %4242 = vmatpush3.bf16.msra.mxu1 %v5301_v10 }
 0x85e   :  { %4243 = vmatprep.subr.bf16.mxu1 %v5954_v22 }
 0x860   :  { %4220 = vmatpush1.bf16.msra.mxu0 %v5251_v39 }
 0x861   :  { %4222 = vmatprep.subr.bf16.mxu0 %v5254_v40  ;;  %4245 = vmatpush3.bf16.msra.mxu1 %v5305_v27 }
 0x862   :  { %4246 = vmatprep.subr.bf16.mxu1 %v5954_v22 }
 0x864   :  { %4224 = vmatpush1.bf16.msra.mxu0 %v5257_v50 }
 0x865   :  { %4248 = vmatpush3.bf16.msra.mxu1 %v5309_v49  ;;  %4250 = vmatprep.subr.bf16.mxu0 %v5046_v9 }
 0x866   :  { %4282 = vmatprep.subr.bf16.mxu1 %v5069_v28 }
 0x867   :  { %1992 = vmatmul.mubr.f32.vlgmr.msra.gmra.mrb[8].mxu0 %v5566_v7 }
 0x868   :  { %4252 = vmatpush1.bf16.msra.mxu0 %v6004_v17  ;;  %2164 = vmatprep.mubr.f32.mxu0 %v5953_v0 }
 0x869   :  { %4254 = vmatprep.subr.bf16.mxu0 %v6005_v29 }
 0x86c   :  { %4256 = vmatpush1.bf16.msra.mxu0 %v6006_v59 }
 0x86d   :  { %4258 = vmatprep.subr.bf16.mxu0 %v6007_v14 }
 0x870   :  { %4260 = vmatpush1.bf16.msra.mxu0 %v6008_v16 }
 0x871   :  { %4262 = vmatprep.subr.bf16.mxu0 %v6009_v48 }
 0x874   :  { %4264 = vmatpush1.bf16.msra.mxu0 %v6010_v63 }
 0x875   :  { %4266 = vmatprep.subr.bf16.mxu0 %v6011_v2  ;;  %v6020_v2 = vld [vmem:[#allocation32_spill] sm:$0xff] }
 0x878   :  { %4268 = vmatpush1.bf16.msra.mxu0 %v6012_v35 }
 0x879   :  { %4270 = vmatprep.subr.bf16.mxu0 %v6013_v61 }
 0x87c   :  { %4272 = vmatpush1.bf16.msra.mxu0 %v6014_v15 }
 0x87d   :  { %4274 = vmatprep.subr.bf16.mxu0 %v6015_v3 }
 0x880   :  { %4276 = vmatpush1.bf16.msra.mxu0 %v6016_v47 }
 0x881   :  { %4278 = vmatprep.subr.bf16.mxu0 %v6017_v51 }
 0x884   :  { %4280 = vmatpush1.bf16.msra.mxu0 %v6018_v62 }
 0x885   :  { %4314 = vmatprep.subr.bf16.mxu0 %v6019_v45 }
 0x91a   :  { %v1922_v33 = vpop.f32.mrb[8].mxu1 }
 0x91b   :  { %v1924_v13 = vpop.f32.mrb[9].mxu1  ;;  %v4657_v3 = vadd.f32 %v1922_v33, %v5322_v32  ;;  %v6026_v33 = vld [vmem:[#allocation21_spill] sm:$0xff] }
 0x93a   :  { %v1993_v63 = vpop.f32.mrb[8].mxu0 }
 0x93b   :  { %v4641_v48 = vadd.f32 %v1993_v63, %v6020_v2  ;;  %v1995_v35 = vpop.f32.mrb[9].mxu0 }
 0x93c   :  { %v4642_v61 = vadd.f32 %v1995_v35, %v5320_v52 }
 0x93d   :  { %v2003_v16 = vmul.f32 0.5, %v4641_v48 }
 0x93e   :  { %v2008_v15 = vmul.f32 0.5, %v4642_v61 }
 0x93f   :  { %4767 = vtanh.f32 %v2003_v16 }
 0x940   :  { %4769 = vtanh.f32 %v2008_v15 }
 0x941   :  { %4771 = vtanh.f32 %v4657_v3  ;;  %v6021_v3 = vld [vmem:[#allocation16_spill] sm:$0xff] }
 0x949   :  { %v4768_v51 = vpop.eup %4767 }
 0x94a   :  { %v4770_v47 = vpop.eup %4769  ;;  %v2005_v62 = vmul.f32 0.5, %v4768_v51  ;;  %v6023_v51 = vld [vmem:[#allocation18_spill] sm:$0xff] }
 0x94b   :  { %v2010_v14 = vmul.f32 0.5, %v4770_v47  ;;  %v4772_v59 = vpop.eup %4771  ;;  %v6022_v47 = vld [vmem:[#allocation17_spill] sm:$0xff] }
 0x94c   :  { %v2006_v45 = vadd.f32 0.5, %v2005_v62  ;;  %v6024_v62 = vld [vmem:[#allocation19_spill] sm:$0xff] }
 0x94d   :  { %v2011_v29 = vadd.f32 0.5, %v2010_v14 }
 0x94e   :  { %v2014_v17 = vmul.f32 %v4772_v59, %v2006_v45  ;;  %v6025_v45 = vld [vmem:[#allocation20_spill] sm:$0xff] }
 0x94f   :  { %v2013_v63 = vmul.f32 %v2011_v29, %v5566_v7  ;;  %v4658_v7 = vadd.f32 %v1924_v13, %v5347_v37  ;;  %v6027_v13 = vld [vmem:[#allocation22_spill] sm:$0xff] }
 0x951   :  { %v5645_v2 = vadd.f32 %v2014_v17, %v2013_v63  ;;  %v6028_v63 = vld [vmem:[#allocation23_spill] sm:$0xff] }
 0x953   :  { %3499 = vmatmul.mubr.f32.vlgmr.msra.gmra.mrb[24].mxu1 %v5645_v2 }
 0x954   :  { %4284 = vmatpush1.bf16.msra.mxu1 %v5078_v34  ;;  %2235 = vmatprep.mubr.f32.mxu1 %v5953_v0 }
 0x955   :  { %4286 = vmatprep.subr.bf16.mxu1 %v5085_v41 }
 0x958   :  { %4288 = vmatpush1.bf16.msra.mxu1 %v5092_v46 }
 0x959   :  { %4290 = vmatprep.subr.bf16.mxu1 %v5104_v55 }
 0x95c   :  { %4292 = vmatpush1.bf16.msra.mxu1 %v5108_v58 }
 0x95d   :  { %4294 = vmatprep.subr.bf16.mxu1 %v5123_v5 }
 0x960   :  { %4296 = vmatpush1.bf16.msra.mxu1 %v5127_v8 }
 0x961   :  { %4298 = vmatprep.subr.bf16.mxu1 %v5142_v20 }
 0x964   :  { %4300 = vmatpush1.bf16.msra.mxu1 %v5146_v24 }
 0x965   :  { %4302 = vmatprep.subr.bf16.mxu1 %v5161_v38 }
 0x968   :  { %4304 = vmatpush1.bf16.msra.mxu1 %v5165_v42 }
 0x969   :  { %4306 = vmatprep.subr.bf16.mxu1 %v5180_v56 }
 0x96c   :  { %4308 = vmatpush1.bf16.msra.mxu1 %v5184_v60 }
 0x96d   :  { %4310 = vmatprep.subr.bf16.mxu1 %v5199_v12 }
 0x970   :  { %4312 = vmatpush1.bf16.msra.mxu1 %v5203_v18 }
 0x971   :  { %4345 = vmatprep.subr.bf16.mxu1 %v5954_v22 }
 0xa26   :  { %v2082_v17 = vpop.f32.mrb[24].mxu1 }
 0xa27   :  { %v2086_v29 = vadd.f32 %v4658_v7, %v2082_v17  ;;  %v3500_v59 = vpop.f32.mrb[25].mxu1  ;;  %v6029_v7 = vld [vmem:[#allocation24_spill] sm:$0xff]  ;;  %v6030_v17 = vld [vmem:[#allocation25_spill] sm:$0xff] }
 0xa28   :  { %v6032_v59 = vld [vmem:[#allocation27_spill] sm:$0xff] }
 0xa29   :  { %v2087_v14 = vmul.f32 0.5, %v2086_v29  ;;  %v6031_v29 = vld [vmem:[#allocation26_spill] sm:$0xff] }
 0xa2b   :  { %4773 = vtanh.f32 %v2087_v14  ;;  %v6033_v14 = vld [vmem:[#allocation28_spill] sm:$0xff] }
 0xa2c   :  { %4775 = vtanh.f32 %v5645_v2 }
 0xa35   :  { %v4774_v16 = vpop.eup %4773 }
 0xa36   :  { %v2089_v48 = vmul.f32 0.5, %v4774_v16  ;;  %v4776_v61 = vpop.eup %4775  ;;  %v6034_v16 = vld [vmem:[#allocation29_spill] sm:$0xff] }
 0xa38   :  { %v2090_v35 = vadd.f32 0.5, %v2089_v48  ;;  %v6035_v48 = vld [vmem:[#allocation30_spill] sm:$0xff] }
 0xa3a   :  { %v2092_v15 = vmul.f32 %v4776_v61, %v2090_v35  ;;  %v6036_v35 = vld [vmem:[#allocation31_spill] sm:$0xff] }
 0xa3c   :  { %2165 = vmatmul.mubr.f32.vlgmr.msra.gmra.mrb[10].mxu0 %v2092_v15  ;;  %2236 = vmatmul.mubr.f32.vlgmr.msra.gmra.mrb[10].mxu1 %v2092_v15 }
 0xa3d   :  { %4316 = vmatpush1.bf16.msra.mxu0 %v5207_v19  ;;  %2306 = vmatprep.mubr.f32.mxu0 %v5953_v0 }
 0xa3e   :  { %4318 = vmatprep.subr.bf16.mxu0 %v5211_v21  ;;  %4347 = vmatpush3.bf16.msra.mxu1 %v5281_v1 }
 0xa3f   :  { %4348 = vmatprep.subr.bf16.mxu1 %v5954_v22  ;;  %3533 = vmatprep.mubr.msk.f32.mxu1 %vm4937_vm1, %v5953_v0 }
 0xa41   :  { %4320 = vmatpush1.bf16.msra.mxu0 %v5219_v30 }
 0xa42   :  { %4322 = vmatprep.subr.bf16.mxu0 %v5222_v31  ;;  %4350 = vmatpush3.bf16.msra.mxu1 %v5284_v11 }
 0xa43   :  { %4351 = vmatprep.subr.bf16.mxu1 %v5954_v22 }
 0xa45   :  { %4324 = vmatpush1.bf16.msra.mxu0 %v5227_v43 }
 0xa46   :  { %4326 = vmatprep.subr.bf16.mxu0 %v5230_v44  ;;  %4353 = vmatpush3.bf16.msra.mxu1 %v5289_v26 }
 0xa47   :  { %4354 = vmatprep.subr.bf16.mxu1 %v5954_v22 }
 0xa49   :  { %4328 = vmatpush1.bf16.msra.mxu0 %v5233_v54 }
 0xa4a   :  { %4330 = vmatprep.subr.bf16.mxu0 %v5236_v57  ;;  %4356 = vmatpush3.bf16.msra.mxu1 %v5293_v36 }
 0xa4b   :  { %4357 = vmatprep.subr.bf16.mxu1 %v5954_v22 }
 0xa4d   :  { %4332 = vmatpush1.bf16.msra.mxu0 %v5239_v4 }
 0xa4e   :  { %4334 = vmatprep.subr.bf16.mxu0 %v5242_v6  ;;  %4359 = vmatpush3.bf16.msra.mxu1 %v5297_v53 }
 0xa4f   :  { %4360 = vmatprep.subr.bf16.mxu1 %v5954_v22 }
 0xa51   :  { %4336 = vmatpush1.bf16.msra.mxu0 %v5245_v23 }
 0xa52   :  { %4338 = vmatprep.subr.bf16.mxu0 %v5248_v25  ;;  %4362 = vmatpush3.bf16.msra.mxu1 %v5301_v10 }
 0xa53   :  { %4363 = vmatprep.subr.bf16.mxu1 %v5954_v22 }
 0xa55   :  { %4340 = vmatpush1.bf16.msra.mxu0 %v5251_v39 }
 0xa56   :  { %4342 = vmatprep.subr.bf16.mxu0 %v5254_v40  ;;  %4365 = vmatpush3.bf16.msra.mxu1 %v5305_v27 }
 0xa57   :  { %4366 = vmatprep.subr.bf16.mxu1 %v5954_v22 }
 0xa59   :  { %4344 = vmatpush1.bf16.msra.mxu0 %v5257_v50 }
 0xa5a   :  { %4368 = vmatpush3.bf16.msra.mxu1 %v5309_v49  ;;  %4370 = vmatprep.subr.bf16.mxu0 %v5046_v9 }
 0xa5b   :  { %4402 = vmatprep.subr.bf16.mxu1 %v5069_v28 }
 0xa5c   :  { %2307 = vmatmul.mubr.f32.vlgmr.msra.gmra.mrb[10].mxu0 %v5645_v2 }
 0xa5d   :  { %4372 = vmatpush1.bf16.msra.mxu0 %v6021_v3  ;;  %2479 = vmatprep.mubr.f32.mxu0 %v5953_v0 }
 0xa5e   :  { %4374 = vmatprep.subr.bf16.mxu0 %v6022_v47 }
 0xa61   :  { %4376 = vmatpush1.bf16.msra.mxu0 %v6023_v51 }
 0xa62   :  { %4378 = vmatprep.subr.bf16.mxu0 %v6024_v62 }
 0xa65   :  { %4380 = vmatpush1.bf16.msra.mxu0 %v6025_v45 }
 0xa66   :  { %4382 = vmatprep.subr.bf16.mxu0 %v6026_v33 }
 0xa69   :  { %4384 = vmatpush1.bf16.msra.mxu0 %v6027_v13 }
 0xa6a   :  { %4386 = vmatprep.subr.bf16.mxu0 %v6028_v63  ;;  %v6037_v63 = vld [vmem:[#allocation32_spill] sm:$0xff] }
 0xa6d   :  { %4388 = vmatpush1.bf16.msra.mxu0 %v6029_v7 }
 0xa6e   :  { %4390 = vmatprep.subr.bf16.mxu0 %v6030_v17 }
 0xa71   :  { %4392 = vmatpush1.bf16.msra.mxu0 %v6031_v29 }
 0xa72   :  { %4394 = vmatprep.subr.bf16.mxu0 %v6032_v59 }
 0xa75   :  { %4396 = vmatpush1.bf16.msra.mxu0 %v6033_v14 }
 0xa76   :  { %4398 = vmatprep.subr.bf16.mxu0 %v6034_v16 }
 0xa79   :  { %4400 = vmatpush1.bf16.msra.mxu0 %v6035_v48 }
 0xa7a   :  { %4434 = vmatprep.subr.bf16.mxu0 %v6036_v35 }
 0xb0f   :  { %v2237_v61 = vpop.f32.mrb[10].mxu1 }
 0xb10   :  { %v2239_v15 = vpop.f32.mrb[11].mxu1  ;;  %v4659_v59 = vadd.f32 %v2237_v61, %v5322_v32  ;;  %v6043_v61 = vld [vmem:[#allocation21_spill] sm:$0xff] }
 0xb2f   :  { %v2308_v13 = vpop.f32.mrb[10].mxu0 }
 0xb30   :  { %v4643_v33 = vadd.f32 %v2308_v13, %v6037_v63  ;;  %v2310_v7 = vpop.f32.mrb[11].mxu0 }
 0xb31   :  { %v4644_v17 = vadd.f32 %v2310_v7, %v5320_v52 }
 0xb32   :  { %v2318_v45 = vmul.f32 0.5, %v4643_v33 }
 0xb33   :  { %v2323_v29 = vmul.f32 0.5, %v4644_v17 }
 0xb34   :  { %4777 = vtanh.f32 %v2318_v45 }
 0xb35   :  { %4779 = vtanh.f32 %v2323_v29 }
 0xb36   :  { %4781 = vtanh.f32 %v4659_v59  ;;  %v6038_v59 = vld [vmem:[#allocation16_spill] sm:$0xff] }
 0xb3e   :  { %v4778_v16 = vpop.eup %4777 }
 0xb3f   :  { %v4780_v14 = vpop.eup %4779  ;;  %v2320_v48 = vmul.f32 0.5, %v4778_v16  ;;  %v6040_v16 = vld [vmem:[#allocation18_spill] sm:$0xff] }
 0xb40   :  { %v2325_v62 = vmul.f32 0.5, %v4780_v14  ;;  %v4782_v51 = vpop.eup %4781  ;;  %v6039_v14 = vld [vmem:[#allocation17_spill] sm:$0xff] }
 0xb41   :  { %v2321_v35 = vadd.f32 0.5, %v2320_v48  ;;  %v6041_v48 = vld [vmem:[#allocation19_spill] sm:$0xff] }
 0xb42   :  { %v2326_v47 = vadd.f32 0.5, %v2325_v62 }
 0xb43   :  { %v2329_v3 = vmul.f32 %v4782_v51, %v2321_v35  ;;  %v6042_v35 = vld [vmem:[#allocation20_spill] sm:$0xff] }
 0xb44   :  { %v2328_v13 = vmul.f32 %v2326_v47, %v5645_v2  ;;  %v4660_v2 = vadd.f32 %v2239_v15, %v5347_v37  ;;  %v6044_v15 = vld [vmem:[#allocation22_spill] sm:$0xff] }
 0xb46   :  { %v5724_v63 = vadd.f32 %v2329_v3, %v2328_v13  ;;  %v6047_v13 = vld [vmem:[#allocation25_spill] sm:$0xff] }
 0xb48   :  { %3534 = vmatmul.mubr.f32.vlgmr.msra.gmra.mrb[26].mxu1 %v5724_v63 }
 0xb49   :  { %4404 = vmatpush1.bf16.msra.mxu1 %v5078_v34  ;;  %2550 = vmatprep.mubr.f32.mxu1 %v5953_v0 }
 0xb4a   :  { %4406 = vmatprep.subr.bf16.mxu1 %v5085_v41 }
 0xb4d   :  { %4408 = vmatpush1.bf16.msra.mxu1 %v5092_v46 }
 0xb4e   :  { %4410 = vmatprep.subr.bf16.mxu1 %v5104_v55 }
 0xb51   :  { %4412 = vmatpush1.bf16.msra.mxu1 %v5108_v58 }
 0xb52   :  { %4414 = vmatprep.subr.bf16.mxu1 %v5123_v5 }
 0xb55   :  { %4416 = vmatpush1.bf16.msra.mxu1 %v5127_v8 }
 0xb56   :  { %4418 = vmatprep.subr.bf16.mxu1 %v5142_v20 }
 0xb59   :  { %4420 = vmatpush1.bf16.msra.mxu1 %v5146_v24 }
 0xb5a   :  { %4422 = vmatprep.subr.bf16.mxu1 %v5161_v38 }
 0xb5d   :  { %4424 = vmatpush1.bf16.msra.mxu1 %v5165_v42 }
 0xb5e   :  { %4426 = vmatprep.subr.bf16.mxu1 %v5180_v56 }
 0xb61   :  { %4428 = vmatpush1.bf16.msra.mxu1 %v5184_v60 }
 0xb62   :  { %4430 = vmatprep.subr.bf16.mxu1 %v5199_v12 }
 0xb65   :  { %4432 = vmatpush1.bf16.msra.mxu1 %v5203_v18 }
 0xb66   :  { %4465 = vmatprep.subr.bf16.mxu1 %v5954_v22 }
 0xc1b   :  { %v2397_v3 = vpop.f32.mrb[26].mxu1 }
 0xc1c   :  { %v2401_v47 = vadd.f32 %v4660_v2, %v2397_v3  ;;  %v3535_v51 = vpop.f32.mrb[27].mxu1  ;;  %v6048_v2 = vld [vmem:[#allocation26_spill] sm:$0xff]  ;;  %v6049_v3 = vld [vmem:[#allocation27_spill] sm:$0xff] }
 0xc1d   :  { %v6051_v51 = vld [vmem:[#allocation29_spill] sm:$0xff] }
 0xc1e   :  { %v2402_v62 = vmul.f32 0.5, %v2401_v47  ;;  %v6050_v47 = vld [vmem:[#allocation28_spill] sm:$0xff] }
 0xc20   :  { %4783 = vtanh.f32 %v2402_v62  ;;  %v6052_v62 = vld [vmem:[#allocation30_spill] sm:$0xff] }
 0xc21   :  { %4785 = vtanh.f32 %v5724_v63 }
 0xc2a   :  { %v4784_v45 = vpop.eup %4783 }
 0xc2b   :  { %v2404_v33 = vmul.f32 0.5, %v4784_v45  ;;  %v4786_v17 = vpop.eup %4785  ;;  %v6053_v45 = vld [vmem:[#allocation31_spill] sm:$0xff] }
 0xc2d   :  { %v2405_v7 = vadd.f32 0.5, %v2404_v33 }
 0xc2f   :  { %v2407_v29 = vmul.f32 %v4786_v17, %v2405_v7 }
 0xc31   :  { %2480 = vmatmul.mubr.f32.vlgmr.msra.gmra.mrb[12].mxu0 %v2407_v29  ;;  %2551 = vmatmul.mubr.f32.vlgmr.msra.gmra.mrb[12].mxu1 %v2407_v29  ;;  %v6054_v29 = vld [vmem:[#allocation32_spill] sm:$0xff] }
 0xc32   :  { %4436 = vmatpush1.bf16.msra.mxu0 %v5207_v19  ;;  %2621 = vmatprep.mubr.f32.mxu0 %v5953_v0 }
 0xc33   :  { %4438 = vmatprep.subr.bf16.mxu0 %v5211_v21  ;;  %4467 = vmatpush3.bf16.msra.mxu1 %v5281_v1 }
 0xc34   :  { %4468 = vmatprep.subr.bf16.mxu1 %v5954_v22  ;;  %3568 = vmatprep.mubr.msk.f32.mxu1 %vm4937_vm1, %v5953_v0 }
 0xc36   :  { %4440 = vmatpush1.bf16.msra.mxu0 %v5219_v30 }
 0xc37   :  { %4442 = vmatprep.subr.bf16.mxu0 %v5222_v31  ;;  %4470 = vmatpush3.bf16.msra.mxu1 %v5284_v11 }
 0xc38   :  { %4471 = vmatprep.subr.bf16.mxu1 %v5954_v22 }
 0xc3a   :  { %4444 = vmatpush1.bf16.msra.mxu0 %v5227_v43 }
 0xc3b   :  { %4446 = vmatprep.subr.bf16.mxu0 %v5230_v44  ;;  %4473 = vmatpush3.bf16.msra.mxu1 %v5289_v26 }
 0xc3c   :  { %4474 = vmatprep.subr.bf16.mxu1 %v5954_v22 }
 0xc3e   :  { %4448 = vmatpush1.bf16.msra.mxu0 %v5233_v54 }
 0xc3f   :  { %4450 = vmatprep.subr.bf16.mxu0 %v5236_v57  ;;  %4476 = vmatpush3.bf16.msra.mxu1 %v5293_v36 }
 0xc40   :  { %4477 = vmatprep.subr.bf16.mxu1 %v5954_v22 }
 0xc42   :  { %4452 = vmatpush1.bf16.msra.mxu0 %v5239_v4 }
 0xc43   :  { %4454 = vmatprep.subr.bf16.mxu0 %v5242_v6  ;;  %4479 = vmatpush3.bf16.msra.mxu1 %v5297_v53 }
 0xc44   :  { %4480 = vmatprep.subr.bf16.mxu1 %v5954_v22 }
 0xc46   :  { %4456 = vmatpush1.bf16.msra.mxu0 %v5245_v23 }
 0xc47   :  { %4458 = vmatprep.subr.bf16.mxu0 %v5248_v25  ;;  %4482 = vmatpush3.bf16.msra.mxu1 %v5301_v10 }
 0xc48   :  { %4483 = vmatprep.subr.bf16.mxu1 %v5954_v22 }
 0xc4a   :  { %4460 = vmatpush1.bf16.msra.mxu0 %v5251_v39 }
 0xc4b   :  { %4462 = vmatprep.subr.bf16.mxu0 %v5254_v40  ;;  %4485 = vmatpush3.bf16.msra.mxu1 %v5305_v27 }
 0xc4c   :  { %4486 = vmatprep.subr.bf16.mxu1 %v5954_v22 }
 0xc4e   :  { %4464 = vmatpush1.bf16.msra.mxu0 %v5257_v50 }
 0xc4f   :  { %4488 = vmatpush3.bf16.msra.mxu1 %v5309_v49  ;;  %4490 = vmatprep.subr.bf16.mxu0 %v5046_v9  ;;  %v6045_v9 = vld [vmem:[#allocation23_spill] sm:$0xff] }
 0xc50   :  { %4522 = vmatprep.subr.bf16.mxu1 %v5069_v28  ;;  %v6046_v28 = vld [vmem:[#allocation24_spill] sm:$0xff] }
 0xc51   :  { %2622 = vmatmul.mubr.f32.vlgmr.msra.gmra.mrb[12].mxu0 %v5724_v63 }
 0xc52   :  { %4492 = vmatpush1.bf16.msra.mxu0 %v6038_v59  ;;  %2794 = vmatprep.mubr.f32.mxu0 %v5953_v0 }
 0xc53   :  { %4494 = vmatprep.subr.bf16.mxu0 %v6039_v14 }
 0xc56   :  { %4496 = vmatpush1.bf16.msra.mxu0 %v6040_v16 }
 0xc57   :  { %4498 = vmatprep.subr.bf16.mxu0 %v6041_v48 }
 0xc5a   :  { %4500 = vmatpush1.bf16.msra.mxu0 %v6042_v35 }
 0xc5b   :  { %4502 = vmatprep.subr.bf16.mxu0 %v6043_v61 }
 0xc5e   :  { %4504 = vmatpush1.bf16.msra.mxu0 %v6044_v15 }
 0xc5f   :  { %4506 = vmatprep.subr.bf16.mxu0 %v6045_v9 }
 0xc62   :  { %4508 = vmatpush1.bf16.msra.mxu0 %v6046_v28 }
 0xc63   :  { %4510 = vmatprep.subr.bf16.mxu0 %v6047_v13 }
 0xc66   :  { %4512 = vmatpush1.bf16.msra.mxu0 %v6048_v2 }
 0xc67   :  { %4514 = vmatprep.subr.bf16.mxu0 %v6049_v3 }
 0xc6a   :  { %4516 = vmatpush1.bf16.msra.mxu0 %v6050_v47 }
 0xc6b   :  { %4518 = vmatprep.subr.bf16.mxu0 %v6051_v51 }
 0xc6e   :  { %4520 = vmatpush1.bf16.msra.mxu0 %v6052_v62 }
 0xc6f   :  { %4554 = vmatprep.subr.bf16.mxu0 %v6053_v45 }
 0xd04   :  { %v2552_v33 = vpop.f32.mrb[12].mxu1 }
 0xd05   :  { %v2554_v7 = vpop.f32.mrb[13].mxu1  ;;  %v4661_v61 = vadd.f32 %v2552_v33, %v5322_v32  ;;  %v3047_v33 = vld [vmem:[#allocation9 + $0x48] sm:$0xff] }
 0xd24   :  { %v2623_v17 = vpop.f32.mrb[12].mxu0 }
 0xd25   :  { %v4645_v59 = vadd.f32 %v2623_v17, %v6054_v29  ;;  %v2625_v14 = vpop.f32.mrb[13].mxu0  ;;  %v3048_v17 = vld [vmem:[#allocation9 + $0x50] sm:$0xff] }
 0xd26   :  { %v4646_v16 = vadd.f32 %v2625_v14, %v5320_v52  ;;  %v3050_v14 = vld [vmem:[#allocation9 + $0x60] sm:$0xff] }
 0xd27   :  { %v2633_v48 = vmul.f32 0.5, %v4645_v59 }
 0xd28   :  { %v2638_v35 = vmul.f32 0.5, %v4646_v16  ;;  %v3051_v16 = vld [vmem:[#allocation9 + $0x68] sm:$0xff] }
 0xd29   :  { %4787 = vtanh.f32 %v2633_v48  ;;  %v4628_v48 = vpack.c.bf16 %v3051_v16, %v3050_v14 }
 0xd2a   :  { %4789 = vtanh.f32 %v2638_v35  ;;  %v3052_v35 = vld [vmem:[#allocation9 + $0x70] sm:$0xff] }
 0xd2b   :  { %4791 = vtanh.f32 %v4661_v61  ;;  %v3053_v61 = vld [vmem:[#allocation9 + $0x78] sm:$0xff] }
 0xd33   :  { %v4788_v15 = vpop.eup %4787 }
 0xd34   :  { %v4790_v9 = vpop.eup %4789  ;;  %v2635_v28 = vmul.f32 0.5, %v4788_v15  ;;  %v4631_v15 = vpack.c.bf16 %v3053_v61, %v3052_v35 }
 0xd35   :  { %v2640_v13 = vmul.f32 0.5, %v4790_v9  ;;  %v4792_v3 = vpop.eup %4791 }
 0xd36   :  { %v2636_v2 = vadd.f32 0.5, %v2635_v28 }
 0xd37   :  { %v2641_v47 = vadd.f32 0.5, %v2640_v13 }
 0xd38   :  { %v2644_v51 = vmul.f32 %v4792_v3, %v2636_v2 }
 0xd39   :  { %v2643_v62 = vmul.f32 %v2641_v47, %v5724_v63 }
 0xd3b   :  { %v5803_v45 = vadd.f32 %v2644_v51, %v2643_v62 }
 0xd3d   :  { %3569 = vmatmul.mubr.f32.vlgmr.msra.gmra.mrb[28].mxu1 %v5803_v45 }
 0xd3e   :  { %4524 = vmatpush1.bf16.msra.mxu1 %v5078_v34  ;;  %2865 = vmatprep.mubr.f32.mxu1 %v5953_v0  ;;  %v4662_v34 = vadd.f32 %v2554_v7, %v5347_v37 }
 0xd3f   :  { %4526 = vmatprep.subr.bf16.mxu1 %v5085_v41 }
 0xd42   :  { %4528 = vmatpush1.bf16.msra.mxu1 %v5092_v46 }
 0xd43   :  { %4530 = vmatprep.subr.bf16.mxu1 %v5104_v55 }
 0xd46   :  { %4532 = vmatpush1.bf16.msra.mxu1 %v5108_v58 }
 0xd47   :  { %4534 = vmatprep.subr.bf16.mxu1 %v5123_v5 }
 0xd4a   :  { %4536 = vmatpush1.bf16.msra.mxu1 %v5127_v8 }
 0xd4b   :  { %4538 = vmatprep.subr.bf16.mxu1 %v5142_v20 }
 0xd4e   :  { %4540 = vmatpush1.bf16.msra.mxu1 %v5146_v24 }
 0xd4f   :  { %4542 = vmatprep.subr.bf16.mxu1 %v5161_v38 }
 0xd52   :  { %4544 = vmatpush1.bf16.msra.mxu1 %v5165_v42  ;;  %v3038_v42 = vld [vmem:[#allocation9] sm:$0xff] }
 0xd53   :  { %4546 = vmatprep.subr.bf16.mxu1 %v5180_v56  ;;  %v3039_v56 = vld [vmem:[#allocation9 + $0x8] sm:$0xff] }
 0xd56   :  { %4548 = vmatpush1.bf16.msra.mxu1 %v5184_v60  ;;  %v3040_v60 = vld [vmem:[#allocation9 + $0x10] sm:$0xff] }
 0xd57   :  { %4550 = vmatprep.subr.bf16.mxu1 %v5199_v12  ;;  %v4610_v12 = vpack.c.bf16 %v3039_v56, %v3038_v42 }
 0xd5a   :  { %4552 = vmatpush1.bf16.msra.mxu1 %v5203_v18  ;;  %v3041_v18 = vld [vmem:[#allocation9 + $0x18] sm:$0xff] }
 0xd5b   :  { %4585 = vmatprep.subr.bf16.mxu1 %v5954_v22 }
 0xe10   :  { %v2712_v41 = vpop.f32.mrb[28].mxu1 }
 0xe11   :  { %v2716_v46 = vadd.f32 %v4662_v34, %v2712_v41  ;;  %v3570_v55 = vpop.f32.mrb[29].mxu1 }
 0xe13   :  { %v2717_v58 = vmul.f32 0.5, %v2716_v46 }
 0xe15   :  { %4793 = vtanh.f32 %v2717_v58 }
 0xe16   :  { %4795 = vtanh.f32 %v5803_v45 }
 0xe1f   :  { %v4794_v5 = vpop.eup %4793 }
 0xe20   :  { %v2719_v8 = vmul.f32 0.5, %v4794_v5  ;;  %v4796_v24 = vpop.eup %4795 }
 0xe22   :  { %v2720_v20 = vadd.f32 0.5, %v2719_v8 }
 0xe24   :  { %v2722_v38 = vmul.f32 %v4796_v24, %v2720_v20 }
 0xe26   :  { %2795 = vmatmul.mubr.f32.vlgmr.msra.gmra.mrb[14].mxu0 %v2722_v38  ;;  %2866 = vmatmul.mubr.f32.vlgmr.msra.gmra.mrb[14].mxu1 %v2722_v38 }
 0xe27   :  { %4556 = vmatpush1.bf16.msra.mxu0 %v5207_v19  ;;  %2936 = vmatprep.mubr.f32.mxu0 %v5953_v0  ;;  %v4613_v19 = vpack.c.bf16 %v3041_v18, %v3040_v60 }
 0xe28   :  { %4558 = vmatprep.subr.bf16.mxu0 %v5211_v21  ;;  %4587 = vmatpush3.bf16.msra.mxu1 %v5281_v1  ;;  %v3042_v21 = vld [vmem:[#allocation9 + $0x20] sm:$0xff] }
 0xe29   :  { %4588 = vmatprep.subr.bf16.mxu1 %v5954_v22  ;;  %3603 = vmatprep.mubr.msk.f32.mxu1 %vm4937_vm1, %v5953_v0 }
 0xe2b   :  { %4560 = vmatpush1.bf16.msra.mxu0 %v5219_v30  ;;  %v3043_v30 = vld [vmem:[#allocation9 + $0x28] sm:$0xff] }
 0xe2c   :  { %4562 = vmatprep.subr.bf16.mxu0 %v5222_v31  ;;  %4590 = vmatpush3.bf16.msra.mxu1 %v5284_v11  ;;  %v4616_v31 = vpack.c.bf16 %v3043_v30, %v3042_v21 }
 0xe2d   :  { %4591 = vmatprep.subr.bf16.mxu1 %v5954_v22 }
 0xe2f   :  { %4564 = vmatpush1.bf16.msra.mxu0 %v5227_v43 }
 0xe30   :  { %4566 = vmatprep.subr.bf16.mxu0 %v5230_v44  ;;  %4593 = vmatpush3.bf16.msra.mxu1 %v5289_v26 }
 0xe31   :  { %4594 = vmatprep.subr.bf16.mxu1 %v5954_v22 }
 0xe33   :  { %4568 = vmatpush1.bf16.msra.mxu0 %v5233_v54 }
 0xe34   :  { %4570 = vmatprep.subr.bf16.mxu0 %v5236_v57  ;;  %4596 = vmatpush3.bf16.msra.mxu1 %v5293_v36 }
 0xe35   :  { %4597 = vmatprep.subr.bf16.mxu1 %v5954_v22 }
 0xe37   :  { %4572 = vmatpush1.bf16.msra.mxu0 %v5239_v4 }
 0xe38   :  { %4574 = vmatprep.subr.bf16.mxu0 %v5242_v6  ;;  %4599 = vmatpush3.bf16.msra.mxu1 %v5297_v53 }
 0xe39   :  { %4600 = vmatprep.subr.bf16.mxu1 %v5954_v22 }
 0xe3b   :  { %4576 = vmatpush1.bf16.msra.mxu0 %v5245_v23 }
 0xe3c   :  { %4578 = vmatprep.subr.bf16.mxu0 %v5248_v25  ;;  %4602 = vmatpush3.bf16.msra.mxu1 %v5301_v10 }
 0xe3d   :  { %4603 = vmatprep.subr.bf16.mxu1 %v5954_v22 }
 0xe3f   :  { %4580 = vmatpush1.bf16.msra.mxu0 %v5251_v39 }
 0xe40   :  { %4582 = vmatprep.subr.bf16.mxu0 %v5254_v40  ;;  %4605 = vmatpush3.bf16.msra.mxu1 %v5305_v27 }
 0xe41   :  { %4606 = vmatprep.subr.bf16.mxu1 %v5954_v22 }
 0xe43   :  { %4584 = vmatpush1.bf16.msra.mxu0 %v5257_v50 }
 0xe44   :  { %4608 = vmatpush3.bf16.msra.mxu1 %v5309_v49  ;;  %4609 = vmatprep.subr.bf16.mxu0 %v5954_v22 }
 0xe46   :  { %2937 = vmatmul.mubr.f32.vlgmr.msra.gmra.mrb[14].mxu0 %v5803_v45 }
 0xe47   :  { %3638 = vmatprep.mubr.msk.f32.mxu0 %vm4937_vm1, %v5953_v0  ;;  %4611 = vmatpush3.bf16.msra.mxu0 %v4610_v12  ;;  %v3045_v0 = vld [vmem:[#allocation9 + $0x38] sm:$0xff] }
 0xe48   :  { %4612 = vmatprep.subr.bf16.mxu0 %v5954_v22 }
 0xe4b   :  { %4614 = vmatpush3.bf16.msra.mxu0 %v4613_v19 }
 0xe4c   :  { %4615 = vmatprep.subr.bf16.mxu0 %v5954_v22 }
 0xe4f   :  { %4617 = vmatpush3.bf16.msra.mxu0 %v4616_v31 }
 0xe50   :  { %4618 = vmatprep.subr.bf16.mxu0 %v5954_v22 }
 0xef9   :  { %v2867_v43 = vpop.f32.mrb[14].mxu1 }
 0xefa   :  { %v2869_v44 = vpop.f32.mrb[15].mxu1  ;;  %v4663_v39 = vadd.f32 %v2867_v43, %v5322_v32  ;;  %v3046_v32 = vld [vmem:[#allocation9 + $0x40] sm:$0xff] }
 0xefb   :  { %v4622_v7 = vpack.c.bf16 %v3047_v33, %v3046_v32  ;;  %v4664_v9 = vadd.f32 %v2869_v44, %v5347_v37 }
 0xf19   :  { %v2938_v54 = vpop.f32.mrb[14].mxu0 }
 0xf1a   :  { %v4647_v57 = vadd.f32 %v2938_v54, %v6054_v29  ;;  %v2940_v4 = vpop.f32.mrb[15].mxu0  ;;  %v3049_v29 = vld [vmem:[#allocation9 + $0x58] sm:$0xff] }
 0xf1b   :  { %v4648_v6 = vadd.f32 %v2940_v4, %v5320_v52  ;;  %v3044_v52 = vld [vmem:[#allocation9 + $0x30] sm:$0xff]  ;;  %v4625_v59 = vpack.c.bf16 %v3049_v29, %v3048_v17 }
 0xf1c   :  { %v2948_v23 = vmul.f32 0.5, %v4647_v57  ;;  %v4619_v63 = vpack.c.bf16 %v3045_v0, %v3044_v52 }
 0xf1d   :  { %v2953_v25 = vmul.f32 0.5, %v4648_v6 }
 0xf1e   :  { %4797 = vtanh.f32 %v2948_v23  ;;  %4620 = vmatpush3.bf16.msra.mxu0 %v4619_v63 }
 0xf1f   :  { %4799 = vtanh.f32 %v2953_v25  ;;  %4621 = vmatprep.subr.bf16.mxu0 %v5954_v22 }
 0xf20   :  { %4801 = vtanh.f32 %v4663_v39 }
 0xf22   :  { %4623 = vmatpush3.bf16.msra.mxu0 %v4622_v7 }
 0xf23   :  { %4624 = vmatprep.subr.bf16.mxu0 %v5954_v22 }
 0xf26   :  { %4626 = vmatpush3.bf16.msra.mxu0 %v4625_v59 }
 0xf27   :  { %4627 = vmatprep.subr.bf16.mxu0 %v5954_v22 }
 0xf28   :  { %v4798_v40 = vpop.eup %4797 }
 0xf29   :  { %v4800_v50 = vpop.eup %4799  ;;  %v2950_v1 = vmul.f32 0.5, %v4798_v40 }
 0xf2a   :  { %v2955_v11 = vmul.f32 0.5, %v4800_v50  ;;  %v4802_v36 = vpop.eup %4801  ;;  %4629 = vmatpush3.bf16.msra.mxu0 %v4628_v48 }
 0xf2b   :  { %v2951_v26 = vadd.f32 0.5, %v2950_v1  ;;  %4630 = vmatprep.subr.bf16.mxu0 %v5954_v22  ;;  %v3172_v22 = vld [vmem:[%s5896_s7] ss:$0 sm:$0xff] }
 0xf2c   :  { %v2956_v53 = vadd.f32 0.5, %v2955_v11 }
 0xf2d   :  { %v2959_v10 = vmul.f32 %v4802_v36, %v2951_v26 }
 0xf2e   :  { %v2958_v27 = vmul.f32 %v2956_v53, %v5803_v45  ;;  %4632 = vmatpush3.bf16.msra.mxu0 %v4631_v15 }
 0xf30   :  { %v2960_v49 = vadd.f32 %v2959_v10, %v2958_v27 }
 0xf32   :  { %3604 = vmatmul.mubr.f32.vlgmr.msra.gmra.mrb[30].mxu1 %v2960_v49 }
0x1005   :  { %v3027_v28 = vpop.f32.mrb[30].mxu1 }
0x1006   :  { %v3031_v13 = vadd.f32 %v4664_v9, %v3027_v28  ;;  %v3605_v2 = vpop.f32.mrb[31].mxu1 }
0x1008   :  { %v3032_v3 = vmul.f32 0.5, %v3031_v13 }
0x100a   :  { %4803 = vtanh.f32 %v3032_v3 }
0x100b   :  { %4805 = vtanh.f32 %v2960_v49 }
0x1014   :  { %v4804_v47 = vpop.eup %4803 }
0x1015   :  { %v3034_v51 = vmul.f32 0.5, %v4804_v47  ;;  %v4806_v45 = vpop.eup %4805 }
0x1017   :  { %v3035_v62 = vadd.f32 0.5, %v3034_v51 }
0x1019   :  { %v3037_v34 = vmul.f32 %v4806_v45, %v3035_v62 }
0x101b   :  { %3639 = vmatmul.mubr.f32.vlgmr.msra.gmra.mrb[16].mxu0 %v3037_v34 }
0x10ee   :  { %v3127_v41 = vpop.f32.mrb[16].mxu0 }
0x10ef   :  { %v3128_v37 = vadd.f32 %v3172_v22, %v3127_v41  ;;  %v3640_v46 = vpop.f32.mrb[17].mxu0 }
0x10f1   :  { %3131 = vst [vmem:[#allocation11] sm:$0xff] %v3128_v37 }
0x10f2   :  { %4906 = shalt.err (!%p4903_p8)
}
0x10f3   :  { %s4907_s21 = scalar_lea.hbm %s5897_s8, 128 }
0x10f4   :  { %p4908_p9 = scmp.ne.s32.totalorder %s5897_s8, %s4907_s21  ;;  %p4911_p10 = scmp.lt.u32.totalorder %s4907_s21, %s5897_s8 }
0x10f6   :  { %p4913_p11 = pnand %p4911_p10, %p4908_p9 }
0x10f8   :  { %4916 = shalt.err (!%p4913_p11)
}
0x10f9   :  { %3141 = dma.vmem_to_hbm [thread:$0]  %s3139_s18, 128, %s5897_s8, [#allocation5]  }
0x10fa   :  { %4923 = dma.done.wait [#allocation5], 128  }
0x10fb   :  { %4924 = vsyncadd [#allocation5], 4294967168 }
0x10fc   :  { %3145 = vsyncpa [#allocation4], 1 }
0x10fd   :  { %3146 = vsyncpa [#allocation7], 1 }
0x10fe   :  { %3147 = vsyncpa [#allocation10], 1 }
0x10ff   :  { %3148 = vsyncpa [#allocation5], 1 }

// kernel: tpu_custom_call.1
= control target key start
LH: loop header
LB: loop body
LE: loop exit
PB: predicated region body
PF: predicated region fallthrough
CT: control target
= control target key end

     0   :  { %13 = vsyncpa [#allocation4], 0  ;;  %s5889_s0 = inlined_call_operand.vmem [shape: f32[64,16], index: 0, kind: input, shape index: {}]   ;;  %s5890_s1 = inlined_call_operand.vmem [shape: f32[16,512], index: 1, kind: input, shape index: {}]   ;;  %s5891_s2 = inlined_call_operand.hbm [shape: f32[128,512], index: 2, kind: input, shape index: {}]   ;;  %s5892_s3 = inlined_call_operand.hbm [shape: f32[128,256], index: 3, kind: input, shape index: {}]   ;;  %s5893_s4 = inlined_call_operand.hbm [shape: f32[128,128], index: 4, kind: input, shape index: {}]   ;;  %s5894_s5 = inlined_call_operand.vmem [shape: f32[1,512], index: 5, kind: input, shape index: {}]   ;;  %s5895_s6 = inlined_call_operand.hbm [shape: f32[128,128], index: 6, kind: input, shape index: {}]   ;;  %s5896_s7 = inlined_call_operand.vmem [shape: f32[1,128], index: 7, kind: input, shape index: {}]   ;;  %s5897_s8 = inlined_call_operand.hbm [shape: f32[8,128], index: 8, kind: output, shape index: {}]  }
   0x1   :  { %14 = vsyncpa [#allocation7], 0 }
   0x2   :  { %15 = vsyncpa [#allocation10], 0 }
   0x3   :  { %16 = vsyncpa [#allocation5], 0  ;;  %s4925_s27 = smov [#allocation6]   ;;  %s4807_s9 = scalar_lea.hbm %s5892_s3, 4096 }
   0x4   :  { %s38_s28 = sshll.u32 %s4925_s27, 4  ;;  %p4808_p0 = scmp.ne.s32.totalorder %s5892_s3, %s4807_s9  ;;  %s39_s28 = int_to_ptr.vmem [resolvable:$true] %s38_s28 }
   0x5   :  { %p4811_p1 = scmp.lt.u32.totalorder %s4807_s9, %s5892_s3 }
   0x7   :  { %p4813_p2 = pnand %p4811_p1, %p4808_p0 }
   0x9   :  { %4816 = shalt.err (!%p4813_p2)
}
   0xa   :  { %s4817_s14 = scalar_lea.vmem %s39_s28, 4096  ;;  %p4822_p4 = scmp.lt.s32.totalorder %s39_s28, %s39_s28 }
   0xb   :  { %p4818_p3 = scmp.ne.s32.totalorder %s39_s28, %s4817_s14  ;;  %p4823_p5 = scmp.lt.s32.totalorder %s4817_s14, %s4817_s14 }
   0xd   :  { %p4824_p6 = por %p4823_p5, %p4822_p4 }
   0xf   :  { %p4825_p7 = pnand %p4824_p6, %p4818_p3 }
  0x11   :  { %4828 = shalt.err (!%p4825_p7)
}
  0x12   :  { %s4926_s15 = smov 256   ;;  %s4927_s16 = smov 16  }
  0x13   :  { %44 = dma.hbm_to_vmem [thread:$0]  %s5892_s3, 4096, %s39_s28, [#allocation7], %s4926_s15, %s4926_s15, %s4927_s16  }
  0x14   :  { %s4928_s19 = smov [#allocation3]   ;;  %s4829_s23 = scalar_lea.hbm %s5891_s2, 8192 }
  0x15   :  { %s26_s20 = sshll.u32 %s4928_s19, 4  ;;  %p4830_p8 = scmp.ne.s32.totalorder %s5891_s2, %s4829_s23  ;;  %s27_s20 = int_to_ptr.vmem [resolvable:$true] %s26_s20 }
  0x16   :  { %p4833_p9 = scmp.lt.u32.totalorder %s4829_s23, %s5891_s2 }
  0x18   :  { %p4835_p10 = pnand %p4833_p9, %p4830_p8 }
  0x1a   :  { %4838 = shalt.err (!%p4835_p10)
}
  0x1b   :  { %s4839_s29 = scalar_lea.vmem %s27_s20, 8192  ;;  %p4844_p12 = scmp.lt.s32.totalorder %s27_s20, %s27_s20 }
  0x1c   :  { %p4840_p11 = scmp.ne.s32.totalorder %s27_s20, %s4839_s29  ;;  %p4845_p13 = scmp.lt.s32.totalorder %s4839_s29, %s4839_s29 }
  0x1e   :  { %p4846_p0 = por %p4845_p13, %p4844_p12 }
  0x20   :  { %p4847_p1 = pnand %p4846_p0, %p4840_p11 }
  0x22   :  { %4850 = shalt.err (!%p4847_p1)
}
  0x23   :  { %s4929_s3 = smov 512   ;;  %s4930_s28 = smov 32  }
  0x24   :  { %32 = dma.hbm_to_vmem [thread:$0]  %s5891_s2, 8192, %s27_s20, [#allocation4], %s4929_s3, %s4929_s3, %s4930_s28  }
  0x25   :  { %s4931_s10 = smov [#allocation8]   ;;  %s4851_s14 = scalar_lea.hbm %s5893_s4, 2048 }
  0x26   :  { %s50_s11 = sshll.u32 %s4931_s10, 4  ;;  %p4852_p2 = scmp.ne.s32.totalorder %s5893_s4, %s4851_s14  ;;  %s51_s11 = int_to_ptr.vmem [resolvable:$true] %s50_s11 }
  0x27   :  { %p4855_p3 = scmp.lt.u32.totalorder %s4851_s14, %s5893_s4 }
  0x29   :  { %p4857_p4 = pnand %p4855_p3, %p4852_p2 }
  0x2b   :  { %4860 = shalt.err (!%p4857_p4)
}
  0x2c   :  { %s4861_s19 = scalar_lea.vmem %s51_s11, 2048  ;;  %p4866_p6 = scmp.lt.s32.totalorder %s51_s11, %s51_s11 }
  0x2d   :  { %p4862_p5 = scmp.ne.s32.totalorder %s51_s11, %s4861_s19  ;;  %p4867_p7 = scmp.lt.s32.totalorder %s4861_s19, %s4861_s19 }
  0x2f   :  { %p4868_p8 = por %p4867_p7, %p4866_p6 }
  0x31   :  { %p4869_p9 = pnand %p4868_p8, %p4862_p5 }
  0x33   :  { %4872 = shalt.err (!%p4869_p9)
}
  0x34   :  { %s4932_s2 = smov 128   ;;  %s4933_s20 = smov 8  }
  0x35   :  { %56 = dma.hbm_to_vmem [thread:$0]  %s5893_s4, 2048, %s51_s11, [#allocation7], %s4932_s2, %s4932_s2, %s4933_s20  }
  0x36   :  { %s4934_s23 = smov [#allocation9]   ;;  %s4873_s27 = scalar_lea.hbm %s5895_s6, 2048 }
  0x37   :  { %s64_s24 = sshll.u32 %s4934_s23, 4  ;;  %p4874_p10 = scmp.ne.s32.totalorder %s5895_s6, %s4873_s27  ;;  %s65_s24 = int_to_ptr.vmem [resolvable:$true] %s64_s24 }
  0x38   :  { %p4877_p11 = scmp.lt.u32.totalorder %s4873_s27, %s5895_s6 }
  0x3a   :  { %p4879_p12 = pnand %p4877_p11, %p4874_p10 }
  0x3c   :  { %4882 = shalt.err (!%p4879_p12)
}
  0x3d   :  { %s4883_s9 = scalar_lea.vmem %s65_s24, 2048  ;;  %p4888_p0 = scmp.lt.s32.totalorder %s65_s24, %s65_s24 }
  0x3e   :  { %p4884_p13 = scmp.ne.s32.totalorder %s65_s24, %s4883_s9  ;;  %p4889_p1 = scmp.lt.s32.totalorder %s4883_s9, %s4883_s9 }
  0x40   :  { %p4890_p2 = por %p4889_p1, %p4888_p0 }
  0x42   :  { %p4891_p3 = pnand %p4890_p2, %p4884_p13 }
  0x44   :  { %4894 = shalt.err (!%p4891_p3)
}
  0x45   :  { %70 = dma.hbm_to_vmem [thread:$0]  %s5895_s6, 2048, %s65_s24, [#allocation10], %s4932_s2, %s4932_s2, %s4933_s20  }
  0x46   :  { %4917 = dma.done.wait [#allocation4], 8192  }
  0x47   :  { %4918 = vsyncadd [#allocation4], 4294959104 }
  0x48   :  { %4919 = dma.done.wait [#allocation7], 6144  }
  0x49   :  { %4920 = vsyncadd [#allocation7], 4294961152 }
  0x4a   :  { %4921 = dma.done.wait [#allocation10], 2048  }
  0x4b   :  { %4922 = vsyncadd [#allocation10], 4294965248  ;;  %v5910_v0 = vmov 0.0   ;;  %v95_v1 = vld [vmem:[%s5890_s1 + $0x8] sm:$0xff]  ;;  %v94_v3 = vld [vmem:[%s5890_s1] sm:$0xff]  ;;  %vm123_vm0 = vcmask 130048  }
  0x4c   :  { %212 = vmatprep.mubr.f32.mxu0 %v5910_v0  ;;  %325 = vmatprep.mubr.f32.mxu1 %v5910_v0  ;;  %v99_v2 = vld [vmem:[%s5890_s1 + $0x28] sm:$0xff]  ;;  %v98_v5 = vld [vmem:[%s5890_s1 + $0x20] sm:$0xff]  ;;  %v97_v13 = vld [vmem:[%s5890_s1 + $0x18] sm:$0xff]  ;;  %vm4937_vm1 = vmmov 0   ;;  %s4938_s17 = smov [#allocation11]  }
  0x4d   :  { %v3641_v4 = vpack.c.bf16 %v99_v2, %v95_v1  ;;  %v414_v6 = vld [vmem:[#allocation3 + $0x8] sm:$0xff]  ;;  %v3643_v8 = vpack.c.bf16 %v98_v5, %v94_v3  ;;  %v86_v10 = vld [vmem:[%s5889_s0] sm:$0xff]  ;;  %v101_v14 = vld [vmem:[%s5890_s1 + $0x38] sm:$0xff]  ;;  %s3138_s18 = sshll.u32 %s4938_s17, 4  ;;  %s3139_s18 = int_to_ptr.vmem [resolvable:$true] %s3138_s18 }
  0x4e   :  { %v418_v7 = vld [vmem:[#allocation3 + $0x28] sm:$0xff]  ;;  %v413_v11 = vld [vmem:[#allocation3] sm:$0xff]  ;;  %v96_v15 = vld [vmem:[%s5890_s1 + $0x10] sm:$0xff]  ;;  %v3645_v17 = vpack.c.bf16 %v101_v14, %v97_v13  ;;  %s4895_s19 = scalar_lea.vmem %s3139_s18, 128  ;;  %p4900_p5 = scmp.lt.s32.totalorder %s3139_s18, %s3139_s18 }
  0x4f   :  { %v5046_v9 = vpack.c.bf16 %v418_v7, %v414_v6  ;;  %v417_v12 = vld [vmem:[#allocation3 + $0x20] sm:$0xff]  ;;  %3642 = vmatprep.subr.bf16.mxu0 %v3641_v4  ;;  %v100_v18 = vld [vmem:[%s5890_s1 + $0x30] sm:$0xff]  ;;  %v422_v19 = vld [vmem:[#allocation3 + $0x48] sm:$0xff]  ;;  %p4896_p4 = scmp.ne.s32.totalorder %s3139_s18, %s4895_s19  ;;  %p4901_p6 = scmp.lt.s32.totalorder %s4895_s19, %s4895_s19 }
  0x50   :  { %3644 = vmatpush1.bf16.msra.mxu0 %v3643_v8  ;;  %v5060_v16 = vpack.c.bf16 %v417_v12, %v413_v11  ;;  %v426_v20 = vld [vmem:[#allocation3 + $0x68] sm:$0xff]  ;;  %v3647_v21 = vpack.c.bf16 %v100_v18, %v96_v15  ;;  %v421_v23 = vld [vmem:[#allocation3 + $0x40] sm:$0xff]  ;;  %3646 = vmatprep.subr.bf16.mxu1 %v3645_v17  ;;  %v416_v25 = vld [vmem:[#allocation3 + $0x18] sm:$0xff] }
  0x51   :  { %3650 = vmatprep.subr.bf16.mxu0 %v5046_v9  ;;  %v5066_v22 = vpack.c.bf16 %v426_v20, %v422_v19  ;;  %v425_v24 = vld [vmem:[#allocation3 + $0x60] sm:$0xff]  ;;  %v420_v26 = vld [vmem:[#allocation3 + $0x38] sm:$0xff]  ;;  %v415_v27 = vld [vmem:[#allocation3 + $0x10] sm:$0xff]  ;;  %p4902_p7 = por %p4901_p6, %p4900_p5 }
  0x52   :  { %5936 = vst [vmem:[#allocation16_spill] sm:$0xff] %v5060_v16  ;;  %3648 = vmatpush1.bf16.msra.mxu1 %v3647_v21  ;;  %v5069_v28 = vpack.c.bf16 %v420_v26, %v416_v25  ;;  %v419_v29 = vld [vmem:[#allocation3 + $0x30] sm:$0xff]  ;;  %v430_v30 = vld [vmem:[#allocation3 + $0x88] sm:$0xff]  ;;  %v5076_v33 = vpack.c.bf16 %v425_v24, %v421_v23  ;;  %v429_v35 = vld [vmem:[#allocation3 + $0x80] sm:$0xff] }
  0x53   :  { %5937 = vst [vmem:[#allocation17_spill] sm:$0xff] %v5066_v22  ;;  %3156 = vmatmul.mubr.msk.f32.vlgmr.msra.gmra.mrb[0].mxu0 %vm123_vm0, %v86_v10  ;;  %v434_v31 = vld [vmem:[#allocation3 + $0xa8] sm:$0xff]  ;;  %v5078_v34 = vpack.c.bf16 %v419_v29, %v415_v27  ;;  %v433_v36 = vld [vmem:[#allocation3 + $0xa0] sm:$0xff]  ;;  %v424_v38 = vld [vmem:[#allocation3 + $0x58] sm:$0xff]  ;;  %p4903_p8 = pnand %p4902_p7, %p4896_p4 }
  0x54   :  { %3652 = vmatpush1.bf16.msra.mxu0 %v5060_v16  ;;  %218 = vmatprep.mubr.f32.mxu0 %v5910_v0  ;;  %v87_v32 = vld [vmem:[%s5889_s0 + $0x8] sm:$0xff]  ;;  %5938 = vst [vmem:[#allocation18_spill] sm:$0xff] %v5076_v33  ;;  %v5082_v37 = vpack.c.bf16 %v434_v31, %v430_v30  ;;  %v428_v39 = vld [vmem:[#allocation3 + $0x78] sm:$0xff]  ;;  %v423_v40 = vld [vmem:[#allocation3 + $0x50] sm:$0xff]  ;;  %v5096_v47 = vpack.c.bf16 %v433_v36, %v429_v35 }
  0x55   :  { %3654 = vmatprep.subr.bf16.mxu0 %v5066_v22  ;;  %3682 = vmatprep.subr.bf16.mxu1 %v5069_v28  ;;  %v5085_v41 = vpack.c.bf16 %v428_v39, %v424_v38  ;;  %v427_v42 = vld [vmem:[#allocation3 + $0x70] sm:$0xff]  ;;  %v438_v43 = vld [vmem:[#allocation3 + $0xc8] sm:$0xff]  ;;  %v432_v48 = vld [vmem:[#allocation3 + $0x98] sm:$0xff] }
  0x56   :  { %5939 = vst [vmem:[#allocation19_spill] sm:$0xff] %v5082_v37  ;;  %3164 = vmatmul.mubr.msk.f32.vlgmr.msra.gmra.mrb[0].mxu1 %vm123_vm0, %v86_v10  ;;  %v442_v44 = vld [vmem:[#allocation3 + $0xe8] sm:$0xff]  ;;  %v88_v45 = vld [vmem:[%s5889_s0 + $0x10] sm:$0xff]  ;;  %v5092_v46 = vpack.c.bf16 %v427_v42, %v423_v40  ;;  %5940 = vst [vmem:[#allocation20_spill] sm:$0xff] %v5096_v47 }
  0x57   :  { %3157 = vmatmul.mubr.msk.f32.gmra.mrb[2].mxu0 %vm123_vm0, %v87_v32  ;;  %3684 = vmatpush1.bf16.msra.mxu1 %v5078_v34  ;;  %v436_v49 = vld [vmem:[#allocation3 + $0xb8] sm:$0xff]  ;;  %v431_v50 = vld [vmem:[#allocation3 + $0x90] sm:$0xff]  ;;  %v5100_v51 = vpack.c.bf16 %v442_v44, %v438_v43  ;;  %v437_v52 = vld [vmem:[#allocation3 + $0xc0] sm:$0xff] }
  0x58   :  { %3656 = vmatpush1.bf16.msra.mxu0 %v5076_v33  ;;  %224 = vmatprep.mubr.f32.mxu0 %v5910_v0  ;;  %v441_v53 = vld [vmem:[#allocation3 + $0xe0] sm:$0xff]  ;;  %v435_v54 = vld [vmem:[#allocation3 + $0xb0] sm:$0xff]  ;;  %v5104_v55 = vpack.c.bf16 %v436_v49, %v432_v48  ;;  %v446_v56 = vld [vmem:[#allocation3 + $0x108] sm:$0xff] }
  0x59   :  { %3658 = vmatprep.subr.bf16.mxu0 %v5082_v37  ;;  %331 = vmatprep.mubr.f32.mxu1 %v5910_v0  ;;  %5941 = vst [vmem:[#allocation21_spill] sm:$0xff] %v5100_v51  ;;  %v450_v57 = vld [vmem:[#allocation3 + $0x128] sm:$0xff]  ;;  %v5108_v58 = vpack.c.bf16 %v435_v54, %v431_v50  ;;  %v440_v59 = vld [vmem:[#allocation3 + $0xd8] sm:$0xff]  ;;  %v5115_v62 = vpack.c.bf16 %v441_v53, %v437_v52  ;;  %v439_v63 = vld [vmem:[#allocation3 + $0xd0] sm:$0xff] }
  0x5a   :  { %3165 = vmatmul.mubr.msk.f32.gmra.mrb[2].mxu1 %vm123_vm0, %v87_v32  ;;  %3686 = vmatprep.subr.bf16.mxu1 %v5085_v41  ;;  %v444_v60 = vld [vmem:[#allocation3 + $0xf8] sm:$0xff]  ;;  %v443_v1 = vld [vmem:[#allocation3 + $0xf0] sm:$0xff]  ;;  %v5119_v2 = vpack.c.bf16 %v450_v57, %v446_v56  ;;  %v445_v3 = vld [vmem:[#allocation3 + $0x100] sm:$0xff] }
  0x5b   :  { %3158 = vmatmul.mubr.msk.f32.gmra.mrb[4].mxu0 %vm123_vm0, %v88_v45  ;;  %3688 = vmatpush1.bf16.msra.mxu1 %v5092_v46  ;;  %v89_v61 = vld [vmem:[%s5889_s0 + $0x18] sm:$0xff]  ;;  %5942 = vst [vmem:[#allocation22_spill] sm:$0xff] %v5115_v62  ;;  %v449_v4 = vld [vmem:[#allocation3 + $0x120] sm:$0xff]  ;;  %v5123_v5 = vpack.c.bf16 %v444_v60, %v440_v59  ;;  %v454_v6 = vld [vmem:[#allocation3 + $0x148] sm:$0xff]  ;;  %v5127_v8 = vpack.c.bf16 %v443_v1, %v439_v63 }
  0x5c   :  { %3660 = vmatpush1.bf16.msra.mxu0 %v5096_v47  ;;  %230 = vmatprep.mubr.f32.mxu0 %v5910_v0  ;;  %5943 = vst [vmem:[#allocation23_spill] sm:$0xff] %v5119_v2  ;;  %v458_v7 = vld [vmem:[#allocation3 + $0x168] sm:$0xff]  ;;  %v448_v10 = vld [vmem:[#allocation3 + $0x118] sm:$0xff]  ;;  %v90_v12 = vld [vmem:[%s5889_s0 + $0x20] sm:$0xff]  ;;  %v5134_v13 = vpack.c.bf16 %v449_v4, %v445_v3 }
  0x5d   :  { %3662 = vmatprep.subr.bf16.mxu0 %v5100_v51  ;;  %337 = vmatprep.mubr.f32.mxu1 %v5910_v0  ;;  %v452_v11 = vld [vmem:[#allocation3 + $0x138] sm:$0xff]  ;;  %v447_v14 = vld [vmem:[#allocation3 + $0x110] sm:$0xff]  ;;  %v5138_v17 = vpack.c.bf16 %v458_v7, %v454_v6  ;;  %v453_v18 = vld [vmem:[#allocation3 + $0x140] sm:$0xff] }
  0x5e   :  { %3166 = vmatmul.mubr.msk.f32.gmra.mrb[4].mxu1 %vm123_vm0, %v88_v45  ;;  %3690 = vmatprep.subr.bf16.mxu1 %v5104_v55  ;;  %5944 = vst [vmem:[#allocation24_spill] sm:$0xff] %v5134_v13  ;;  %v451_v15 = vld [vmem:[#allocation3 + $0x130] sm:$0xff]  ;;  %v457_v19 = vld [vmem:[#allocation3 + $0x160] sm:$0xff]  ;;  %v5142_v20 = vpack.c.bf16 %v452_v11, %v448_v10  ;;  %v462_v21 = vld [vmem:[#allocation3 + $0x188] sm:$0xff] }
  0x5f   :  { %3159 = vmatmul.mubr.msk.f32.gmra.mrb[6].mxu0 %vm123_vm0, %v89_v61  ;;  %3692 = vmatpush1.bf16.msra.mxu1 %v5108_v58  ;;  %5945 = vst [vmem:[#allocation25_spill] sm:$0xff] %v5138_v17  ;;  %v466_v23 = vld [vmem:[#allocation3 + $0x1a8] sm:$0xff]  ;;  %v5146_v24 = vpack.c.bf16 %v451_v15, %v447_v14  ;;  %v456_v25 = vld [vmem:[#allocation3 + $0x158] sm:$0xff]  ;;  %v5153_v29 = vpack.c.bf16 %v457_v19, %v453_v18  ;;  %v455_v30 = vld [vmem:[#allocation3 + $0x150] sm:$0xff] }
  0x60   :  { %3664 = vmatpush1.bf16.msra.mxu0 %v5115_v62  ;;  %236 = vmatprep.mubr.f32.mxu0 %v5910_v0  ;;  %v460_v26 = vld [vmem:[#allocation3 + $0x178] sm:$0xff]  ;;  %v91_v27 = vld [vmem:[%s5889_s0 + $0x28] sm:$0xff]  ;;  %v459_v31 = vld [vmem:[#allocation3 + $0x170] sm:$0xff]  ;;  %v5157_v32 = vpack.c.bf16 %v466_v23, %v462_v21 }
  0x61   :  { %3666 = vmatprep.subr.bf16.mxu0 %v5119_v2  ;;  %343 = vmatprep.mubr.f32.mxu1 %v5910_v0  ;;  %5946 = vst [vmem:[#allocation26_spill] sm:$0xff] %v5153_v29  ;;  %v461_v35 = vld [vmem:[#allocation3 + $0x180] sm:$0xff]  ;;  %v5161_v38 = vpack.c.bf16 %v460_v26, %v456_v25  ;;  %v470_v39 = vld [vmem:[#allocation3 + $0x1c8] sm:$0xff]  ;;  %v5165_v42 = vpack.c.bf16 %v459_v31, %v455_v30  ;;  %v464_v43 = vld [vmem:[#allocation3 + $0x198] sm:$0xff] }
  0x62   :  { %3167 = vmatmul.mubr.msk.f32.gmra.mrb[6].mxu1 %vm123_vm0, %v89_v61  ;;  %3694 = vmatprep.subr.bf16.mxu1 %v5123_v5  ;;  %5947 = vst [vmem:[#allocation27_spill] sm:$0xff] %v5157_v32  ;;  %v465_v36 = vld [vmem:[#allocation3 + $0x1a0] sm:$0xff]  ;;  %v474_v40 = vld [vmem:[#allocation3 + $0x1e8] sm:$0xff]  ;;  %v468_v44 = vld [vmem:[#allocation3 + $0x1b8] sm:$0xff] }
  0x63   :  { %3160 = vmatmul.mubr.msk.f32.gmra.mrb[8].mxu0 %vm123_vm0, %v90_v12  ;;  %3696 = vmatpush1.bf16.msra.mxu1 %v5127_v8  ;;  %v92_v45 = vld [vmem:[%s5889_s0 + $0x30] sm:$0xff]  ;;  %v5172_v48 = vpack.c.bf16 %v465_v36, %v461_v35  ;;  %v5176_v52 = vpack.c.bf16 %v474_v40, %v470_v39  ;;  %v469_v53 = vld [vmem:[#allocation3 + $0x1c0] sm:$0xff]  ;;  %v5180_v56 = vpack.c.bf16 %v468_v44, %v464_v43  ;;  %v620_v57 = vld [vmem:[#allocation6 + $0x8] sm:$0xff] }
  0x64   :  { %3668 = vmatpush1.bf16.msra.mxu0 %v5134_v13  ;;  %242 = vmatprep.mubr.f32.mxu0 %v5910_v0  ;;  %v463_v49 = vld [vmem:[#allocation3 + $0x190] sm:$0xff]  ;;  %v473_v54 = vld [vmem:[#allocation3 + $0x1e0] sm:$0xff]  ;;  %v622_v59 = vld [vmem:[#allocation6 + $0x18] sm:$0xff] }
  0x65   :  { %3670 = vmatprep.subr.bf16.mxu0 %v5138_v17  ;;  %349 = vmatprep.mubr.f32.mxu1 %v5910_v0  ;;  %5948 = vst [vmem:[#allocation28_spill] sm:$0xff] %v5172_v48  ;;  %v467_v50 = vld [vmem:[#allocation3 + $0x1b0] sm:$0xff]  ;;  %5949 = vst [vmem:[#allocation29_spill] sm:$0xff] %v5176_v52  ;;  %v472_v61 = vld [vmem:[#allocation3 + $0x1d8] sm:$0xff]  ;;  %v5191_v3 = vpack.c.bf16 %v473_v54, %v469_v53  ;;  %v5195_v7 = vpack.c.bf16 %v622_v59, %v620_v57 }
  0x66   :  { %3168 = vmatmul.mubr.msk.f32.gmra.mrb[8].mxu1 %vm123_vm0, %v90_v12  ;;  %3698 = vmatprep.subr.bf16.mxu1 %v5142_v20  ;;  %v5184_v60 = vpack.c.bf16 %v467_v50, %v463_v49  ;;  %v476_v63 = vld [vmem:[#allocation3 + $0x1f8] sm:$0xff]  ;;  %v471_v4 = vld [vmem:[#allocation3 + $0x1d0] sm:$0xff]  ;;  %v619_v10 = vld [vmem:[#allocation6] sm:$0xff] }
  0x67   :  { %3161 = vmatmul.mubr.msk.f32.gmra.mrb[10].mxu0 %vm123_vm0, %v91_v27  ;;  %3700 = vmatpush1.bf16.msra.mxu1 %v5146_v24  ;;  %v93_v1 = vld [vmem:[%s5889_s0 + $0x38] sm:$0xff]  ;;  %5950 = vst [vmem:[#allocation30_spill] sm:$0xff] %v5191_v3  ;;  %v475_v6 = vld [vmem:[#allocation3 + $0x1f0] sm:$0xff]  ;;  %5951 = vst [vmem:[#allocation31_spill] sm:$0xff] %v5195_v7  ;;  %v5199_v12 = vpack.c.bf16 %v476_v63, %v472_v61 }
  0x68   :  { %3672 = vmatpush1.bf16.msra.mxu0 %v5153_v29  ;;  %248 = vmatprep.mubr.f32.mxu0 %v5910_v0  ;;  %v621_v11 = vld [vmem:[#allocation6 + $0x10] sm:$0xff]  ;;  %v624_v14 = vld [vmem:[#allocation6 + $0x28] sm:$0xff]  ;;  %v626_v15 = vld [vmem:[#allocation6 + $0x38] sm:$0xff]  ;;  %v5203_v18 = vpack.c.bf16 %v475_v6, %v471_v4 }
  0x69   :  { %3674 = vmatprep.subr.bf16.mxu0 %v5157_v32  ;;  %355 = vmatprep.mubr.f32.mxu1 %v5910_v0  ;;  %v5207_v19 = vpack.c.bf16 %v621_v11, %v619_v10  ;;  %v5211_v21 = vpack.c.bf16 %v626_v15, %v624_v14  ;;  %v623_v23 = vld [vmem:[#allocation6 + $0x20] sm:$0xff]  ;;  %v625_v25 = vld [vmem:[#allocation6 + $0x30] sm:$0xff]  ;;  %v628_v26 = vld [vmem:[#allocation6 + $0x48] sm:$0xff] }
  0x6a   :  { %3169 = vmatmul.mubr.msk.f32.gmra.mrb[10].mxu1 %vm123_vm0, %v91_v27  ;;  %3702 = vmatprep.subr.bf16.mxu1 %v5161_v38  ;;  %v630_v27 = vld [vmem:[#allocation6 + $0x58] sm:$0xff]  ;;  %v5219_v30 = vpack.c.bf16 %v625_v25, %v623_v23  ;;  %v627_v35 = vld [vmem:[#allocation6 + $0x40] sm:$0xff]  ;;  %v629_v36 = vld [vmem:[#allocation6 + $0x50] sm:$0xff] }
  0x6b   :  { %3162 = vmatmul.mubr.msk.f32.gmra.mrb[12].mxu0 %vm123_vm0, %v92_v45  ;;  %3704 = vmatpush1.bf16.msra.mxu1 %v5165_v42  ;;  %v5222_v31 = vpack.c.bf16 %v630_v27, %v628_v26  ;;  %v632_v39 = vld [vmem:[#allocation6 + $0x68] sm:$0xff]  ;;  %v634_v40 = vld [vmem:[#allocation6 + $0x78] sm:$0xff]  ;;  %v5227_v43 = vpack.c.bf16 %v629_v36, %v627_v35  ;;  %v633_v49 = vld [vmem:[#allocation6 + $0x70] sm:$0xff] }
  0x6c   :  { %3676 = vmatpush1.bf16.msra.mxu0 %v5172_v48  ;;  %254 = vmatprep.mubr.f32.mxu0 %v5910_v0  ;;  %v5230_v44 = vpack.c.bf16 %v634_v40, %v632_v39  ;;  %v636_v50 = vld [vmem:[#allocation6 + $0x88] sm:$0xff]  ;;  %v638_v53 = vld [vmem:[#allocation6 + $0x98] sm:$0xff]  ;;  %v635_v59 = vld [vmem:[#allocation6 + $0x80] sm:$0xff] }
  0x6d   :  { %3678 = vmatprep.subr.bf16.mxu0 %v5176_v52  ;;  %361 = vmatprep.mubr.f32.mxu1 %v5910_v0  ;;  %v5236_v57 = vpack.c.bf16 %v638_v53, %v636_v50  ;;  %v637_v61 = vld [vmem:[#allocation6 + $0x90] sm:$0xff]  ;;  %v640_v63 = vld [vmem:[#allocation6 + $0xa8] sm:$0xff]  ;;  %v639_v10 = vld [vmem:[#allocation6 + $0xa0] sm:$0xff] }
  0x6e   :  { %3170 = vmatmul.mubr.msk.f32.gmra.mrb[12].mxu1 %vm123_vm0, %v92_v45  ;;  %3706 = vmatprep.subr.bf16.mxu1 %v5180_v56  ;;  %v631_v45 = vld [vmem:[#allocation6 + $0x60] sm:$0xff]  ;;  %v5239_v4 = vpack.c.bf16 %v637_v61, %v635_v59  ;;  %v641_v11 = vld [vmem:[#allocation6 + $0xb0] sm:$0xff]  ;;  %v644_v14 = vld [vmem:[#allocation6 + $0xc8] sm:$0xff] }
  0x6f   :  { %3163 = vmatmul.mubr.msk.f32.gmra.mrb[14].mxu0 %vm123_vm0, %v93_v1  ;;  %3708 = vmatpush1.bf16.msra.mxu1 %v5184_v60  ;;  %v5233_v54 = vpack.c.bf16 %v633_v49, %v631_v45  ;;  %v646_v15 = vld [vmem:[#allocation6 + $0xd8] sm:$0xff]  ;;  %v5245_v23 = vpack.c.bf16 %v641_v11, %v639_v10  ;;  %v643_v26 = vld [vmem:[#allocation6 + $0xc0] sm:$0xff]  ;;  %v645_v27 = vld [vmem:[#allocation6 + $0xd0] sm:$0xff] }
  0x70   :  { %3680 = vmatpush1.bf16.msra.mxu0 %v5191_v3  ;;  %541 = vmatprep.mubr.f32.mxu0 %v5910_v0  ;;  %v5248_v25 = vpack.c.bf16 %v646_v15, %v644_v14  ;;  %v648_v35 = vld [vmem:[#allocation6 + $0xe8] sm:$0xff]  ;;  %v650_v36 = vld [vmem:[#allocation6 + $0xf8] sm:$0xff]  ;;  %v5251_v39 = vpack.c.bf16 %v645_v27, %v643_v26  ;;  %v647_v45 = vld [vmem:[#allocation6 + $0xe0] sm:$0xff] }
  0x71   :  { %3714 = vmatprep.subr.bf16.mxu0 %v5195_v7  ;;  %367 = vmatprep.mubr.f32.mxu1 %v5910_v0  ;;  %v5254_v40 = vpack.c.bf16 %v650_v36, %v648_v35  ;;  %v649_v49 = vld [vmem:[#allocation6 + $0xf0] sm:$0xff]  ;;  %v740_v53 = vld [vmem:[#allocation8] sm:$0xff]  ;;  %v741_v59 = vld [vmem:[#allocation8 + $0x8] sm:$0xff] }
  0x72   :  { %3171 = vmatmul.mubr.msk.f32.gmra.mrb[14].mxu1 %vm123_vm0, %v93_v1  ;;  %3710 = vmatprep.subr.bf16.mxu1 %v5199_v12  ;;  %v642_v1 = vld [vmem:[#allocation6 + $0xb8] sm:$0xff]  ;;  %v5257_v50 = vpack.c.bf16 %v649_v49, %v647_v45  ;;  %v742_v61 = vld [vmem:[#allocation8 + $0x10] sm:$0xff]  ;;  %v744_v14 = vld [vmem:[#allocation8 + $0x20] sm:$0xff] }
  0x73   :  { %542 = vmatmul.mubr.f32.vlgmr.msra.gmra.mrb[0].mxu0 %v5910_v0  ;;  %3712 = vmatpush1.bf16.msra.mxu1 %v5203_v18  ;;  %v5242_v6 = vpack.c.bf16 %v642_v1, %v640_v63  ;;  %v5902_v63 = vmov 0.0|0.0   ;;  %v5281_v1 = vpack.c.bf16 %v741_v59, %v740_v53  ;;  %v743_v10 = vld [vmem:[#allocation8 + $0x18] sm:$0xff]  ;;  %v745_v15 = vld [vmem:[#allocation8 + $0x28] sm:$0xff]  ;;  %v746_v27 = vld [vmem:[#allocation8 + $0x30] sm:$0xff] }
  0x74   :  { %3716 = vmatpush1.bf16.msra.mxu0 %v5207_v19  ;;  %612 = vmatprep.mubr.f32.mxu1 %v5910_v0  ;;  %v5284_v11 = vpack.c.bf16 %v743_v10, %v742_v61  ;;  %v5289_v26 = vpack.c.bf16 %v745_v15, %v744_v14  ;;  %v747_v35 = vld [vmem:[#allocation8 + $0x38] sm:$0xff]  ;;  %v748_v45 = vld [vmem:[#allocation8 + $0x40] sm:$0xff]  ;;  %v749_v49 = vld [vmem:[#allocation8 + $0x48] sm:$0xff] }
  0x75   :  { %3718 = vmatprep.subr.bf16.mxu0 %v5211_v21  ;;  %715 = vmatprep.mubr.f32.mxu0 %v5910_v0  ;;  %v5293_v36 = vpack.c.bf16 %v747_v35, %v746_v27  ;;  %v5297_v53 = vpack.c.bf16 %v749_v49, %v748_v45  ;;  %v750_v59 = vld [vmem:[#allocation8 + $0x50] sm:$0xff]  ;;  %v751_v61 = vld [vmem:[#allocation8 + $0x58] sm:$0xff]  ;;  %v752_v14 = vld [vmem:[#allocation8 + $0x60] sm:$0xff] }
  0x76   :  { %613 = vmatmul.mubr.f32.vlgmr.msra.gmra.mrb[0].mxu1 %v5910_v0  ;;  %3745 = vmatprep.subr.bf16.mxu1 %v5902_v63  ;;  %v5301_v10 = vpack.c.bf16 %v751_v61, %v750_v59  ;;  %v753_v15 = vld [vmem:[#allocation8 + $0x68] sm:$0xff]  ;;  %v754_v35 = vld [vmem:[#allocation8 + $0x70] sm:$0xff]  ;;  %v755_v45 = vld [vmem:[#allocation8 + $0x78] sm:$0xff] }
  0x77   :  { %3747 = vmatpush3.bf16.msra.mxu1 %v5281_v1  ;;  %v5305_v27 = vpack.c.bf16 %v753_v15, %v752_v14  ;;  %v5309_v49 = vpack.c.bf16 %v755_v45, %v754_v35  ;;  %3358 = vmatprep.mubr.msk.f32.mxu1 %vm4937_vm1, %v5910_v0  ;;  %v103_v14 = vlaneseq }
  0x78   :  { %3720 = vmatpush1.bf16.msra.mxu0 %v5219_v30  ;;  %3748 = vmatprep.subr.bf16.mxu1 %v5902_v63 }
  0x79   :  { %3722 = vmatprep.subr.bf16.mxu0 %v5222_v31  ;;  %v104_v15 = vshrl.u32 %v103_v14, 7 }
  0x7b   :  { %3750 = vmatpush3.bf16.msra.mxu1 %v5284_v11  ;;  %v113_v35 = vsub.s32 2, %v104_v15 }
  0x7c   :  { %3724 = vmatpush1.bf16.msra.mxu0 %v5227_v43  ;;  %3751 = vmatprep.subr.bf16.mxu1 %v5902_v63 }
  0x7d   :  { %3726 = vmatprep.subr.bf16.mxu0 %v5230_v44 }
  0x7f   :  { %3753 = vmatpush3.bf16.msra.mxu1 %v5289_v26 }
  0x80   :  { %3728 = vmatpush1.bf16.msra.mxu0 %v5233_v54  ;;  %3754 = vmatprep.subr.bf16.mxu1 %v5902_v63 }
  0x81   :  { %3730 = vmatprep.subr.bf16.mxu0 %v5236_v57 }
  0x83   :  { %3756 = vmatpush3.bf16.msra.mxu1 %v5293_v36 }
  0x84   :  { %3732 = vmatpush1.bf16.msra.mxu0 %v5239_v4  ;;  %3757 = vmatprep.subr.bf16.mxu1 %v5902_v63 }
  0x85   :  { %3734 = vmatprep.subr.bf16.mxu0 %v5242_v6 }
  0x87   :  { %3759 = vmatpush3.bf16.msra.mxu1 %v5297_v53 }
  0x88   :  { %3736 = vmatpush1.bf16.msra.mxu0 %v5245_v23  ;;  %3760 = vmatprep.subr.bf16.mxu1 %v5902_v63 }
  0x89   :  { %3738 = vmatprep.subr.bf16.mxu0 %v5248_v25 }
  0x8b   :  { %3762 = vmatpush3.bf16.msra.mxu1 %v5301_v10 }
  0x8c   :  { %3740 = vmatpush1.bf16.msra.mxu0 %v5251_v39  ;;  %3763 = vmatprep.subr.bf16.mxu1 %v5902_v63 }
  0x8d   :  { %3742 = vmatprep.subr.bf16.mxu0 %v5254_v40 }
  0x8f   :  { %3765 = vmatpush3.bf16.msra.mxu1 %v5305_v27 }
  0x90   :  { %3744 = vmatpush1.bf16.msra.mxu0 %v5257_v50  ;;  %3766 = vmatprep.subr.bf16.mxu1 %v5902_v63  ;;  %v85_v63 = vld [vmem:[%s5894_s5] sm:$0xf] }
  0x91   :  { %3770 = vmatprep.subr.bf16.mxu0 %v5046_v9 }
  0x93   :  { %716 = vmatmul.mubr.f32.vlgmr.msra.gmra.mrb[0].mxu0 %v5910_v0  ;;  %3768 = vmatpush3.bf16.msra.mxu1 %v5309_v49 }
  0x94   :  { %3772 = vmatpush1.bf16.msra.mxu0 %v5060_v16  ;;  %904 = vmatprep.mubr.f32.mxu0 %v5910_v0 }
  0x95   :  { %3774 = vmatprep.subr.bf16.mxu0 %v5066_v22  ;;  %3802 = vmatprep.subr.bf16.mxu1 %v5069_v28 }
  0x98   :  { %3776 = vmatpush1.bf16.msra.mxu0 %v5076_v33 }
  0x99   :  { %3778 = vmatprep.subr.bf16.mxu0 %v5082_v37 }
  0x9c   :  { %3780 = vmatpush1.bf16.msra.mxu0 %v5096_v47 }
  0x9d   :  { %3782 = vmatprep.subr.bf16.mxu0 %v5100_v51 }
  0xa0   :  { %3784 = vmatpush1.bf16.msra.mxu0 %v5115_v62 }
  0xa1   :  { %3786 = vmatprep.subr.bf16.mxu0 %v5119_v2 }
  0xa4   :  { %3788 = vmatpush1.bf16.msra.mxu0 %v5134_v13 }
  0xa5   :  { %3790 = vmatprep.subr.bf16.mxu0 %v5138_v17 }
  0xa8   :  { %3792 = vmatpush1.bf16.msra.mxu0 %v5153_v29 }
  0xa9   :  { %3794 = vmatprep.subr.bf16.mxu0 %v5157_v32  ;;  %v5322_v32 = vrot.slane %v85_v63, %v113_v35 }
  0xac   :  { %3796 = vmatpush1.bf16.msra.mxu0 %v5172_v48 }
  0xad   :  { %3798 = vmatprep.subr.bf16.mxu0 %v5176_v52 }
  0xb0   :  { %3800 = vmatpush1.bf16.msra.mxu0 %v5191_v3  ;;  %v109_v3 = vsub.s32 1, %v104_v15 }
  0xb1   :  { %3834 = vmatprep.subr.bf16.mxu0 %v5195_v7  ;;  %v105_v7 = vsub.s32 0, %v104_v15 }
  0xb2   :  { %v5320_v52 = vrot.slane %v85_v63, %v109_v3 }
  0xb3   :  { %v5318_v45 = vrot.slane %v85_v63, %v105_v7 }
  0xb5   :  { %5952 = vst [vmem:[#allocation32_spill] sm:$0xff] %v5318_v45 }
 0x149   :  { %v614_v59 = vpop.f32.mrb[0].mxu1 }
 0x14a   :  { %v616_v61 = vpop.f32.mrb[1].mxu1  ;;  %v4649_v2 = vadd.f32 %v614_v59, %v5322_v32 }
 0x166   :  { %v717_v48 = vpop.f32.mrb[0].mxu0 }
 0x167   :  { %v4633_v0 = vadd.f32 %v717_v48, %v5318_v45  ;;  %v719_v29 = vpop.f32.mrb[1].mxu0 }
 0x168   :  { %v4634_v17 = vadd.f32 %v719_v29, %v5320_v52 }
 0x169   :  { %v727_v14 = vmul.f32 0.5, %v4633_v0  ;;  %v5953_v0 = vmov 0.0  }
 0x16a   :  { %v732_v13 = vmul.f32 0.5, %v4634_v17 }
 0x16b   :  { %4727 = vtanh.f32 %v727_v14 }
 0x16c   :  { %4729 = vtanh.f32 %v732_v13 }
 0x16d   :  { %4731 = vtanh.f32 %v4649_v2 }
 0x175   :  { %v4728_v62 = vpop.eup %4727 }
 0x176   :  { %v4730_v7 = vpop.eup %4729  ;;  %v729_v51 = vmul.f32 0.5, %v4728_v62 }
 0x177   :  { %v734_v3 = vmul.f32 0.5, %v4730_v7  ;;  %v4732_v37 = vpop.eup %4731 }
 0x178   :  { %v730_v47 = vadd.f32 0.5, %v729_v51 }
 0x179   :  { %v735_v35 = vadd.f32 0.5, %v734_v3  ;;  %v5958_v3 = vld [vmem:[#allocation20_spill] sm:$0xff] }
 0x17a   :  { %v738_v33 = vmul.f32 %v4732_v37, %v730_v47 }
 0x17b   :  { %v737_v22 = vmul.f32 0.0, %v735_v35  ;;  %v5959_v35 = vld [vmem:[#allocation21_spill] sm:$0xff] }
 0x17d   :  { %v5327_v48 = vadd.f32 %v738_v33, %v737_v22  ;;  %v5954_v22 = vmov 0.0|0.0   ;;  %v117_v33 = vsub.s32 3, %v104_v15  ;;  %v5957_v15 = vld [vmem:[#allocation19_spill] sm:$0xff] }
 0x17f   :  { %3359 = vmatmul.mubr.f32.vlgmr.msra.gmra.mrb[16].mxu1 %v5327_v48  ;;  %v5347_v37 = vrot.slane %v85_v63, %v117_v33  ;;  %v5955_v63 = vld [vmem:[#allocation17_spill] sm:$0xff]  ;;  %v5960_v33 = vld [vmem:[#allocation22_spill] sm:$0xff] }
 0x180   :  { %3804 = vmatpush1.bf16.msra.mxu1 %v5078_v34  ;;  %975 = vmatprep.mubr.f32.mxu1 %v5953_v0 }
 0x181   :  { %3806 = vmatprep.subr.bf16.mxu1 %v5085_v41  ;;  %v4650_v47 = vadd.f32 %v616_v61, %v5347_v37  ;;  %v5956_v61 = vld [vmem:[#allocation18_spill] sm:$0xff] }
 0x184   :  { %3808 = vmatpush1.bf16.msra.mxu1 %v5092_v46 }
 0x185   :  { %3810 = vmatprep.subr.bf16.mxu1 %v5104_v55 }
 0x188   :  { %3812 = vmatpush1.bf16.msra.mxu1 %v5108_v58 }
 0x189   :  { %3814 = vmatprep.subr.bf16.mxu1 %v5123_v5 }
 0x18c   :  { %3816 = vmatpush1.bf16.msra.mxu1 %v5127_v8 }
 0x18d   :  { %3818 = vmatprep.subr.bf16.mxu1 %v5142_v20 }
 0x190   :  { %3820 = vmatpush1.bf16.msra.mxu1 %v5146_v24 }
 0x191   :  { %3822 = vmatprep.subr.bf16.mxu1 %v5161_v38 }
 0x194   :  { %3824 = vmatpush1.bf16.msra.mxu1 %v5165_v42 }
 0x195   :  { %3826 = vmatprep.subr.bf16.mxu1 %v5180_v56 }
 0x198   :  { %3828 = vmatpush1.bf16.msra.mxu1 %v5184_v60 }
 0x199   :  { %3830 = vmatprep.subr.bf16.mxu1 %v5199_v12 }
 0x19c   :  { %3832 = vmatpush1.bf16.msra.mxu1 %v5203_v18 }
 0x19d   :  { %3865 = vmatprep.subr.bf16.mxu1 %v5954_v22 }
 0x252   :  { %v822_v51 = vpop.f32.mrb[16].mxu1 }
 0x253   :  { %v826_v62 = vadd.f32 %v4650_v47, %v822_v51  ;;  %v3360_v2 = vpop.f32.mrb[17].mxu1  ;;  %v5961_v47 = vld [vmem:[#allocation23_spill] sm:$0xff]  ;;  %v5962_v51 = vld [vmem:[#allocation24_spill] sm:$0xff] }
 0x254   :  { %v5964_v2 = vld [vmem:[#allocation26_spill] sm:$0xff] }
 0x255   :  { %v827_v13 = vmul.f32 0.5, %v826_v62  ;;  %v5963_v62 = vld [vmem:[#allocation25_spill] sm:$0xff] }
 0x257   :  { %4733 = vtanh.f32 %v827_v13  ;;  %v5965_v13 = vld [vmem:[#allocation27_spill] sm:$0xff] }
 0x258   :  { %4735 = vtanh.f32 %v5327_v48 }
 0x261   :  { %v4734_v17 = vpop.eup %4733 }
 0x262   :  { %v829_v29 = vmul.f32 0.5, %v4734_v17  ;;  %v4736_v14 = vpop.eup %4735  ;;  %v5966_v17 = vld [vmem:[#allocation28_spill] sm:$0xff] }
 0x264   :  { %v830_v59 = vadd.f32 0.5, %v829_v29  ;;  %v5967_v29 = vld [vmem:[#allocation29_spill] sm:$0xff] }
 0x266   :  { %v832_v7 = vmul.f32 %v4736_v14, %v830_v59  ;;  %v5968_v59 = vld [vmem:[#allocation30_spill] sm:$0xff]  ;;  %v5969_v14 = vld [vmem:[#allocation31_spill] sm:$0xff] }
 0x268   :  { %905 = vmatmul.mubr.f32.vlgmr.msra.gmra.mrb[2].mxu0 %v832_v7  ;;  %976 = vmatmul.mubr.f32.vlgmr.msra.gmra.mrb[2].mxu1 %v832_v7 }
 0x269   :  { %3836 = vmatpush1.bf16.msra.mxu0 %v5207_v19  ;;  %1046 = vmatprep.mubr.f32.mxu0 %v5953_v0 }
 0x26a   :  { %3838 = vmatprep.subr.bf16.mxu0 %v5211_v21  ;;  %3867 = vmatpush3.bf16.msra.mxu1 %v5281_v1 }
 0x26b   :  { %3868 = vmatprep.subr.bf16.mxu1 %v5954_v22  ;;  %3393 = vmatprep.mubr.msk.f32.mxu1 %vm4937_vm1, %v5953_v0 }
 0x26d   :  { %3840 = vmatpush1.bf16.msra.mxu0 %v5219_v30 }
 0x26e   :  { %3842 = vmatprep.subr.bf16.mxu0 %v5222_v31  ;;  %3870 = vmatpush3.bf16.msra.mxu1 %v5284_v11 }
 0x26f   :  { %3871 = vmatprep.subr.bf16.mxu1 %v5954_v22 }
 0x271   :  { %3844 = vmatpush1.bf16.msra.mxu0 %v5227_v43 }
 0x272   :  { %3846 = vmatprep.subr.bf16.mxu0 %v5230_v44  ;;  %3873 = vmatpush3.bf16.msra.mxu1 %v5289_v26 }
 0x273   :  { %3874 = vmatprep.subr.bf16.mxu1 %v5954_v22 }
 0x275   :  { %3848 = vmatpush1.bf16.msra.mxu0 %v5233_v54 }
 0x276   :  { %3850 = vmatprep.subr.bf16.mxu0 %v5236_v57  ;;  %3876 = vmatpush3.bf16.msra.mxu1 %v5293_v36 }
 0x277   :  { %3877 = vmatprep.subr.bf16.mxu1 %v5954_v22 }
 0x279   :  { %3852 = vmatpush1.bf16.msra.mxu0 %v5239_v4 }
 0x27a   :  { %3854 = vmatprep.subr.bf16.mxu0 %v5242_v6  ;;  %3879 = vmatpush3.bf16.msra.mxu1 %v5297_v53 }
 0x27b   :  { %3880 = vmatprep.subr.bf16.mxu1 %v5954_v22 }
 0x27d   :  { %3856 = vmatpush1.bf16.msra.mxu0 %v5245_v23 }
 0x27e   :  { %3858 = vmatprep.subr.bf16.mxu0 %v5248_v25  ;;  %3882 = vmatpush3.bf16.msra.mxu1 %v5301_v10 }
 0x27f   :  { %3883 = vmatprep.subr.bf16.mxu1 %v5954_v22 }
 0x281   :  { %3860 = vmatpush1.bf16.msra.mxu0 %v5251_v39 }
 0x282   :  { %3862 = vmatprep.subr.bf16.mxu0 %v5254_v40  ;;  %3885 = vmatpush3.bf16.msra.mxu1 %v5305_v27 }
 0x283   :  { %3886 = vmatprep.subr.bf16.mxu1 %v5954_v22 }
 0x285   :  { %3864 = vmatpush1.bf16.msra.mxu0 %v5257_v50 }
 0x286   :  { %3888 = vmatpush3.bf16.msra.mxu1 %v5309_v49  ;;  %3890 = vmatprep.subr.bf16.mxu0 %v5046_v9 }
 0x287   :  { %3922 = vmatprep.subr.bf16.mxu1 %v5069_v28 }
 0x288   :  { %1047 = vmatmul.mubr.f32.vlgmr.msra.gmra.mrb[2].mxu0 %v5327_v48 }
 0x289   :  { %3892 = vmatpush1.bf16.msra.mxu0 %v5060_v16  ;;  %1219 = vmatprep.mubr.f32.mxu0 %v5953_v0 }
 0x28a   :  { %3894 = vmatprep.subr.bf16.mxu0 %v5955_v63 }
 0x28d   :  { %3896 = vmatpush1.bf16.msra.mxu0 %v5956_v61 }
 0x28e   :  { %3898 = vmatprep.subr.bf16.mxu0 %v5957_v15 }
 0x291   :  { %3900 = vmatpush1.bf16.msra.mxu0 %v5958_v3 }
 0x292   :  { %3902 = vmatprep.subr.bf16.mxu0 %v5959_v35 }
 0x295   :  { %3904 = vmatpush1.bf16.msra.mxu0 %v5960_v33 }
 0x296   :  { %3906 = vmatprep.subr.bf16.mxu0 %v5961_v47 }
 0x299   :  { %3908 = vmatpush1.bf16.msra.mxu0 %v5962_v51 }
 0x29a   :  { %3910 = vmatprep.subr.bf16.mxu0 %v5963_v62 }
 0x29d   :  { %3912 = vmatpush1.bf16.msra.mxu0 %v5964_v2 }
 0x29e   :  { %3914 = vmatprep.subr.bf16.mxu0 %v5965_v13 }
 0x2a1   :  { %3916 = vmatpush1.bf16.msra.mxu0 %v5966_v17 }
 0x2a2   :  { %3918 = vmatprep.subr.bf16.mxu0 %v5967_v29 }
 0x2a5   :  { %3920 = vmatpush1.bf16.msra.mxu0 %v5968_v59 }
 0x2a6   :  { %3954 = vmatprep.subr.bf16.mxu0 %v5969_v14 }
 0x33b   :  { %v977_v7 = vpop.f32.mrb[2].mxu1 }
 0x33c   :  { %v979_v33 = vpop.f32.mrb[3].mxu1  ;;  %v4651_v13 = vadd.f32 %v977_v7, %v5322_v32  ;;  %v5976_v7 = vld [vmem:[#allocation22_spill] sm:$0xff] }
 0x35b   :  { %v1048_v35 = vpop.f32.mrb[2].mxu0 }
 0x35c   :  { %v4635_v47 = vadd.f32 %v1048_v35, %v5318_v45  ;;  %v1050_v51 = vpop.f32.mrb[3].mxu0 }
 0x35d   :  { %v4636_v62 = vadd.f32 %v1050_v51, %v5320_v52 }
 0x35e   :  { %v1058_v3 = vmul.f32 0.5, %v4635_v47 }
 0x35f   :  { %v1063_v2 = vmul.f32 0.5, %v4636_v62 }
 0x360   :  { %4737 = vtanh.f32 %v1058_v3 }
 0x361   :  { %4739 = vtanh.f32 %v1063_v2 }
 0x362   :  { %4741 = vtanh.f32 %v4651_v13  ;;  %v5971_v13 = vld [vmem:[#allocation17_spill] sm:$0xff] }
 0x36a   :  { %v4738_v29 = vpop.eup %4737 }
 0x36b   :  { %v4740_v17 = vpop.eup %4739  ;;  %v1060_v59 = vmul.f32 0.5, %v4738_v29  ;;  %v5973_v29 = vld [vmem:[#allocation19_spill] sm:$0xff] }
 0x36c   :  { %v1065_v15 = vmul.f32 0.5, %v4740_v17  ;;  %v4742_v61 = vpop.eup %4741  ;;  %v5972_v17 = vld [vmem:[#allocation18_spill] sm:$0xff] }
 0x36d   :  { %v1061_v14 = vadd.f32 0.5, %v1060_v59  ;;  %v5974_v59 = vld [vmem:[#allocation20_spill] sm:$0xff] }
 0x36e   :  { %v1066_v63 = vadd.f32 0.5, %v1065_v15 }
 0x36f   :  { %v1069_v16 = vmul.f32 %v4742_v61, %v1061_v14  ;;  %v5975_v14 = vld [vmem:[#allocation21_spill] sm:$0xff] }
 0x370   :  { %v1068_v35 = vmul.f32 %v1066_v63, %v5327_v48 }
 0x372   :  { %v5408_v45 = vadd.f32 %v1069_v16, %v1068_v35  ;;  %v4652_v16 = vadd.f32 %v979_v33, %v5347_v37  ;;  %v5970_v33 = vld [vmem:[#allocation16_spill] sm:$0xff]  ;;  %v5977_v35 = vld [vmem:[#allocation23_spill] sm:$0xff] }
 0x374   :  { %3394 = vmatmul.mubr.f32.vlgmr.msra.gmra.mrb[18].mxu1 %v5408_v45 }
 0x375   :  { %3924 = vmatpush1.bf16.msra.mxu1 %v5078_v34  ;;  %1290 = vmatprep.mubr.f32.mxu1 %v5953_v0 }
 0x376   :  { %3926 = vmatprep.subr.bf16.mxu1 %v5085_v41 }
 0x379   :  { %3928 = vmatpush1.bf16.msra.mxu1 %v5092_v46 }
 0x37a   :  { %3930 = vmatprep.subr.bf16.mxu1 %v5104_v55 }
 0x37d   :  { %3932 = vmatpush1.bf16.msra.mxu1 %v5108_v58 }
 0x37e   :  { %3934 = vmatprep.subr.bf16.mxu1 %v5123_v5 }
 0x381   :  { %3936 = vmatpush1.bf16.msra.mxu1 %v5127_v8 }
 0x382   :  { %3938 = vmatprep.subr.bf16.mxu1 %v5142_v20 }
 0x385   :  { %3940 = vmatpush1.bf16.msra.mxu1 %v5146_v24 }
 0x386   :  { %3942 = vmatprep.subr.bf16.mxu1 %v5161_v38 }
 0x389   :  { %3944 = vmatpush1.bf16.msra.mxu1 %v5165_v42 }
 0x38a   :  { %3946 = vmatprep.subr.bf16.mxu1 %v5180_v56 }
 0x38d   :  { %3948 = vmatpush1.bf16.msra.mxu1 %v5184_v60 }
 0x38e   :  { %3950 = vmatprep.subr.bf16.mxu1 %v5199_v12 }
 0x391   :  { %3952 = vmatpush1.bf16.msra.mxu1 %v5203_v18 }
 0x392   :  { %3985 = vmatprep.subr.bf16.mxu1 %v5954_v22 }
 0x447   :  { %v1137_v48 = vpop.f32.mrb[18].mxu1 }
 0x448   :  { %v1141_v63 = vadd.f32 %v4652_v16, %v1137_v48  ;;  %v3395_v61 = vpop.f32.mrb[19].mxu1  ;;  %v5978_v16 = vld [vmem:[#allocation24_spill] sm:$0xff]  ;;  %v5979_v48 = vld [vmem:[#allocation25_spill] sm:$0xff] }
 0x449   :  { %v5981_v61 = vld [vmem:[#allocation27_spill] sm:$0xff] }
 0x44a   :  { %v1142_v15 = vmul.f32 0.5, %v1141_v63  ;;  %v5980_v63 = vld [vmem:[#allocation26_spill] sm:$0xff] }
 0x44c   :  { %4743 = vtanh.f32 %v1142_v15  ;;  %v5982_v15 = vld [vmem:[#allocation28_spill] sm:$0xff] }
 0x44d   :  { %4745 = vtanh.f32 %v5408_v45 }
 0x456   :  { %v4744_v3 = vpop.eup %4743 }
 0x457   :  { %v1144_v47 = vmul.f32 0.5, %v4744_v3  ;;  %v4746_v62 = vpop.eup %4745  ;;  %v5983_v3 = vld [vmem:[#allocation29_spill] sm:$0xff] }
 0x459   :  { %v1145_v51 = vadd.f32 0.5, %v1144_v47  ;;  %v5984_v47 = vld [vmem:[#allocation30_spill] sm:$0xff] }
 0x45b   :  { %v1147_v2 = vmul.f32 %v4746_v62, %v1145_v51  ;;  %v5985_v51 = vld [vmem:[#allocation31_spill] sm:$0xff] }
 0x45d   :  { %1220 = vmatmul.mubr.f32.vlgmr.msra.gmra.mrb[4].mxu0 %v1147_v2  ;;  %1291 = vmatmul.mubr.f32.vlgmr.msra.gmra.mrb[4].mxu1 %v1147_v2 }
 0x45e   :  { %3956 = vmatpush1.bf16.msra.mxu0 %v5207_v19  ;;  %1361 = vmatprep.mubr.f32.mxu0 %v5953_v0 }
 0x45f   :  { %3958 = vmatprep.subr.bf16.mxu0 %v5211_v21  ;;  %3987 = vmatpush3.bf16.msra.mxu1 %v5281_v1 }
 0x460   :  { %3988 = vmatprep.subr.bf16.mxu1 %v5954_v22  ;;  %3428 = vmatprep.mubr.msk.f32.mxu1 %vm4937_vm1, %v5953_v0 }
 0x462   :  { %3960 = vmatpush1.bf16.msra.mxu0 %v5219_v30 }
 0x463   :  { %3962 = vmatprep.subr.bf16.mxu0 %v5222_v31  ;;  %3990 = vmatpush3.bf16.msra.mxu1 %v5284_v11 }
 0x464   :  { %3991 = vmatprep.subr.bf16.mxu1 %v5954_v22 }
 0x466   :  { %3964 = vmatpush1.bf16.msra.mxu0 %v5227_v43 }
 0x467   :  { %3966 = vmatprep.subr.bf16.mxu0 %v5230_v44  ;;  %3993 = vmatpush3.bf16.msra.mxu1 %v5289_v26 }
 0x468   :  { %3994 = vmatprep.subr.bf16.mxu1 %v5954_v22 }
 0x46a   :  { %3968 = vmatpush1.bf16.msra.mxu0 %v5233_v54 }
 0x46b   :  { %3970 = vmatprep.subr.bf16.mxu0 %v5236_v57  ;;  %3996 = vmatpush3.bf16.msra.mxu1 %v5293_v36 }
 0x46c   :  { %3997 = vmatprep.subr.bf16.mxu1 %v5954_v22 }
 0x46e   :  { %3972 = vmatpush1.bf16.msra.mxu0 %v5239_v4 }
 0x46f   :  { %3974 = vmatprep.subr.bf16.mxu0 %v5242_v6  ;;  %3999 = vmatpush3.bf16.msra.mxu1 %v5297_v53 }
 0x470   :  { %4000 = vmatprep.subr.bf16.mxu1 %v5954_v22 }
 0x472   :  { %3976 = vmatpush1.bf16.msra.mxu0 %v5245_v23 }
 0x473   :  { %3978 = vmatprep.subr.bf16.mxu0 %v5248_v25  ;;  %4002 = vmatpush3.bf16.msra.mxu1 %v5301_v10 }
 0x474   :  { %4003 = vmatprep.subr.bf16.mxu1 %v5954_v22 }
 0x476   :  { %3980 = vmatpush1.bf16.msra.mxu0 %v5251_v39 }
 0x477   :  { %3982 = vmatprep.subr.bf16.mxu0 %v5254_v40  ;;  %4005 = vmatpush3.bf16.msra.mxu1 %v5305_v27 }
 0x478   :  { %4006 = vmatprep.subr.bf16.mxu1 %v5954_v22 }
 0x47a   :  { %3984 = vmatpush1.bf16.msra.mxu0 %v5257_v50 }
 0x47b   :  { %4008 = vmatpush3.bf16.msra.mxu1 %v5309_v49  ;;  %4010 = vmatprep.subr.bf16.mxu0 %v5046_v9 }
 0x47c   :  { %4042 = vmatprep.subr.bf16.mxu1 %v5069_v28 }
 0x47d   :  { %1362 = vmatmul.mubr.f32.vlgmr.msra.gmra.mrb[4].mxu0 %v5408_v45 }
 0x47e   :  { %4012 = vmatpush1.bf16.msra.mxu0 %v5970_v33  ;;  %1534 = vmatprep.mubr.f32.mxu0 %v5953_v0 }
 0x47f   :  { %4014 = vmatprep.subr.bf16.mxu0 %v5971_v13 }
 0x482   :  { %4016 = vmatpush1.bf16.msra.mxu0 %v5972_v17 }
 0x483   :  { %4018 = vmatprep.subr.bf16.mxu0 %v5973_v29 }
 0x486   :  { %4020 = vmatpush1.bf16.msra.mxu0 %v5974_v59 }
 0x487   :  { %4022 = vmatprep.subr.bf16.mxu0 %v5975_v14 }
 0x48a   :  { %4024 = vmatpush1.bf16.msra.mxu0 %v5976_v7 }
 0x48b   :  { %4026 = vmatprep.subr.bf16.mxu0 %v5977_v35  ;;  %v5986_v35 = vld [vmem:[#allocation32_spill] sm:$0xff] }
 0x48e   :  { %4028 = vmatpush1.bf16.msra.mxu0 %v5978_v16 }
 0x48f   :  { %4030 = vmatprep.subr.bf16.mxu0 %v5979_v48 }
 0x492   :  { %4032 = vmatpush1.bf16.msra.mxu0 %v5980_v63 }
 0x493   :  { %4034 = vmatprep.subr.bf16.mxu0 %v5981_v61 }
 0x496   :  { %4036 = vmatpush1.bf16.msra.mxu0 %v5982_v15 }
 0x497   :  { %4038 = vmatprep.subr.bf16.mxu0 %v5983_v3 }
 0x49a   :  { %4040 = vmatpush1.bf16.msra.mxu0 %v5984_v47 }
 0x49b   :  { %4074 = vmatprep.subr.bf16.mxu0 %v5985_v51 }
 0x530   :  { %v1292_v62 = vpop.f32.mrb[4].mxu1 }
 0x531   :  { %v1294_v2 = vpop.f32.mrb[5].mxu1  ;;  %v4653_v61 = vadd.f32 %v1292_v62, %v5322_v32  ;;  %v5992_v62 = vld [vmem:[#allocation21_spill] sm:$0xff] }
 0x550   :  { %v1363_v7 = vpop.f32.mrb[4].mxu0 }
 0x551   :  { %v4637_v14 = vadd.f32 %v1363_v7, %v5986_v35  ;;  %v1365_v16 = vpop.f32.mrb[5].mxu0 }
 0x552   :  { %v4638_v48 = vadd.f32 %v1365_v16, %v5320_v52 }
 0x553   :  { %v1373_v59 = vmul.f32 0.5, %v4637_v14 }
 0x554   :  { %v1378_v63 = vmul.f32 0.5, %v4638_v48 }
 0x555   :  { %4747 = vtanh.f32 %v1373_v59 }
 0x556   :  { %4749 = vtanh.f32 %v1378_v63 }
 0x557   :  { %4751 = vtanh.f32 %v4653_v61  ;;  %v5987_v61 = vld [vmem:[#allocation16_spill] sm:$0xff] }
 0x55f   :  { %v4748_v3 = vpop.eup %4747 }
 0x560   :  { %v4750_v15 = vpop.eup %4749  ;;  %v1375_v47 = vmul.f32 0.5, %v4748_v3  ;;  %v5989_v3 = vld [vmem:[#allocation18_spill] sm:$0xff] }
 0x561   :  { %v1380_v29 = vmul.f32 0.5, %v4750_v15  ;;  %v4752_v17 = vpop.eup %4751  ;;  %v5988_v15 = vld [vmem:[#allocation17_spill] sm:$0xff] }
 0x562   :  { %v1376_v51 = vadd.f32 0.5, %v1375_v47  ;;  %v5990_v47 = vld [vmem:[#allocation19_spill] sm:$0xff] }
 0x563   :  { %v1381_v13 = vadd.f32 0.5, %v1380_v29 }
 0x564   :  { %v1384_v33 = vmul.f32 %v4752_v17, %v1376_v51  ;;  %v5991_v51 = vld [vmem:[#allocation20_spill] sm:$0xff] }
 0x565   :  { %v1383_v7 = vmul.f32 %v1381_v13, %v5408_v45  ;;  %v4654_v45 = vadd.f32 %v1294_v2, %v5347_v37  ;;  %v5993_v2 = vld [vmem:[#allocation22_spill] sm:$0xff] }
 0x567   :  { %v5487_v35 = vadd.f32 %v1384_v33, %v1383_v7  ;;  %v5994_v7 = vld [vmem:[#allocation23_spill] sm:$0xff] }
 0x569   :  { %3429 = vmatmul.mubr.f32.vlgmr.msra.gmra.mrb[20].mxu1 %v5487_v35 }
 0x56a   :  { %4044 = vmatpush1.bf16.msra.mxu1 %v5078_v34  ;;  %1605 = vmatprep.mubr.f32.mxu1 %v5953_v0 }
 0x56b   :  { %4046 = vmatprep.subr.bf16.mxu1 %v5085_v41 }
 0x56e   :  { %4048 = vmatpush1.bf16.msra.mxu1 %v5092_v46 }
 0x56f   :  { %4050 = vmatprep.subr.bf16.mxu1 %v5104_v55 }
 0x572   :  { %4052 = vmatpush1.bf16.msra.mxu1 %v5108_v58 }
 0x573   :  { %4054 = vmatprep.subr.bf16.mxu1 %v5123_v5 }
 0x576   :  { %4056 = vmatpush1.bf16.msra.mxu1 %v5127_v8 }
 0x577   :  { %4058 = vmatprep.subr.bf16.mxu1 %v5142_v20 }
 0x57a   :  { %4060 = vmatpush1.bf16.msra.mxu1 %v5146_v24 }
 0x57b   :  { %4062 = vmatprep.subr.bf16.mxu1 %v5161_v38 }
 0x57e   :  { %4064 = vmatpush1.bf16.msra.mxu1 %v5165_v42 }
 0x57f   :  { %4066 = vmatprep.subr.bf16.mxu1 %v5180_v56 }
 0x582   :  { %4068 = vmatpush1.bf16.msra.mxu1 %v5184_v60 }
 0x583   :  { %4070 = vmatprep.subr.bf16.mxu1 %v5199_v12 }
 0x586   :  { %4072 = vmatpush1.bf16.msra.mxu1 %v5203_v18 }
 0x587   :  { %4105 = vmatprep.subr.bf16.mxu1 %v5954_v22 }
 0x63c   :  { %v1452_v33 = vpop.f32.mrb[20].mxu1 }
 0x63d   :  { %v1456_v13 = vadd.f32 %v4654_v45, %v1452_v33  ;;  %v3430_v17 = vpop.f32.mrb[21].mxu1  ;;  %v5995_v45 = vld [vmem:[#allocation24_spill] sm:$0xff]  ;;  %v5996_v33 = vld [vmem:[#allocation25_spill] sm:$0xff] }
 0x63e   :  { %v5998_v17 = vld [vmem:[#allocation27_spill] sm:$0xff] }
 0x63f   :  { %v1457_v29 = vmul.f32 0.5, %v1456_v13  ;;  %v5997_v13 = vld [vmem:[#allocation26_spill] sm:$0xff] }
 0x641   :  { %4753 = vtanh.f32 %v1457_v29  ;;  %v5999_v29 = vld [vmem:[#allocation28_spill] sm:$0xff] }
 0x642   :  { %4755 = vtanh.f32 %v5487_v35 }
 0x64b   :  { %v4754_v59 = vpop.eup %4753 }
 0x64c   :  { %v1459_v14 = vmul.f32 0.5, %v4754_v59  ;;  %v4756_v48 = vpop.eup %4755  ;;  %v6000_v59 = vld [vmem:[#allocation29_spill] sm:$0xff] }
 0x64e   :  { %v1460_v16 = vadd.f32 0.5, %v1459_v14  ;;  %v6001_v14 = vld [vmem:[#allocation30_spill] sm:$0xff] }
 0x650   :  { %v1462_v63 = vmul.f32 %v4756_v48, %v1460_v16  ;;  %v6002_v16 = vld [vmem:[#allocation31_spill] sm:$0xff] }
 0x652   :  { %1535 = vmatmul.mubr.f32.vlgmr.msra.gmra.mrb[6].mxu0 %v1462_v63  ;;  %1606 = vmatmul.mubr.f32.vlgmr.msra.gmra.mrb[6].mxu1 %v1462_v63 }
 0x653   :  { %4076 = vmatpush1.bf16.msra.mxu0 %v5207_v19  ;;  %1676 = vmatprep.mubr.f32.mxu0 %v5953_v0 }
 0x654   :  { %4078 = vmatprep.subr.bf16.mxu0 %v5211_v21  ;;  %4107 = vmatpush3.bf16.msra.mxu1 %v5281_v1 }
 0x655   :  { %4108 = vmatprep.subr.bf16.mxu1 %v5954_v22  ;;  %3463 = vmatprep.mubr.msk.f32.mxu1 %vm4937_vm1, %v5953_v0 }
 0x657   :  { %4080 = vmatpush1.bf16.msra.mxu0 %v5219_v30 }
 0x658   :  { %4082 = vmatprep.subr.bf16.mxu0 %v5222_v31  ;;  %4110 = vmatpush3.bf16.msra.mxu1 %v5284_v11 }
 0x659   :  { %4111 = vmatprep.subr.bf16.mxu1 %v5954_v22 }
 0x65b   :  { %4084 = vmatpush1.bf16.msra.mxu0 %v5227_v43 }
 0x65c   :  { %4086 = vmatprep.subr.bf16.mxu0 %v5230_v44  ;;  %4113 = vmatpush3.bf16.msra.mxu1 %v5289_v26 }
 0x65d   :  { %4114 = vmatprep.subr.bf16.mxu1 %v5954_v22 }
 0x65f   :  { %4088 = vmatpush1.bf16.msra.mxu0 %v5233_v54 }
 0x660   :  { %4090 = vmatprep.subr.bf16.mxu0 %v5236_v57  ;;  %4116 = vmatpush3.bf16.msra.mxu1 %v5293_v36 }
 0x661   :  { %4117 = vmatprep.subr.bf16.mxu1 %v5954_v22 }
 0x663   :  { %4092 = vmatpush1.bf16.msra.mxu0 %v5239_v4 }
 0x664   :  { %4094 = vmatprep.subr.bf16.mxu0 %v5242_v6  ;;  %4119 = vmatpush3.bf16.msra.mxu1 %v5297_v53 }
 0x665   :  { %4120 = vmatprep.subr.bf16.mxu1 %v5954_v22 }
 0x667   :  { %4096 = vmatpush1.bf16.msra.mxu0 %v5245_v23 }
 0x668   :  { %4098 = vmatprep.subr.bf16.mxu0 %v5248_v25  ;;  %4122 = vmatpush3.bf16.msra.mxu1 %v5301_v10 }
 0x669   :  { %4123 = vmatprep.subr.bf16.mxu1 %v5954_v22 }
 0x66b   :  { %4100 = vmatpush1.bf16.msra.mxu0 %v5251_v39 }
 0x66c   :  { %4102 = vmatprep.subr.bf16.mxu0 %v5254_v40  ;;  %4125 = vmatpush3.bf16.msra.mxu1 %v5305_v27 }
 0x66d   :  { %4126 = vmatprep.subr.bf16.mxu1 %v5954_v22 }
 0x66f   :  { %4104 = vmatpush1.bf16.msra.mxu0 %v5257_v50 }
 0x670   :  { %4128 = vmatpush3.bf16.msra.mxu1 %v5309_v49  ;;  %4130 = vmatprep.subr.bf16.mxu0 %v5046_v9 }
 0x671   :  { %4162 = vmatprep.subr.bf16.mxu1 %v5069_v28 }
 0x672   :  { %1677 = vmatmul.mubr.f32.vlgmr.msra.gmra.mrb[6].mxu0 %v5487_v35 }
 0x673   :  { %4132 = vmatpush1.bf16.msra.mxu0 %v5987_v61  ;;  %1849 = vmatprep.mubr.f32.mxu0 %v5953_v0 }
 0x674   :  { %4134 = vmatprep.subr.bf16.mxu0 %v5988_v15 }
 0x677   :  { %4136 = vmatpush1.bf16.msra.mxu0 %v5989_v3 }
 0x678   :  { %4138 = vmatprep.subr.bf16.mxu0 %v5990_v47 }
 0x67b   :  { %4140 = vmatpush1.bf16.msra.mxu0 %v5991_v51 }
 0x67c   :  { %4142 = vmatprep.subr.bf16.mxu0 %v5992_v62 }
 0x67f   :  { %4144 = vmatpush1.bf16.msra.mxu0 %v5993_v2 }
 0x680   :  { %4146 = vmatprep.subr.bf16.mxu0 %v5994_v7  ;;  %v6003_v7 = vld [vmem:[#allocation32_spill] sm:$0xff] }
 0x683   :  { %4148 = vmatpush1.bf16.msra.mxu0 %v5995_v45 }
 0x684   :  { %4150 = vmatprep.subr.bf16.mxu0 %v5996_v33 }
 0x687   :  { %4152 = vmatpush1.bf16.msra.mxu0 %v5997_v13 }
 0x688   :  { %4154 = vmatprep.subr.bf16.mxu0 %v5998_v17 }
 0x68b   :  { %4156 = vmatpush1.bf16.msra.mxu0 %v5999_v29 }
 0x68c   :  { %4158 = vmatprep.subr.bf16.mxu0 %v6000_v59 }
 0x68f   :  { %4160 = vmatpush1.bf16.msra.mxu0 %v6001_v14 }
 0x690   :  { %4194 = vmatprep.subr.bf16.mxu0 %v6002_v16 }
 0x725   :  { %v1607_v48 = vpop.f32.mrb[6].mxu1 }
 0x726   :  { %v1609_v63 = vpop.f32.mrb[7].mxu1  ;;  %v4655_v17 = vadd.f32 %v1607_v48, %v5322_v32  ;;  %v6009_v48 = vld [vmem:[#allocation21_spill] sm:$0xff] }
 0x745   :  { %v1678_v2 = vpop.f32.mrb[6].mxu0 }
 0x746   :  { %v4639_v62 = vadd.f32 %v1678_v2, %v6003_v7  ;;  %v1680_v45 = vpop.f32.mrb[7].mxu0 }
 0x747   :  { %v4640_v33 = vadd.f32 %v1680_v45, %v5320_v52 }
 0x748   :  { %v1688_v51 = vmul.f32 0.5, %v4639_v62 }
 0x749   :  { %v1693_v13 = vmul.f32 0.5, %v4640_v33 }
 0x74a   :  { %4757 = vtanh.f32 %v1688_v51 }
 0x74b   :  { %4759 = vtanh.f32 %v1693_v13 }
 0x74c   :  { %4761 = vtanh.f32 %v4655_v17  ;;  %v6004_v17 = vld [vmem:[#allocation16_spill] sm:$0xff] }
 0x754   :  { %v4758_v59 = vpop.eup %4757 }
 0x755   :  { %v4760_v29 = vpop.eup %4759  ;;  %v1690_v14 = vmul.f32 0.5, %v4758_v59  ;;  %v6006_v59 = vld [vmem:[#allocation18_spill] sm:$0xff] }
 0x756   :  { %v1695_v47 = vmul.f32 0.5, %v4760_v29  ;;  %v4762_v3 = vpop.eup %4761  ;;  %v6005_v29 = vld [vmem:[#allocation17_spill] sm:$0xff] }
 0x757   :  { %v1691_v16 = vadd.f32 0.5, %v1690_v14  ;;  %v6007_v14 = vld [vmem:[#allocation19_spill] sm:$0xff] }
 0x758   :  { %v1696_v15 = vadd.f32 0.5, %v1695_v47 }
 0x759   :  { %v1699_v61 = vmul.f32 %v4762_v3, %v1691_v16  ;;  %v6008_v16 = vld [vmem:[#allocation20_spill] sm:$0xff] }
 0x75a   :  { %v1698_v2 = vmul.f32 %v1696_v15, %v5487_v35  ;;  %v4656_v35 = vadd.f32 %v1609_v63, %v5347_v37  ;;  %v6010_v63 = vld [vmem:[#allocation22_spill] sm:$0xff] }
 0x75c   :  { %v5566_v7 = vadd.f32 %v1699_v61, %v1698_v2  ;;  %v6011_v2 = vld [vmem:[#allocation23_spill] sm:$0xff] }
 0x75e   :  { %3464 = vmatmul.mubr.f32.vlgmr.msra.gmra.mrb[22].mxu1 %v5566_v7 }
 0x75f   :  { %4164 = vmatpush1.bf16.msra.mxu1 %v5078_v34  ;;  %1920 = vmatprep.mubr.f32.mxu1 %v5953_v0 }
 0x760   :  { %4166 = vmatprep.subr.bf16.mxu1 %v5085_v41 }
 0x763   :  { %4168 = vmatpush1.bf16.msra.mxu1 %v5092_v46 }
 0x764   :  { %4170 = vmatprep.subr.bf16.mxu1 %v5104_v55 }
 0x767   :  { %4172 = vmatpush1.bf16.msra.mxu1 %v5108_v58 }
 0x768   :  { %4174 = vmatprep.subr.bf16.mxu1 %v5123_v5 }
 0x76b   :  { %4176 = vmatpush1.bf16.msra.mxu1 %v5127_v8 }
 0x76c   :  { %4178 = vmatprep.subr.bf16.mxu1 %v5142_v20 }
 0x76f   :  { %4180 = vmatpush1.bf16.msra.mxu1 %v5146_v24 }
 0x770   :  { %4182 = vmatprep.subr.bf16.mxu1 %v5161_v38 }
 0x773   :  { %4184 = vmatpush1.bf16.msra.mxu1 %v5165_v42 }
 0x774   :  { %4186 = vmatprep.subr.bf16.mxu1 %v5180_v56 }
 0x777   :  { %4188 = vmatpush1.bf16.msra.mxu1 %v5184_v60 }
 0x778   :  { %4190 = vmatprep.subr.bf16.mxu1 %v5199_v12 }
 0x77b   :  { %4192 = vmatpush1.bf16.msra.mxu1 %v5203_v18 }
 0x77c   :  { %4225 = vmatprep.subr.bf16.mxu1 %v5954_v22 }
 0x831   :  { %v1767_v61 = vpop.f32.mrb[22].mxu1 }
 0x832   :  { %v1771_v15 = vadd.f32 %v4656_v35, %v1767_v61  ;;  %v3465_v3 = vpop.f32.mrb[23].mxu1  ;;  %v6012_v35 = vld [vmem:[#allocation24_spill] sm:$0xff]  ;;  %v6013_v61 = vld [vmem:[#allocation25_spill] sm:$0xff] }
 0x833   :  { %v6015_v3 = vld [vmem:[#allocation27_spill] sm:$0xff] }
 0x834   :  { %v1772_v47 = vmul.f32 0.5, %v1771_v15  ;;  %v6014_v15 = vld [vmem:[#allocation26_spill] sm:$0xff] }
 0x836   :  { %4763 = vtanh.f32 %v1772_v47  ;;  %v6016_v47 = vld [vmem:[#allocation28_spill] sm:$0xff] }
 0x837   :  { %4765 = vtanh.f32 %v5566_v7 }
 0x840   :  { %v4764_v51 = vpop.eup %4763 }
 0x841   :  { %v1774_v62 = vmul.f32 0.5, %v4764_v51  ;;  %v4766_v33 = vpop.eup %4765  ;;  %v6017_v51 = vld [vmem:[#allocation29_spill] sm:$0xff] }
 0x843   :  { %v1775_v45 = vadd.f32 0.5, %v1774_v62  ;;  %v6018_v62 = vld [vmem:[#allocation30_spill] sm:$0xff] }
 0x845   :  { %v1777_v13 = vmul.f32 %v4766_v33, %v1775_v45  ;;  %v6019_v45 = vld [vmem:[#allocation31_spill] sm:$0xff] }
 0x847   :  { %1850 = vmatmul.mubr.f32.vlgmr.msra.gmra.mrb[8].mxu0 %v1777_v13  ;;  %1921 = vmatmul.mubr.f32.vlgmr.msra.gmra.mrb[8].mxu1 %v1777_v13 }
 0x848   :  { %4196 = vmatpush1.bf16.msra.mxu0 %v5207_v19  ;;  %1991 = vmatprep.mubr.f32.mxu0 %v5953_v0 }
 0x849   :  { %4198 = vmatprep.subr.bf16.mxu0 %v5211_v21  ;;  %4227 = vmatpush3.bf16.msra.mxu1 %v5281_v1 }
 0x84a   :  { %4228 = vmatprep.subr.bf16.mxu1 %v5954_v22  ;;  %3498 = vmatprep.mubr.msk.f32.mxu1 %vm4937_vm1, %v5953_v0 }
 0x84c   :  { %4200 = vmatpush1.bf16.msra.mxu0 %v5219_v30 }
 0x84d   :  { %4202 = vmatprep.subr.bf16.mxu0 %v5222_v31  ;;  %4230 = vmatpush3.bf16.msra.mxu1 %v5284_v11 }
 0x84e   :  { %4231 = vmatprep.subr.bf16.mxu1 %v5954_v22 }
 0x850   :  { %4204 = vmatpush1.bf16.msra.mxu0 %v5227_v43 }
 0x851   :  { %4206 = vmatprep.subr.bf16.mxu0 %v5230_v44  ;;  %4233 = vmatpush3.bf16.msra.mxu1 %v5289_v26 }
 0x852   :  { %4234 = vmatprep.subr.bf16.mxu1 %v5954_v22 }
 0x854   :  { %4208 = vmatpush1.bf16.msra.mxu0 %v5233_v54 }
 0x855   :  { %4210 = vmatprep.subr.bf16.mxu0 %v5236_v57  ;;  %4236 = vmatpush3.bf16.msra.mxu1 %v5293_v36 }
 0x856   :  { %4237 = vmatprep.subr.bf16.mxu1 %v5954_v22 }
 0x858   :  { %4212 = vmatpush1.bf16.msra.mxu0 %v5239_v4 }
 0x859   :  { %4214 = vmatprep.subr.bf16.mxu0 %v5242_v6  ;;  %4239 = vmatpush3.bf16.msra.mxu1 %v5297_v53 }
 0x85a   :  { %4240 = vmatprep.subr.bf16.mxu1 %v5954_v22 }
 0x85c   :  { %4216 = vmatpush1.bf16.msra.mxu0 %v5245_v23 }
 0x85d   :  { %4218 = vmatprep.subr.bf16.mxu0 %v5248_v25  ;;  %4242 = vmatpush3.bf16.msra.mxu1 %v5301_v10 }
 0x85e   :  { %4243 = vmatprep.subr.bf16.mxu1 %v5954_v22 }
 0x860   :  { %4220 = vmatpush1.bf16.msra.mxu0 %v5251_v39 }
 0x861   :  { %4222 = vmatprep.subr.bf16.mxu0 %v5254_v40  ;;  %4245 = vmatpush3.bf16.msra.mxu1 %v5305_v27 }
 0x862   :  { %4246 = vmatprep.subr.bf16.mxu1 %v5954_v22 }
 0x864   :  { %4224 = vmatpush1.bf16.msra.mxu0 %v5257_v50 }
 0x865   :  { %4248 = vmatpush3.bf16.msra.mxu1 %v5309_v49  ;;  %4250 = vmatprep.subr.bf16.mxu0 %v5046_v9 }
 0x866   :  { %4282 = vmatprep.subr.bf16.mxu1 %v5069_v28 }
 0x867   :  { %1992 = vmatmul.mubr.f32.vlgmr.msra.gmra.mrb[8].mxu0 %v5566_v7 }
 0x868   :  { %4252 = vmatpush1.bf16.msra.mxu0 %v6004_v17  ;;  %2164 = vmatprep.mubr.f32.mxu0 %v5953_v0 }
 0x869   :  { %4254 = vmatprep.subr.bf16.mxu0 %v6005_v29 }
 0x86c   :  { %4256 = vmatpush1.bf16.msra.mxu0 %v6006_v59 }
 0x86d   :  { %4258 = vmatprep.subr.bf16.mxu0 %v6007_v14 }
 0x870   :  { %4260 = vmatpush1.bf16.msra.mxu0 %v6008_v16 }
 0x871   :  { %4262 = vmatprep.subr.bf16.mxu0 %v6009_v48 }
 0x874   :  { %4264 = vmatpush1.bf16.msra.mxu0 %v6010_v63 }
 0x875   :  { %4266 = vmatprep.subr.bf16.mxu0 %v6011_v2  ;;  %v6020_v2 = vld [vmem:[#allocation32_spill] sm:$0xff] }
 0x878   :  { %4268 = vmatpush1.bf16.msra.mxu0 %v6012_v35 }
 0x879   :  { %4270 = vmatprep.subr.bf16.mxu0 %v6013_v61 }
 0x87c   :  { %4272 = vmatpush1.bf16.msra.mxu0 %v6014_v15 }
 0x87d   :  { %4274 = vmatprep.subr.bf16.mxu0 %v6015_v3 }
 0x880   :  { %4276 = vmatpush1.bf16.msra.mxu0 %v6016_v47 }
 0x881   :  { %4278 = vmatprep.subr.bf16.mxu0 %v6017_v51 }
 0x884   :  { %4280 = vmatpush1.bf16.msra.mxu0 %v6018_v62 }
 0x885   :  { %4314 = vmatprep.subr.bf16.mxu0 %v6019_v45 }
 0x91a   :  { %v1922_v33 = vpop.f32.mrb[8].mxu1 }
 0x91b   :  { %v1924_v13 = vpop.f32.mrb[9].mxu1  ;;  %v4657_v3 = vadd.f32 %v1922_v33, %v5322_v32  ;;  %v6026_v33 = vld [vmem:[#allocation21_spill] sm:$0xff] }
 0x93a   :  { %v1993_v63 = vpop.f32.mrb[8].mxu0 }
 0x93b   :  { %v4641_v48 = vadd.f32 %v1993_v63, %v6020_v2  ;;  %v1995_v35 = vpop.f32.mrb[9].mxu0 }
 0x93c   :  { %v4642_v61 = vadd.f32 %v1995_v35, %v5320_v52 }
 0x93d   :  { %v2003_v16 = vmul.f32 0.5, %v4641_v48 }
 0x93e   :  { %v2008_v15 = vmul.f32 0.5, %v4642_v61 }
 0x93f   :  { %4767 = vtanh.f32 %v2003_v16 }
 0x940   :  { %4769 = vtanh.f32 %v2008_v15 }
 0x941   :  { %4771 = vtanh.f32 %v4657_v3  ;;  %v6021_v3 = vld [vmem:[#allocation16_spill] sm:$0xff] }
 0x949   :  { %v4768_v51 = vpop.eup %4767 }
 0x94a   :  { %v4770_v47 = vpop.eup %4769  ;;  %v2005_v62 = vmul.f32 0.5, %v4768_v51  ;;  %v6023_v51 = vld [vmem:[#allocation18_spill] sm:$0xff] }
 0x94b   :  { %v2010_v14 = vmul.f32 0.5, %v4770_v47  ;;  %v4772_v59 = vpop.eup %4771  ;;  %v6022_v47 = vld [vmem:[#allocation17_spill] sm:$0xff] }
 0x94c   :  { %v2006_v45 = vadd.f32 0.5, %v2005_v62  ;;  %v6024_v62 = vld [vmem:[#allocation19_spill] sm:$0xff] }
 0x94d   :  { %v2011_v29 = vadd.f32 0.5, %v2010_v14 }
 0x94e   :  { %v2014_v17 = vmul.f32 %v4772_v59, %v2006_v45  ;;  %v6025_v45 = vld [vmem:[#allocation20_spill] sm:$0xff] }
 0x94f   :  { %v2013_v63 = vmul.f32 %v2011_v29, %v5566_v7  ;;  %v4658_v7 = vadd.f32 %v1924_v13, %v5347_v37  ;;  %v6027_v13 = vld [vmem:[#allocation22_spill] sm:$0xff] }
 0x951   :  { %v5645_v2 = vadd.f32 %v2014_v17, %v2013_v63  ;;  %v6028_v63 = vld [vmem:[#allocation23_spill] sm:$0xff] }
 0x953   :  { %3499 = vmatmul.mubr.f32.vlgmr.msra.gmra.mrb[24].mxu1 %v5645_v2 }
 0x954   :  { %4284 = vmatpush1.bf16.msra.mxu1 %v5078_v34  ;;  %2235 = vmatprep.mubr.f32.mxu1 %v5953_v0 }
 0x955   :  { %4286 = vmatprep.subr.bf16.mxu1 %v5085_v41 }
 0x958   :  { %4288 = vmatpush1.bf16.msra.mxu1 %v5092_v46 }
 0x959   :  { %4290 = vmatprep.subr.bf16.mxu1 %v5104_v55 }
 0x95c   :  { %4292 = vmatpush1.bf16.msra.mxu1 %v5108_v58 }
 0x95d   :  { %4294 = vmatprep.subr.bf16.mxu1 %v5123_v5 }
 0x960   :  { %4296 = vmatpush1.bf16.msra.mxu1 %v5127_v8 }
 0x961   :  { %4298 = vmatprep.subr.bf16.mxu1 %v5142_v20 }
 0x964   :  { %4300 = vmatpush1.bf16.msra.mxu1 %v5146_v24 }
 0x965   :  { %4302 = vmatprep.subr.bf16.mxu1 %v5161_v38 }
 0x968   :  { %4304 = vmatpush1.bf16.msra.mxu1 %v5165_v42 }
 0x969   :  { %4306 = vmatprep.subr.bf16.mxu1 %v5180_v56 }
 0x96c   :  { %4308 = vmatpush1.bf16.msra.mxu1 %v5184_v60 }
 0x96d   :  { %4310 = vmatprep.subr.bf16.mxu1 %v5199_v12 }
 0x970   :  { %4312 = vmatpush1.bf16.msra.mxu1 %v5203_v18 }
 0x971   :  { %4345 = vmatprep.subr.bf16.mxu1 %v5954_v22 }
 0xa26   :  { %v2082_v17 = vpop.f32.mrb[24].mxu1 }
 0xa27   :  { %v2086_v29 = vadd.f32 %v4658_v7, %v2082_v17  ;;  %v3500_v59 = vpop.f32.mrb[25].mxu1  ;;  %v6029_v7 = vld [vmem:[#allocation24_spill] sm:$0xff]  ;;  %v6030_v17 = vld [vmem:[#allocation25_spill] sm:$0xff] }
 0xa28   :  { %v6032_v59 = vld [vmem:[#allocation27_spill] sm:$0xff] }
 0xa29   :  { %v2087_v14 = vmul.f32 0.5, %v2086_v29  ;;  %v6031_v29 = vld [vmem:[#allocation26_spill] sm:$0xff] }
 0xa2b   :  { %4773 = vtanh.f32 %v2087_v14  ;;  %v6033_v14 = vld [vmem:[#allocation28_spill] sm:$0xff] }
 0xa2c   :  { %4775 = vtanh.f32 %v5645_v2 }
 0xa35   :  { %v4774_v16 = vpop.eup %4773 }
 0xa36   :  { %v2089_v48 = vmul.f32 0.5, %v4774_v16  ;;  %v4776_v61 = vpop.eup %4775  ;;  %v6034_v16 = vld [vmem:[#allocation29_spill] sm:$0xff] }
 0xa38   :  { %v2090_v35 = vadd.f32 0.5, %v2089_v48  ;;  %v6035_v48 = vld [vmem:[#allocation30_spill] sm:$0xff] }
 0xa3a   :  { %v2092_v15 = vmul.f32 %v4776_v61, %v2090_v35  ;;  %v6036_v35 = vld [vmem:[#allocation31_spill] sm:$0xff] }
 0xa3c   :  { %2165 = vmatmul.mubr.f32.vlgmr.msra.gmra.mrb[10].mxu0 %v2092_v15  ;;  %2236 = vmatmul.mubr.f32.vlgmr.msra.gmra.mrb[10].mxu1 %v2092_v15 }
 0xa3d   :  { %4316 = vmatpush1.bf16.msra.mxu0 %v5207_v19  ;;  %2306 = vmatprep.mubr.f32.mxu0 %v5953_v0 }
 0xa3e   :  { %4318 = vmatprep.subr.bf16.mxu0 %v5211_v21  ;;  %4347 = vmatpush3.bf16.msra.mxu1 %v5281_v1 }
 0xa3f   :  { %4348 = vmatprep.subr.bf16.mxu1 %v5954_v22  ;;  %3533 = vmatprep.mubr.msk.f32.mxu1 %vm4937_vm1, %v5953_v0 }
 0xa41   :  { %4320 = vmatpush1.bf16.msra.mxu0 %v5219_v30 }
 0xa42   :  { %4322 = vmatprep.subr.bf16.mxu0 %v5222_v31  ;;  %4350 = vmatpush3.bf16.msra.mxu1 %v5284_v11 }
 0xa43   :  { %4351 = vmatprep.subr.bf16.mxu1 %v5954_v22 }
 0xa45   :  { %4324 = vmatpush1.bf16.msra.mxu0 %v5227_v43 }
 0xa46   :  { %4326 = vmatprep.subr.bf16.mxu0 %v5230_v44  ;;  %4353 = vmatpush3.bf16.msra.mxu1 %v5289_v26 }
 0xa47   :  { %4354 = vmatprep.subr.bf16.mxu1 %v5954_v22 }
 0xa49   :  { %4328 = vmatpush1.bf16.msra.mxu0 %v5233_v54 }
 0xa4a   :  { %4330 = vmatprep.subr.bf16.mxu0 %v5236_v57  ;;  %4356 = vmatpush3.bf16.msra.mxu1 %v5293_v36 }
 0xa4b   :  { %4357 = vmatprep.subr.bf16.mxu1 %v5954_v22 }
 0xa4d   :  { %4332 = vmatpush1.bf16.msra.mxu0 %v5239_v4 }
 0xa4e   :  { %4334 = vmatprep.subr.bf16.mxu0 %v5242_v6  ;;  %4359 = vmatpush3.bf16.msra.mxu1 %v5297_v53 }
 0xa4f   :  { %4360 = vmatprep.subr.bf16.mxu1 %v5954_v22 }
 0xa51   :  { %4336 = vmatpush1.bf16.msra.mxu0 %v5245_v23 }
 0xa52   :  { %4338 = vmatprep.subr.bf16.mxu0 %v5248_v25  ;;  %4362 = vmatpush3.bf16.msra.mxu1 %v5301_v10 }
 0xa53   :  { %4363 = vmatprep.subr.bf16.mxu1 %v5954_v22 }
 0xa55   :  { %4340 = vmatpush1.bf16.msra.mxu0 %v5251_v39 }
 0xa56   :  { %4342 = vmatprep.subr.bf16.mxu0 %v5254_v40  ;;  %4365 = vmatpush3.bf16.msra.mxu1 %v5305_v27 }
 0xa57   :  { %4366 = vmatprep.subr.bf16.mxu1 %v5954_v22 }
 0xa59   :  { %4344 = vmatpush1.bf16.msra.mxu0 %v5257_v50 }
 0xa5a   :  { %4368 = vmatpush3.bf16.msra.mxu1 %v5309_v49  ;;  %4370 = vmatprep.subr.bf16.mxu0 %v5046_v9 }
 0xa5b   :  { %4402 = vmatprep.subr.bf16.mxu1 %v5069_v28 }
 0xa5c   :  { %2307 = vmatmul.mubr.f32.vlgmr.msra.gmra.mrb[10].mxu0 %v5645_v2 }
 0xa5d   :  { %4372 = vmatpush1.bf16.msra.mxu0 %v6021_v3  ;;  %2479 = vmatprep.mubr.f32.mxu0 %v5953_v0 }
 0xa5e   :  { %4374 = vmatprep.subr.bf16.mxu0 %v6022_v47 }
 0xa61   :  { %4376 = vmatpush1.bf16.msra.mxu0 %v6023_v51 }
 0xa62   :  { %4378 = vmatprep.subr.bf16.mxu0 %v6024_v62 }
 0xa65   :  { %4380 = vmatpush1.bf16.msra.mxu0 %v6025_v45 }
 0xa66   :  { %4382 = vmatprep.subr.bf16.mxu0 %v6026_v33 }
 0xa69   :  { %4384 = vmatpush1.bf16.msra.mxu0 %v6027_v13 }
 0xa6a   :  { %4386 = vmatprep.subr.bf16.mxu0 %v6028_v63  ;;  %v6037_v63 = vld [vmem:[#allocation32_spill] sm:$0xff] }
 0xa6d   :  { %4388 = vmatpush1.bf16.msra.mxu0 %v6029_v7 }
 0xa6e   :  { %4390 = vmatprep.subr.bf16.mxu0 %v6030_v17 }
 0xa71   :  { %4392 = vmatpush1.bf16.msra.mxu0 %v6031_v29 }
 0xa72   :  { %4394 = vmatprep.subr.bf16.mxu0 %v6032_v59 }
 0xa75   :  { %4396 = vmatpush1.bf16.msra.mxu0 %v6033_v14 }
 0xa76   :  { %4398 = vmatprep.subr.bf16.mxu0 %v6034_v16 }
 0xa79   :  { %4400 = vmatpush1.bf16.msra.mxu0 %v6035_v48 }
 0xa7a   :  { %4434 = vmatprep.subr.bf16.mxu0 %v6036_v35 }
 0xb0f   :  { %v2237_v61 = vpop.f32.mrb[10].mxu1 }
 0xb10   :  { %v2239_v15 = vpop.f32.mrb[11].mxu1  ;;  %v4659_v59 = vadd.f32 %v2237_v61, %v5322_v32  ;;  %v6043_v61 = vld [vmem:[#allocation21_spill] sm:$0xff] }
 0xb2f   :  { %v2308_v13 = vpop.f32.mrb[10].mxu0 }
 0xb30   :  { %v4643_v33 = vadd.f32 %v2308_v13, %v6037_v63  ;;  %v2310_v7 = vpop.f32.mrb[11].mxu0 }
 0xb31   :  { %v4644_v17 = vadd.f32 %v2310_v7, %v5320_v52 }
 0xb32   :  { %v2318_v45 = vmul.f32 0.5, %v4643_v33 }
 0xb33   :  { %v2323_v29 = vmul.f32 0.5, %v4644_v17 }
 0xb34   :  { %4777 = vtanh.f32 %v2318_v45 }
 0xb35   :  { %4779 = vtanh.f32 %v2323_v29 }
 0xb36   :  { %4781 = vtanh.f32 %v4659_v59  ;;  %v6038_v59 = vld [vmem:[#allocation16_spill] sm:$0xff] }
 0xb3e   :  { %v4778_v16 = vpop.eup %4777 }
 0xb3f   :  { %v4780_v14 = vpop.eup %4779  ;;  %v2320_v48 = vmul.f32 0.5, %v4778_v16  ;;  %v6040_v16 = vld [vmem:[#allocation18_spill] sm:$0xff] }
 0xb40   :  { %v2325_v62 = vmul.f32 0.5, %v4780_v14  ;;  %v4782_v51 = vpop.eup %4781  ;;  %v6039_v14 = vld [vmem:[#allocation17_spill] sm:$0xff] }
 0xb41   :  { %v2321_v35 = vadd.f32 0.5, %v2320_v48  ;;  %v6041_v48 = vld [vmem:[#allocation19_spill] sm:$0xff] }
 0xb42   :  { %v2326_v47 = vadd.f32 0.5, %v2325_v62 }
 0xb43   :  { %v2329_v3 = vmul.f32 %v4782_v51, %v2321_v35  ;;  %v6042_v35 = vld [vmem:[#allocation20_spill] sm:$0xff] }
 0xb44   :  { %v2328_v13 = vmul.f32 %v2326_v47, %v5645_v2  ;;  %v4660_v2 = vadd.f32 %v2239_v15, %v5347_v37  ;;  %v6044_v15 = vld [vmem:[#allocation22_spill] sm:$0xff] }
 0xb46   :  { %v5724_v63 = vadd.f32 %v2329_v3, %v2328_v13  ;;  %v6047_v13 = vld [vmem:[#allocation25_spill] sm:$0xff] }
 0xb48   :  { %3534 = vmatmul.mubr.f32.vlgmr.msra.gmra.mrb[26].mxu1 %v5724_v63 }
 0xb49   :  { %4404 = vmatpush1.bf16.msra.mxu1 %v5078_v34  ;;  %2550 = vmatprep.mubr.f32.mxu1 %v5953_v0 }
 0xb4a   :  { %4406 = vmatprep.subr.bf16.mxu1 %v5085_v41 }
 0xb4d   :  { %4408 = vmatpush1.bf16.msra.mxu1 %v5092_v46 }
 0xb4e   :  { %4410 = vmatprep.subr.bf16.mxu1 %v5104_v55 }
 0xb51   :  { %4412 = vmatpush1.bf16.msra.mxu1 %v5108_v58 }
 0xb52   :  { %4414 = vmatprep.subr.bf16.mxu1 %v5123_v5 }
 0xb55   :  { %4416 = vmatpush1.bf16.msra.mxu1 %v5127_v8 }
 0xb56   :  { %4418 = vmatprep.subr.bf16.mxu1 %v5142_v20 }
 0xb59   :  { %4420 = vmatpush1.bf16.msra.mxu1 %v5146_v24 }
 0xb5a   :  { %4422 = vmatprep.subr.bf16.mxu1 %v5161_v38 }
 0xb5d   :  { %4424 = vmatpush1.bf16.msra.mxu1 %v5165_v42 }
 0xb5e   :  { %4426 = vmatprep.subr.bf16.mxu1 %v5180_v56 }
 0xb61   :  { %4428 = vmatpush1.bf16.msra.mxu1 %v5184_v60 }
 0xb62   :  { %4430 = vmatprep.subr.bf16.mxu1 %v5199_v12 }
 0xb65   :  { %4432 = vmatpush1.bf16.msra.mxu1 %v5203_v18 }
 0xb66   :  { %4465 = vmatprep.subr.bf16.mxu1 %v5954_v22 }
 0xc1b   :  { %v2397_v3 = vpop.f32.mrb[26].mxu1 }
 0xc1c   :  { %v2401_v47 = vadd.f32 %v4660_v2, %v2397_v3  ;;  %v3535_v51 = vpop.f32.mrb[27].mxu1  ;;  %v6048_v2 = vld [vmem:[#allocation26_spill] sm:$0xff]  ;;  %v6049_v3 = vld [vmem:[#allocation27_spill] sm:$0xff] }
 0xc1d   :  { %v6051_v51 = vld [vmem:[#allocation29_spill] sm:$0xff] }
 0xc1e   :  { %v2402_v62 = vmul.f32 0.5, %v2401_v47  ;;  %v6050_v47 = vld [vmem:[#allocation28_spill] sm:$0xff] }
 0xc20   :  { %4783 = vtanh.f32 %v2402_v62  ;;  %v6052_v62 = vld [vmem:[#allocation30_spill] sm:$0xff] }
 0xc21   :  { %4785 = vtanh.f32 %v5724_v63 }
 0xc2a   :  { %v4784_v45 = vpop.eup %4783 }
 0xc2b   :  { %v2404_v33 = vmul.f32 0.5, %v4784_v45  ;;  %v4786_v17 = vpop.eup %4785  ;;  %v6053_v45 = vld [vmem:[#allocation31_spill] sm:$0xff] }
 0xc2d   :  { %v2405_v7 = vadd.f32 0.5, %v2404_v33 }
 0xc2f   :  { %v2407_v29 = vmul.f32 %v4786_v17, %v2405_v7 }
 0xc31   :  { %2480 = vmatmul.mubr.f32.vlgmr.msra.gmra.mrb[12].mxu0 %v2407_v29  ;;  %2551 = vmatmul.mubr.f32.vlgmr.msra.gmra.mrb[12].mxu1 %v2407_v29  ;;  %v6054_v29 = vld [vmem:[#allocation32_spill] sm:$0xff] }
 0xc32   :  { %4436 = vmatpush1.bf16.msra.mxu0 %v5207_v19  ;;  %2621 = vmatprep.mubr.f32.mxu0 %v5953_v0 }
 0xc33   :  { %4438 = vmatprep.subr.bf16.mxu0 %v5211_v21  ;;  %4467 = vmatpush3.bf16.msra.mxu1 %v5281_v1 }
 0xc34   :  { %4468 = vmatprep.subr.bf16.mxu1 %v5954_v22  ;;  %3568 = vmatprep.mubr.msk.f32.mxu1 %vm4937_vm1, %v5953_v0 }
 0xc36   :  { %4440 = vmatpush1.bf16.msra.mxu0 %v5219_v30 }
 0xc37   :  { %4442 = vmatprep.subr.bf16.mxu0 %v5222_v31  ;;  %4470 = vmatpush3.bf16.msra.mxu1 %v5284_v11 }
 0xc38   :  { %4471 = vmatprep.subr.bf16.mxu1 %v5954_v22 }
 0xc3a   :  { %4444 = vmatpush1.bf16.msra.mxu0 %v5227_v43 }
 0xc3b   :  { %4446 = vmatprep.subr.bf16.mxu0 %v5230_v44  ;;  %4473 = vmatpush3.bf16.msra.mxu1 %v5289_v26 }
 0xc3c   :  { %4474 = vmatprep.subr.bf16.mxu1 %v5954_v22 }
 0xc3e   :  { %4448 = vmatpush1.bf16.msra.mxu0 %v5233_v54 }
 0xc3f   :  { %4450 = vmatprep.subr.bf16.mxu0 %v5236_v57  ;;  %4476 = vmatpush3.bf16.msra.mxu1 %v5293_v36 }
 0xc40   :  { %4477 = vmatprep.subr.bf16.mxu1 %v5954_v22 }
 0xc42   :  { %4452 = vmatpush1.bf16.msra.mxu0 %v5239_v4 }
 0xc43   :  { %4454 = vmatprep.subr.bf16.mxu0 %v5242_v6  ;;  %4479 = vmatpush3.bf16.msra.mxu1 %v5297_v53 }
 0xc44   :  { %4480 = vmatprep.subr.bf16.mxu1 %v5954_v22 }
 0xc46   :  { %4456 = vmatpush1.bf16.msra.mxu0 %v5245_v23 }
 0xc47   :  { %4458 = vmatprep.subr.bf16.mxu0 %v5248_v25  ;;  %4482 = vmatpush3.bf16.msra.mxu1 %v5301_v10 }
 0xc48   :  { %4483 = vmatprep.subr.bf16.mxu1 %v5954_v22 }
 0xc4a   :  { %4460 = vmatpush1.bf16.msra.mxu0 %v5251_v39 }
 0xc4b   :  { %4462 = vmatprep.subr.bf16.mxu0 %v5254_v40  ;;  %4485 = vmatpush3.bf16.msra.mxu1 %v5305_v27 }
 0xc4c   :  { %4486 = vmatprep.subr.bf16.mxu1 %v5954_v22 }
 0xc4e   :  { %4464 = vmatpush1.bf16.msra.mxu0 %v5257_v50 }
 0xc4f   :  { %4488 = vmatpush3.bf16.msra.mxu1 %v5309_v49  ;;  %4490 = vmatprep.subr.bf16.mxu0 %v5046_v9  ;;  %v6045_v9 = vld [vmem:[#allocation23_spill] sm:$0xff] }
 0xc50   :  { %4522 = vmatprep.subr.bf16.mxu1 %v5069_v28  ;;  %v6046_v28 = vld [vmem:[#allocation24_spill] sm:$0xff] }
 0xc51   :  { %2622 = vmatmul.mubr.f32.vlgmr.msra.gmra.mrb[12].mxu0 %v5724_v63 }
 0xc52   :  { %4492 = vmatpush1.bf16.msra.mxu0 %v6038_v59  ;;  %2794 = vmatprep.mubr.f32.mxu0 %v5953_v0 }
 0xc53   :  { %4494 = vmatprep.subr.bf16.mxu0 %v6039_v14 }
 0xc56   :  { %4496 = vmatpush1.bf16.msra.mxu0 %v6040_v16 }
 0xc57   :  { %4498 = vmatprep.subr.bf16.mxu0 %v6041_v48 }
 0xc5a   :  { %4500 = vmatpush1.bf16.msra.mxu0 %v6042_v35 }
 0xc5b   :  { %4502 = vmatprep.subr.bf16.mxu0 %v6043_v61 }
 0xc5e   :  { %4504 = vmatpush1.bf16.msra.mxu0 %v6044_v15 }
 0xc5f   :  { %4506 = vmatprep.subr.bf16.mxu0 %v6045_v9 }
 0xc62   :  { %4508 = vmatpush1.bf16.msra.mxu0 %v6046_v28 }
 0xc63   :  { %4510 = vmatprep.subr.bf16.mxu0 %v6047_v13 }
 0xc66   :  { %4512 = vmatpush1.bf16.msra.mxu0 %v6048_v2 }
 0xc67   :  { %4514 = vmatprep.subr.bf16.mxu0 %v6049_v3 }
 0xc6a   :  { %4516 = vmatpush1.bf16.msra.mxu0 %v6050_v47 }
 0xc6b   :  { %4518 = vmatprep.subr.bf16.mxu0 %v6051_v51 }
 0xc6e   :  { %4520 = vmatpush1.bf16.msra.mxu0 %v6052_v62 }
 0xc6f   :  { %4554 = vmatprep.subr.bf16.mxu0 %v6053_v45 }
 0xd04   :  { %v2552_v33 = vpop.f32.mrb[12].mxu1 }
 0xd05   :  { %v2554_v7 = vpop.f32.mrb[13].mxu1  ;;  %v4661_v61 = vadd.f32 %v2552_v33, %v5322_v32  ;;  %v3047_v33 = vld [vmem:[#allocation9 + $0x48] sm:$0xff] }
 0xd24   :  { %v2623_v17 = vpop.f32.mrb[12].mxu0 }
 0xd25   :  { %v4645_v59 = vadd.f32 %v2623_v17, %v6054_v29  ;;  %v2625_v14 = vpop.f32.mrb[13].mxu0  ;;  %v3048_v17 = vld [vmem:[#allocation9 + $0x50] sm:$0xff] }
 0xd26   :  { %v4646_v16 = vadd.f32 %v2625_v14, %v5320_v52  ;;  %v3050_v14 = vld [vmem:[#allocation9 + $0x60] sm:$0xff] }
 0xd27   :  { %v2633_v48 = vmul.f32 0.5, %v4645_v59 }
 0xd28   :  { %v2638_v35 = vmul.f32 0.5, %v4646_v16  ;;  %v3051_v16 = vld [vmem:[#allocation9 + $0x68] sm:$0xff] }
 0xd29   :  { %4787 = vtanh.f32 %v2633_v48  ;;  %v4628_v48 = vpack.c.bf16 %v3051_v16, %v3050_v14 }
 0xd2a   :  { %4789 = vtanh.f32 %v2638_v35  ;;  %v3052_v35 = vld [vmem:[#allocation9 + $0x70] sm:$0xff] }
 0xd2b   :  { %4791 = vtanh.f32 %v4661_v61  ;;  %v3053_v61 = vld [vmem:[#allocation9 + $0x78] sm:$0xff] }
 0xd33   :  { %v4788_v15 = vpop.eup %4787 }
 0xd34   :  { %v4790_v9 = vpop.eup %4789  ;;  %v2635_v28 = vmul.f32 0.5, %v4788_v15  ;;  %v4631_v15 = vpack.c.bf16 %v3053_v61, %v3052_v35 }
 0xd35   :  { %v2640_v13 = vmul.f32 0.5, %v4790_v9  ;;  %v4792_v3 = vpop.eup %4791 }
 0xd36   :  { %v2636_v2 = vadd.f32 0.5, %v2635_v28 }
 0xd37   :  { %v2641_v47 = vadd.f32 0.5, %v2640_v13 }
 0xd38   :  { %v2644_v51 = vmul.f32 %v4792_v3, %v2636_v2 }
 0xd39   :  { %v2643_v62 = vmul.f32 %v2641_v47, %v5724_v63 }
 0xd3b   :  { %v5803_v45 = vadd.f32 %v2644_v51, %v2643_v62 }
 0xd3d   :  { %3569 = vmatmul.mubr.f32.vlgmr.msra.gmra.mrb[28].mxu1 %v5803_v45 }
 0xd3e   :  { %4524 = vmatpush1.bf16.msra.mxu1 %v5078_v34  ;;  %2865 = vmatprep.mubr.f32.mxu1 %v5953_v0  ;;  %v4662_v34 = vadd.f32 %v2554_v7, %v5347_v37 }
 0xd3f   :  { %4526 = vmatprep.subr.bf16.mxu1 %v5085_v41 }
 0xd42   :  { %4528 = vmatpush1.bf16.msra.mxu1 %v5092_v46 }
 0xd43   :  { %4530 = vmatprep.subr.bf16.mxu1 %v5104_v55 }
 0xd46   :  { %4532 = vmatpush1.bf16.msra.mxu1 %v5108_v58 }
 0xd47   :  { %4534 = vmatprep.subr.bf16.mxu1 %v5123_v5 }
 0xd4a   :  { %4536 = vmatpush1.bf16.msra.mxu1 %v5127_v8 }
 0xd4b   :  { %4538 = vmatprep.subr.bf16.mxu1 %v5142_v20 }
 0xd4e   :  { %4540 = vmatpush1.bf16.msra.mxu1 %v5146_v24 }
 0xd4f   :  { %4542 = vmatprep.subr.bf16.mxu1 %v5161_v38 }
 0xd52   :  { %4544 = vmatpush1.bf16.msra.mxu1 %v5165_v42  ;;  %v3038_v42 = vld [vmem:[#allocation9] sm:$0xff] }
 0xd53   :  { %4546 = vmatprep.subr.bf16.mxu1 %v5180_v56  ;;  %v3039_v56 = vld [vmem:[#allocation9 + $0x8] sm:$0xff] }
 0xd56   :  { %4548 = vmatpush1.bf16.msra.mxu1 %v5184_v60  ;;  %v3040_v60 = vld [vmem:[#allocation9 + $0x10] sm:$0xff] }
 0xd57   :  { %4550 = vmatprep.subr.bf16.mxu1 %v5199_v12  ;;  %v4610_v12 = vpack.c.bf16 %v3039_v56, %v3038_v42 }
 0xd5a   :  { %4552 = vmatpush1.bf16.msra.mxu1 %v5203_v18  ;;  %v3041_v18 = vld [vmem:[#allocation9 + $0x18] sm:$0xff] }
 0xd5b   :  { %4585 = vmatprep.subr.bf16.mxu1 %v5954_v22 }
 0xe10   :  { %v2712_v41 = vpop.f32.mrb[28].mxu1 }
 0xe11   :  { %v2716_v46 = vadd.f32 %v4662_v34, %v2712_v41  ;;  %v3570_v55 = vpop.f32.mrb[29].mxu1 }
 0xe13   :  { %v2717_v58 = vmul.f32 0.5, %v2716_v46 }
 0xe15   :  { %4793 = vtanh.f32 %v2717_v58 }
 0xe16   :  { %4795 = vtanh.f32 %v5803_v45 }
 0xe1f   :  { %v4794_v5 = vpop.eup %4793 }
 0xe20   :  { %v2719_v8 = vmul.f32 0.5, %v4794_v5  ;;  %v4796_v24 = vpop.eup %4795 }
 0xe22   :  { %v2720_v20 = vadd.f32 0.5, %v2719_v8 }
 0xe24   :  { %v2722_v38 = vmul.f32 %v4796_v24, %v2720_v20 }
 0xe26   :  { %2795 = vmatmul.mubr.f32.vlgmr.msra.gmra.mrb[14].mxu0 %v2722_v38  ;;  %2866 = vmatmul.mubr.f32.vlgmr.msra.gmra.mrb[14].mxu1 %v2722_v38 }
 0xe27   :  { %4556 = vmatpush1.bf16.msra.mxu0 %v5207_v19  ;;  %2936 = vmatprep.mubr.f32.mxu0 %v5953_v0  ;;  %v4613_v19 = vpack.c.bf16 %v3041_v18, %v3040_v60 }
 0xe28   :  { %4558 = vmatprep.subr.bf16.mxu0 %v5211_v21  ;;  %4587 = vmatpush3.bf16.msra.mxu1 %v5281_v1  ;;  %v3042_v21 = vld [vmem:[#allocation9 + $0x20] sm:$0xff] }
 0xe29   :  { %4588 = vmatprep.subr.bf16.mxu1 %v5954_v22  ;;  %3603 = vmatprep.mubr.msk.f32.mxu1 %vm4937_vm1, %v5953_v0 }
 0xe2b   :  { %4560 = vmatpush1.bf16.msra.mxu0 %v5219_v30  ;;  %v3043_v30 = vld [vmem:[#allocation9 + $0x28] sm:$0xff] }
 0xe2c   :  { %4562 = vmatprep.subr.bf16.mxu0 %v5222_v31  ;;  %4590 = vmatpush3.bf16.msra.mxu1 %v5284_v11  ;;  %v4616_v31 = vpack.c.bf16 %v3043_v30, %v3042_v21 }
 0xe2d   :  { %4591 = vmatprep.subr.bf16.mxu1 %v5954_v22 }
 0xe2f   :  { %4564 = vmatpush1.bf16.msra.mxu0 %v5227_v43 }
 0xe30   :  { %4566 = vmatprep.subr.bf16.mxu0 %v5230_v44  ;;  %4593 = vmatpush3.bf16.msra.mxu1 %v5289_v26 }
 0xe31   :  { %4594 = vmatprep.subr.bf16.mxu1 %v5954_v22 }
 0xe33   :  { %4568 = vmatpush1.bf16.msra.mxu0 %v5233_v54 }
 0xe34   :  { %4570 = vmatprep.subr.bf16.mxu0 %v5236_v57  ;;  %4596 = vmatpush3.bf16.msra.mxu1 %v5293_v36 }
 0xe35   :  { %4597 = vmatprep.subr.bf16.mxu1 %v5954_v22 }
 0xe37   :  { %4572 = vmatpush1.bf16.msra.mxu0 %v5239_v4 }
 0xe38   :  { %4574 = vmatprep.subr.bf16.mxu0 %v5242_v6  ;;  %4599 = vmatpush3.bf16.msra.mxu1 %v5297_v53 }
 0xe39   :  { %4600 = vmatprep.subr.bf16.mxu1 %v5954_v22 }
 0xe3b   :  { %4576 = vmatpush1.bf16.msra.mxu0 %v5245_v23 }
 0xe3c   :  { %4578 = vmatprep.subr.bf16.mxu0 %v5248_v25  ;;  %4602 = vmatpush3.bf16.msra.mxu1 %v5301_v10 }
 0xe3d   :  { %4603 = vmatprep.subr.bf16.mxu1 %v5954_v22 }
 0xe3f   :  { %4580 = vmatpush1.bf16.msra.mxu0 %v5251_v39 }
 0xe40   :  { %4582 = vmatprep.subr.bf16.mxu0 %v5254_v40  ;;  %4605 = vmatpush3.bf16.msra.mxu1 %v5305_v27 }
 0xe41   :  { %4606 = vmatprep.subr.bf16.mxu1 %v5954_v22 }
 0xe43   :  { %4584 = vmatpush1.bf16.msra.mxu0 %v5257_v50 }
 0xe44   :  { %4608 = vmatpush3.bf16.msra.mxu1 %v5309_v49  ;;  %4609 = vmatprep.subr.bf16.mxu0 %v5954_v22 }
 0xe46   :  { %2937 = vmatmul.mubr.f32.vlgmr.msra.gmra.mrb[14].mxu0 %v5803_v45 }
 0xe47   :  { %3638 = vmatprep.mubr.msk.f32.mxu0 %vm4937_vm1, %v5953_v0  ;;  %4611 = vmatpush3.bf16.msra.mxu0 %v4610_v12  ;;  %v3045_v0 = vld [vmem:[#allocation9 + $0x38] sm:$0xff] }
 0xe48   :  { %4612 = vmatprep.subr.bf16.mxu0 %v5954_v22 }
 0xe4b   :  { %4614 = vmatpush3.bf16.msra.mxu0 %v4613_v19 }
 0xe4c   :  { %4615 = vmatprep.subr.bf16.mxu0 %v5954_v22 }
 0xe4f   :  { %4617 = vmatpush3.bf16.msra.mxu0 %v4616_v31 }
 0xe50   :  { %4618 = vmatprep.subr.bf16.mxu0 %v5954_v22 }
 0xef9   :  { %v2867_v43 = vpop.f32.mrb[14].mxu1 }
 0xefa   :  { %v2869_v44 = vpop.f32.mrb[15].mxu1  ;;  %v4663_v39 = vadd.f32 %v2867_v43, %v5322_v32  ;;  %v3046_v32 = vld [vmem:[#allocation9 + $0x40] sm:$0xff] }
 0xefb   :  { %v4622_v7 = vpack.c.bf16 %v3047_v33, %v3046_v32  ;;  %v4664_v9 = vadd.f32 %v2869_v44, %v5347_v37 }
 0xf19   :  { %v2938_v54 = vpop.f32.mrb[14].mxu0 }
 0xf1a   :  { %v4647_v57 = vadd.f32 %v2938_v54, %v6054_v29  ;;  %v2940_v4 = vpop.f32.mrb[15].mxu0  ;;  %v3049_v29 = vld [vmem:[#allocation9 + $0x58] sm:$0xff] }
 0xf1b   :  { %v4648_v6 = vadd.f32 %v2940_v4, %v5320_v52  ;;  %v3044_v52 = vld [vmem:[#allocation9 + $0x30] sm:$0xff]  ;;  %v4625_v59 = vpack.c.bf16 %v3049_v29, %v3048_v17 }
 0xf1c   :  { %v2948_v23 = vmul.f32 0.5, %v4647_v57  ;;  %v4619_v63 = vpack.c.bf16 %v3045_v0, %v3044_v52 }
 0xf1d   :  { %v2953_v25 = vmul.f32 0.5, %v4648_v6 }
 0xf1e   :  { %4797 = vtanh.f32 %v2948_v23  ;;  %4620 = vmatpush3.bf16.msra.mxu0 %v4619_v63 }
 0xf1f   :  { %4799 = vtanh.f32 %v2953_v25  ;;  %4621 = vmatprep.subr.bf16.mxu0 %v5954_v22 }
 0xf20   :  { %4801 = vtanh.f32 %v4663_v39 }
 0xf22   :  { %4623 = vmatpush3.bf16.msra.mxu0 %v4622_v7 }
 0xf23   :  { %4624 = vmatprep.subr.bf16.mxu0 %v5954_v22 }
 0xf26   :  { %4626 = vmatpush3.bf16.msra.mxu0 %v4625_v59 }
 0xf27   :  { %4627 = vmatprep.subr.bf16.mxu0 %v5954_v22 }
 0xf28   :  { %v4798_v40 = vpop.eup %4797 }
 0xf29   :  { %v4800_v50 = vpop.eup %4799  ;;  %v2950_v1 = vmul.f32 0.5, %v4798_v40 }
 0xf2a   :  { %v2955_v11 = vmul.f32 0.5, %v4800_v50  ;;  %v4802_v36 = vpop.eup %4801  ;;  %4629 = vmatpush3.bf16.msra.mxu0 %v4628_v48 }
 0xf2b   :  { %v2951_v26 = vadd.f32 0.5, %v2950_v1  ;;  %4630 = vmatprep.subr.bf16.mxu0 %v5954_v22  ;;  %v3172_v22 = vld [vmem:[%s5896_s7] ss:$0 sm:$0xff] }
 0xf2c   :  { %v2956_v53 = vadd.f32 0.5, %v2955_v11 }
 0xf2d   :  { %v2959_v10 = vmul.f32 %v4802_v36, %v2951_v26 }
 0xf2e   :  { %v2958_v27 = vmul.f32 %v2956_v53, %v5803_v45  ;;  %4632 = vmatpush3.bf16.msra.mxu0 %v4631_v15 }
 0xf30   :  { %v2960_v49 = vadd.f32 %v2959_v10, %v2958_v27 }
 0xf32   :  { %3604 = vmatmul.mubr.f32.vlgmr.msra.gmra.mrb[30].mxu1 %v2960_v49 }
0x1005   :  { %v3027_v28 = vpop.f32.mrb[30].mxu1 }
0x1006   :  { %v3031_v13 = vadd.f32 %v4664_v9, %v3027_v28  ;;  %v3605_v2 = vpop.f32.mrb[31].mxu1 }
0x1008   :  { %v3032_v3 = vmul.f32 0.5, %v3031_v13 }
0x100a   :  { %4803 = vtanh.f32 %v3032_v3 }
0x100b   :  { %4805 = vtanh.f32 %v2960_v49 }
0x1014   :  { %v4804_v47 = vpop.eup %4803 }
0x1015   :  { %v3034_v51 = vmul.f32 0.5, %v4804_v47  ;;  %v4806_v45 = vpop.eup %4805 }
0x1017   :  { %v3035_v62 = vadd.f32 0.5, %v3034_v51 }
0x1019   :  { %v3037_v34 = vmul.f32 %v4806_v45, %v3035_v62 }
0x101b   :  { %3639 = vmatmul.mubr.f32.vlgmr.msra.gmra.mrb[16].mxu0 %v3037_v34 }
0x10ee   :  { %v3127_v41 = vpop.f32.mrb[16].mxu0 }
0x10ef   :  { %v3128_v37 = vadd.f32 %v3172_v22, %v3127_v41  ;;  %v3640_v46 = vpop.f32.mrb[17].mxu0 }
0x10f1   :  { %3131 = vst [vmem:[#allocation11] sm:$0xff] %v3128_v37 }
0x10f2   :  { %4906 = shalt.err (!%p4903_p8)
}
0x10f3   :  { %s4907_s21 = scalar_lea.hbm %s5897_s8, 128 }
0x10f4   :  { %p4908_p9 = scmp.ne.s32.totalorder %s5897_s8, %s4907_s21  ;;  %p4911_p10 = scmp.lt.u32.totalorder %s4907_s21, %s5897_s8 }
0x10f6   :  { %p4913_p11 = pnand %p4911_p10, %p4908_p9 }
0x10f8   :  { %4916 = shalt.err (!%p4913_p11)
}
0x10f9   :  { %3141 = dma.vmem_to_hbm [thread:$0]  %s3139_s18, 128, %s5897_s8, [#allocation5]  }
0x10fa   :  { %4923 = dma.done.wait [#allocation5], 128  }
0x10fb   :  { %4924 = vsyncadd [#allocation5], 4294967168 }
0x10fc   :  { %3145 = vsyncpa [#allocation4], 1 }
0x10fd   :  { %3146 = vsyncpa [#allocation7], 1 }
0x10fe   :  { %3147 = vsyncpa [#allocation10], 1 }
0x10ff   :  { %3148 = vsyncpa [#allocation5], 1 }

</bundles_post_ra>
